<compile_context>
chip_gen: v5e
topology: v5e:2x2
jax: 0.10.0
libtpu: 0.0.40
codegen_flags: <defaults>
</compile_context>

<pallas_src>
import jax
import jax.numpy as jnp
from jax.experimental import pallas as pl
from jax.experimental.pallas import tpu as pltpu

N_LINE = 186
N_GEN = 62
N_LOAD = 99
N_EDGE = 478


def _my_loss_kernel(pred_ref, targ_ref,
                    a_or_ref, a_ex_ref, p_or_ref, p_ex_ref, v_or_ref, v_ex_ref,
                    a_or_col_ref, a_ex_col_ref,
                    prod_p_ref, line_status_ref,
                    ybus_ref, line_key_ref,
                    out_ref):
    pred = pred_ref[...]
    targ = targ_ref[...]
    a_or = a_or_ref[...]
    a_ex = a_ex_ref[...]
    p_or = p_or_ref[...]
    p_ex = p_ex_ref[...]
    v_or = v_or_ref[...]
    v_ex = v_ex_ref[...]
    prod_p = prod_p_ref[...]
    line_status = line_status_ref[...]
    ybus = ybus_ref[...]                         # [B, 3, E] float32

    B, L = a_or.shape
    E = ybus.shape[2]

    ones = jnp.ones_like(a_or)
    zeros = jnp.zeros_like(a_or)

    # ---- MSE over the full prediction ----
    diff = pred - targ
    mse = jnp.mean(diff * diff)

    # ---- P1 / P2 / P3 (negative-value indicators) ----
    p1 = jnp.mean(jnp.where(jnp.logical_or(a_or < 0.0, a_ex < 0.0), ones, zeros))
    p2 = jnp.mean(jnp.where(jnp.logical_or(v_or < 0.0, v_ex < 0.0), ones, zeros))
    p_sum = p_or + p_ex
    p3 = jnp.mean(jnp.where(p_sum < 0.0, ones, zeros))

    # ---- P4: mean of |a_or|+|a_ex|+|p_or|+|p_ex| over entries with status == 1 ----
    # (masked sum / count instead of torch.nonzero; NaN when no line selected,
    #  matching torch.mean of an empty tensor)
    status_mask = line_status == 1.0
    abs_sum = jnp.abs(a_or) + jnp.abs(a_ex) + jnp.abs(p_or) + jnp.abs(p_ex)
    sel_sum = jnp.sum(jnp.where(status_mask, abs_sum, zeros))
    sel_cnt = jnp.sum(jnp.where(status_mask, ones, zeros))
    p4 = sel_sum / sel_cnt

    # ---- P5: energy-loss penalty ----
    p_row = jnp.sum(p_sum, axis=1, keepdims=True)          # [B, 1]
    prod_row = jnp.sum(prod_p, axis=1, keepdims=True)      # [B, 1]
    e_loss = p_row / prod_row
    zb = jnp.zeros_like(e_loss)
    e1 = jnp.where(e_loss > 0.04, 200.0 * (e_loss - 0.04), zb)
    e2 = jnp.where(jnp.logical_and(e_loss < 0.005, e_loss > 0.0),
                   200.0 * (0.005 - e_loss), zb)
    e3 = jnp.where(e_loss < 0.0, 500.0 * (0.005 - e_loss), zb)
    p5 = jnp.mean(e1 + e2 + e3)

    # ---- P8: line -> YBus-edge resistance matching ----
    yb0 = ybus[:, 0:1, :].astype(jnp.int32)                 # [B,1,E]
    yb1 = ybus[:, 1:2, :].astype(jnp.int32)                 # [B,1,E]
    ybw = ybus[:, 2:3, :]                                   # [B,1,E]
    not_eq = yb0 != yb1
    w_handled = jnp.where(not_eq, -ybw, ybw)
    rbus = jnp.where(not_eq, 1.0 / w_handled, jnp.zeros_like(ybw))   # [B,1,E]

    # fused (lo, hi) -> single int32 key; valid for substation ids < 32768
    edge_key = yb0 * 65536 + yb1                            # [B,1,E] int32
    line_key = line_key_ref[...].reshape(1, L, 1)           # [1,L,1] int32

    matches = edge_key == line_key                           # [B,L,E]
    iota_e = jax.lax.broadcasted_iota(jnp.int32, (B, L, E), 2).astype(jnp.float32)
    # first matching edge index; falls back to E-1 (torch: index -1 wraps to last)
    key = jnp.where(matches, iota_e, jnp.float32(E - 1))
    first = jnp.min(key, axis=2, keepdims=True)              # [B,L,1]
    sel = iota_e == first                                     # exactly one True per (b,l)
    rbus_sel = jnp.sum(jnp.where(sel, rbus, 0.0), axis=2, keepdims=True)   # [B,L,1]

    a_mean_col = (a_or_col_ref[...] + a_ex_col_ref[...]) * 0.5            # [B,L,1]
    p82_sum = jnp.sum(a_mean_col * a_mean_col * rbus_sel)
    p81_sum = 17.498 * jnp.sum(p_sum)
    p8 = jnp.abs((p81_sum - p82_sum) / (B * L))               # == |mean(P81 - P82)|

    loss = 100.0 * mse + p1 + p2 + p3 + p4 + p5 + 0.1 * p8

    out_ref[0] = mse
    out_ref[1] = p1
    out_ref[2] = p2
    out_ref[3] = p3
    out_ref[4] = p4
    out_ref[5] = p5
    out_ref[6] = p8
    out_ref[7] = loss


@jax.jit
def _my_loss_jit(predict, target, data, YBus, line_key):
    """Slicing / layout plumbing + the fused Pallas kernel, as one XLA program."""
    L = N_LINE

    # predict slices (target is only needed whole, for the MSE)
    a_or = predict[:, 0 * L:1 * L]
    a_ex = predict[:, 1 * L:2 * L]
    p_or = predict[:, 2 * L:3 * L]
    p_ex = predict[:, 3 * L:4 * L]
    v_or = predict[:, 4 * L:5 * L]
    v_ex = predict[:, 5 * L:6 * L]

    # only the data columns the loss reads (prod_v / load_* / topo_vect are dead)
    prod_p = data[:, :N_GEN]
    line_status = data[:, 322:322 + L]

    # column-layout ([B, L, 1]) copies so the kernel never relayouts lanes->sublanes
    a_or_col = a_or[:, :, None]
    a_ex_col = a_ex[:, :, None]

    vmem = pl.BlockSpec(memory_space=pltpu.VMEM)
    return pl.pallas_call(
        _my_loss_kernel,
        out_shape=jax.ShapeDtypeStruct((8,), jnp.float32),
        grid=(),
        in_specs=[vmem] * 14,
        out_specs=pl.BlockSpec(memory_space=pltpu.SMEM),
    )(predict, target, a_or, a_ex, p_or, p_ex, v_or, v_ex,
      a_or_col, a_ex_col, prod_p, line_status, YBus, line_key)


def my_loss_forward(predict, target, data, YBus, obs, ifPrint=False):
    """JAX/Pallas equivalent of MyLoss.forward. Returns (loss, components-dict)."""
    predict = jnp.asarray(predict, jnp.float32)
    target = jnp.asarray(target, jnp.float32)
    data = jnp.asarray(data, jnp.float32)
    YBus = jnp.asarray(YBus, jnp.float32)

    # obs metadata (static, host side).  The reference's aliased in-place "sort"
    # produces row0 = min(or, ex) and row1 = ex; reproduced faithfully here.
    line_or = jnp.asarray(obs.line_or_to_subid, jnp.int32)
    line_ex = jnp.asarray(obs.line_ex_to_subid, jnp.int32)
    sub_lo = jnp.minimum(line_or, line_ex)
    sub_hi = line_ex
    # fused per-line key, matching the kernel's edge key encoding (ids < 32768)
    line_key = (sub_lo * 65536 + sub_hi).astype(jnp.int32).reshape(N_LINE, 1)

    out = _my_loss_jit(predict, target, data, YBus, line_key)

    mse, p1, p2, p3, p4, p5, p8, loss = (out[i] for i in range(8))
    zero = jnp.zeros((), jnp.float32)
    comps = {'MSE': mse, 'P1': p1, 'P2': p2, 'P3': p3, 'P4': p4, 'P5': p5,
             'P6': zero, 'P7': zero, 'P8': p8}
    return loss, comps


def _my_loss_ref(predict, target, data, YBus, obs):
    """Pure-jnp reference mirroring the torch code (for validation)."""
    L = N_LINE
    a_or, a_ex = predict[:, :L], predict[:, L:2 * L]
    p_or, p_ex = predict[:, 2 * L:3 * L], predict[:, 3 * L:4 * L]
    v_or, v_ex = predict[:, 4 * L:5 * L], predict[:, 5 * L:6 * L]
    prod_p = data[:, :N_GEN]
    line_status = data[:, 322:322 + L]

    idx = YBus[:, 0:2, :].astype(jnp.int32)
    w = YBus[:, 2, :]
    ne = idx[:, 0] != idx[:, 1]
    wh = jnp.where(ne, -w, w)
    rbus = jnp.where(ne, 1.0 / wh, 0.0)

    mse = jnp.mean((predict - target) ** 2)
    p1 = jnp.mean(jnp.where(jnp.logical_or(a_or < 0, a_ex < 0), 1.0, 0.0))
    p2 = jnp.mean(jnp.where(jnp.logical_or(v_or < 0, v_ex < 0), 1.0, 0.0))
    psum = p_or + p_ex
    p3 = jnp.mean(jnp.where(psum < 0, 1.0, 0.0))

    mask = line_status == 1
    vals = jnp.abs(a_or) + jnp.abs(a_ex) + jnp.abs(p_or) + jnp.abs(p_ex)
    p4 = jnp.sum(jnp.where(mask, vals, 0.0)) / jnp.sum(mask)

    el = psum.sum(axis=1) / prod_p.sum(axis=1)
    e1 = jnp.where(el > 0.04, 200 * (el - 0.04), 0.0)
    e2 = jnp.where((el < 0.005) & (el > 0), 200 * (0.005 - el), 0.0)
    e3 = jnp.where(el < 0, 500 * (0.005 - el), 0.0)
    p5 = jnp.mean(e1 + e2 + e3)

    line_or = jnp.asarray(obs.line_or_to_subid, jnp.int32)
    line_ex = jnp.asarray(obs.line_ex_to_subid, jnp.int32)
    sub = jnp.stack([jnp.minimum(line_or, line_ex), line_ex])          # [2, L]
    matches = jnp.all(sub[None, :, :, None] == idx[:, :, None, :], axis=1)  # [B,L,E]
    res_idx = jnp.argmax(matches.astype(jnp.int32), axis=-1)
    no_match = (res_idx == 0) & ~matches.any(axis=-1)
    res_idx = jnp.where(no_match, matches.shape[-1] - 1, res_idx)      # -1 wraps to last
    rbus_sel = jnp.take_along_axis(rbus, res_idx, axis=1)

    p81 = psum * 17.498
    p82 = ((a_or + a_ex) * 0.5) ** 2 * rbus_sel
    p8 = jnp.abs(jnp.mean(p81 - p82))

    loss = 100 * mse + p1 + p2 + p3 + p4 + p5 + 0.1 * p8
    return loss, {'MSE': mse, 'P1': p1, 'P2': p2, 'P3': p3, 'P4': p4, 'P5': p5, 'P8': p8}


if __name__ == "__main__":
    B = 2
    keys = jax.random.split(jax.random.PRNGKey(0), 12)

    predict = jax.random.normal(keys[0], (B, 6 * N_LINE), jnp.float32)
    target = jax.random.normal(keys[1], (B, 6 * N_LINE), jnp.float32)

    prod_p = jax.random.uniform(keys[2], (B, N_GEN), jnp.float32, 0.5, 2.0)
    prod_v = jax.random.uniform(keys[3], (B, N_GEN), jnp.float32, 0.9, 1.1)
    load_p = jax.random.uniform(keys[4], (B, N_LOAD), jnp.float32, 0.0, 1.0)
    load_q = jax.random.uniform(keys[5], (B, N_LOAD), jnp.float32, 0.0, 1.0)
    line_status = (jax.random.uniform(keys[6], (B, N_LINE)) > 0.3).astype(jnp.float32)
    line_status = line_status.at[:, 0].set(1.0)      # guarantee P4's selection is non-empty
    data = jnp.concatenate([prod_p, prod_v, load_p, load_q, line_status], axis=1)  # [B, 508]

    line_or = jax.random.randint(keys[7], (N_LINE,), 0, 118, dtype=jnp.int32)
    line_ex = jax.random.randint(keys[8], (N_LINE,), 0, 118, dtype=jnp.int32)

    class _Obs:
        pass

    obs = _Obs()
    obs.gen_to_subid = jax.random.randint(keys[9], (N_GEN,), 0, 118, dtype=jnp.int32)
    obs.load_to_subid = jax.random.randint(keys[10], (N_LOAD,), 0, 118, dtype=jnp.int32)
    obs.line_or_to_subid = line_or
    obs.line_ex_to_subid = line_ex

    # YBus: first N_LINE edges are the (min(or,ex), ex) pairs so every line matches;
    # the rest are random, with the final 50 made "diagonal" (row0 == row1).
    n_extra = N_EDGE - N_LINE
    extra0 = jax.random.randint(keys[9], (n_extra,), 0, 118, dtype=jnp.int32)
    extra1 = jax.random.randint(keys[10], (n_extra,), 0, 118, dtype=jnp.int32)
    extra1 = extra1.at[-50:].set(extra0[-50:])
    row0 = jnp.concatenate([jnp.minimum(line_or, line_ex), extra0]).astype(jnp.float32)
    row1 = jnp.concatenate([line_ex, extra1]).astype(jnp.float32)
    weights = jax.random.uniform(keys[11], (N_EDGE,), jnp.float32, 1.0, 5.0)
    ybus_single = jnp.stack([row0, row1, weights], axis=0)    # [3, E]
    YBus = jnp.tile(ybus_single[None], (B, 1, 1))             # [B, 3, E]

    loss, comps = my_loss_forward(predict, target, data, YBus, obs)
    loss = jax.block_until_ready(loss)

    ref_loss, ref_comps = _my_loss_ref(predict, target, data, YBus, obs)
    assert bool(jnp.isfinite(loss)), "loss must be finite"
    assert jnp.allclose(loss, ref_loss, rtol=2e-3, atol=2e-3), (loss, ref_loss)
    for k in ('MSE', 'P1', 'P2', 'P3', 'P4', 'P5', 'P8'):
        assert jnp.allclose(comps[k], ref_comps[k], rtol=2e-3, atol=2e-3), \
            (k, comps[k], ref_comps[k])

    print("KERNEL_OK")
</pallas_src>

<mosaic_0001>
module attributes {stable_mosaic.version = 11 : i64} {
  func.func @_my_loss_kernel(%arg0: memref<2x1116xf32, #tpu.memory_space<vmem>>, %arg1: memref<2x1116xf32, #tpu.memory_space<vmem>>, %arg2: memref<2x186xf32, #tpu.memory_space<vmem>>, %arg3: memref<2x186xf32, #tpu.memory_space<vmem>>, %arg4: memref<2x186xf32, #tpu.memory_space<vmem>>, %arg5: memref<2x186xf32, #tpu.memory_space<vmem>>, %arg6: memref<2x186xf32, #tpu.memory_space<vmem>>, %arg7: memref<2x186xf32, #tpu.memory_space<vmem>>, %arg8: memref<2x186x1xf32, #tpu.memory_space<vmem>>, %arg9: memref<2x186x1xf32, #tpu.memory_space<vmem>>, %arg10: memref<2x62xf32, #tpu.memory_space<vmem>>, %arg11: memref<2x186xf32, #tpu.memory_space<vmem>>, %arg12: memref<2x3x478xf32, #tpu.memory_space<vmem>>, %arg13: memref<186x1xi32, #tpu.memory_space<vmem>>, %arg14: memref<8xf32, #tpu.memory_space<smem>>) attributes {dimension_semantics = [], scalar_prefetch = 0 : i64, scratch_operands = 0 : i64, tpu.core_type = #tpu.core_type<tc>} {
    %c0 = arith.constant 0 : index
    %c0_0 = arith.constant 0 : index
    %0 = vector.load %arg0[%c0, %c0_0] : memref<2x1116xf32, #tpu.memory_space<vmem>>, vector<2x1116xf32>
    %c0_1 = arith.constant 0 : index
    %c0_2 = arith.constant 0 : index
    %1 = vector.load %arg1[%c0_1, %c0_2] : memref<2x1116xf32, #tpu.memory_space<vmem>>, vector<2x1116xf32>
    %c0_3 = arith.constant 0 : index
    %c0_4 = arith.constant 0 : index
    %2 = vector.load %arg2[%c0_3, %c0_4] : memref<2x186xf32, #tpu.memory_space<vmem>>, vector<2x186xf32>
    %c0_5 = arith.constant 0 : index
    %c0_6 = arith.constant 0 : index
    %3 = vector.load %arg3[%c0_5, %c0_6] : memref<2x186xf32, #tpu.memory_space<vmem>>, vector<2x186xf32>
    %c0_7 = arith.constant 0 : index
    %c0_8 = arith.constant 0 : index
    %4 = vector.load %arg4[%c0_7, %c0_8] : memref<2x186xf32, #tpu.memory_space<vmem>>, vector<2x186xf32>
    %c0_9 = arith.constant 0 : index
    %c0_10 = arith.constant 0 : index
    %5 = vector.load %arg5[%c0_9, %c0_10] : memref<2x186xf32, #tpu.memory_space<vmem>>, vector<2x186xf32>
    %c0_11 = arith.constant 0 : index
    %c0_12 = arith.constant 0 : index
    %6 = vector.load %arg6[%c0_11, %c0_12] : memref<2x186xf32, #tpu.memory_space<vmem>>, vector<2x186xf32>
    %c0_13 = arith.constant 0 : index
    %c0_14 = arith.constant 0 : index
    %7 = vector.load %arg7[%c0_13, %c0_14] : memref<2x186xf32, #tpu.memory_space<vmem>>, vector<2x186xf32>
    %c0_15 = arith.constant 0 : index
    %c0_16 = arith.constant 0 : index
    %8 = vector.load %arg10[%c0_15, %c0_16] : memref<2x62xf32, #tpu.memory_space<vmem>>, vector<2x62xf32>
    %c0_17 = arith.constant 0 : index
    %c0_18 = arith.constant 0 : index
    %9 = vector.load %arg11[%c0_17, %c0_18] : memref<2x186xf32, #tpu.memory_space<vmem>>, vector<2x186xf32>
    %c0_19 = arith.constant 0 : index
    %c0_20 = arith.constant 0 : index
    %c0_21 = arith.constant 0 : index
    %10 = vector.load %arg12[%c0_19, %c0_20, %c0_21] : memref<2x3x478xf32, #tpu.memory_space<vmem>>, vector<2x3x478xf32>
    %cst = arith.constant 1.000000e+00 : f32
    %11 = vector.broadcast %cst : f32 to vector<2x186xf32>
    %cst_22 = arith.constant 0.000000e+00 : f32
    %12 = vector.broadcast %cst_22 : f32 to vector<2x186xf32>
    %13 = arith.subf %0, %1 : vector<2x1116xf32>
    %14 = arith.mulf %13, %13 : vector<2x1116xf32>
    %15 = vector.shape_cast %14 : vector<2x1116xf32> to vector<1x2x1116xf32>
    %cst_23 = arith.constant dense<0.000000e+00> : vector<1xf32>
    %16 = vector.multi_reduction <add>, %15, %cst_23 [1, 2] : vector<1x2x1116xf32> to vector<1xf32>
    %17 = vector.shape_cast %16 : vector<1xf32> to vector<1x1x1xf32>
    %18 = vector.extract %17[0, 0, 0] : f32 from vector<1x1x1xf32>
    %cst_24 = arith.constant 2.232000e+03 : f32
    %19 = arith.divf %18, %cst_24 : f32
    %cst_25 = arith.constant 0.000000e+00 : f32
    %20 = vector.broadcast %cst_25 : f32 to vector<2x186xf32>
    %21 = arith.cmpf olt, %2, %20 : vector<2x186xf32>
    %cst_26 = arith.constant 0.000000e+00 : f32
    %22 = vector.broadcast %cst_26 : f32 to vector<2x186xf32>
    %23 = arith.cmpf olt, %3, %22 : vector<2x186xf32>
    %24 = arith.ori %21, %23 : vector<2x186xi1>
    %25 = arith.select %24, %11, %12 : vector<2x186xi1>, vector<2x186xf32>
    %26 = vector.shape_cast %25 : vector<2x186xf32> to vector<1x2x186xf32>
    %cst_27 = arith.constant dense<0.000000e+00> : vector<1xf32>
    %27 = vector.multi_reduction <add>, %26, %cst_27 [1, 2] : vector<1x2x186xf32> to vector<1xf32>
    %28 = vector.shape_cast %27 : vector<1xf32> to vector<1x1x1xf32>
    %29 = vector.extract %28[0, 0, 0] : f32 from vector<1x1x1xf32>
    %cst_28 = arith.constant 3.720000e+02 : f32
    %30 = arith.divf %29, %cst_28 : f32
    %cst_29 = arith.constant 0.000000e+00 : f32
    %31 = vector.broadcast %cst_29 : f32 to vector<2x186xf32>
    %32 = arith.cmpf olt, %6, %31 : vector<2x186xf32>
    %cst_30 = arith.constant 0.000000e+00 : f32
    %33 = vector.broadcast %cst_30 : f32 to vector<2x186xf32>
    %34 = arith.cmpf olt, %7, %33 : vector<2x186xf32>
    %35 = arith.ori %32, %34 : vector<2x186xi1>
    %36 = arith.select %35, %11, %12 : vector<2x186xi1>, vector<2x186xf32>
    %37 = vector.shape_cast %36 : vector<2x186xf32> to vector<1x2x186xf32>
    %cst_31 = arith.constant dense<0.000000e+00> : vector<1xf32>
    %38 = vector.multi_reduction <add>, %37, %cst_31 [1, 2] : vector<1x2x186xf32> to vector<1xf32>
    %39 = vector.shape_cast %38 : vector<1xf32> to vector<1x1x1xf32>
    %40 = vector.extract %39[0, 0, 0] : f32 from vector<1x1x1xf32>
    %cst_32 = arith.constant 3.720000e+02 : f32
    %41 = arith.divf %40, %cst_32 : f32
    %42 = arith.addf %4, %5 : vector<2x186xf32>
    %cst_33 = arith.constant 0.000000e+00 : f32
    %43 = vector.broadcast %cst_33 : f32 to vector<2x186xf32>
    %44 = arith.cmpf olt, %42, %43 : vector<2x186xf32>
    %45 = arith.select %44, %11, %12 : vector<2x186xi1>, vector<2x186xf32>
    %46 = vector.shape_cast %45 : vector<2x186xf32> to vector<1x2x186xf32>
    %cst_34 = arith.constant dense<0.000000e+00> : vector<1xf32>
    %47 = vector.multi_reduction <add>, %46, %cst_34 [1, 2] : vector<1x2x186xf32> to vector<1xf32>
    %48 = vector.shape_cast %47 : vector<1xf32> to vector<1x1x1xf32>
    %49 = vector.extract %48[0, 0, 0] : f32 from vector<1x1x1xf32>
    %cst_35 = arith.constant 3.720000e+02 : f32
    %50 = arith.divf %49, %cst_35 : f32
    %cst_36 = arith.constant 1.000000e+00 : f32
    %51 = vector.broadcast %cst_36 : f32 to vector<2x186xf32>
    %52 = arith.cmpf oeq, %9, %51 : vector<2x186xf32>
    %53 = math.absf %2 : vector<2x186xf32>
    %54 = math.absf %3 : vector<2x186xf32>
    %55 = arith.addf %53, %54 : vector<2x186xf32>
    %56 = math.absf %4 : vector<2x186xf32>
    %57 = arith.addf %55, %56 : vector<2x186xf32>
    %58 = math.absf %5 : vector<2x186xf32>
    %59 = arith.addf %57, %58 : vector<2x186xf32>
    %60 = arith.select %52, %59, %12 : vector<2x186xi1>, vector<2x186xf32>
    %61 = vector.shape_cast %60 : vector<2x186xf32> to vector<1x2x186xf32>
    %cst_37 = arith.constant dense<0.000000e+00> : vector<1xf32>
    %62 = vector.multi_reduction <add>, %61, %cst_37 [1, 2] : vector<1x2x186xf32> to vector<1xf32>
    %63 = vector.shape_cast %62 : vector<1xf32> to vector<1x1x1xf32>
    %64 = vector.extract %63[0, 0, 0] : f32 from vector<1x1x1xf32>
    %65 = arith.select %52, %11, %12 : vector<2x186xi1>, vector<2x186xf32>
    %66 = vector.shape_cast %65 : vector<2x186xf32> to vector<1x2x186xf32>
    %cst_38 = arith.constant dense<0.000000e+00> : vector<1xf32>
    %67 = vector.multi_reduction <add>, %66, %cst_38 [1, 2] : vector<1x2x186xf32> to vector<1xf32>
    %68 = vector.shape_cast %67 : vector<1xf32> to vector<1x1x1xf32>
    %69 = vector.extract %68[0, 0, 0] : f32 from vector<1x1x1xf32>
    %70 = arith.divf %64, %69 : f32
    %cst_39 = arith.constant dense<0.000000e+00> : vector<2xf32>
    %71 = vector.multi_reduction <add>, %42, %cst_39 [1] : vector<2x186xf32> to vector<2xf32>
    %72 = vector.shape_cast %71 : vector<2xf32> to vector<2x1xf32>
    %cst_40 = arith.constant dense<0.000000e+00> : vector<2xf32>
    %73 = vector.multi_reduction <add>, %8, %cst_40 [1] : vector<2x62xf32> to vector<2xf32>
    %74 = vector.shape_cast %73 : vector<2xf32> to vector<2x1xf32>
    %75 = arith.divf %72, %74 : vector<2x1xf32>
    %cst_41 = arith.constant 0.000000e+00 : f32
    %76 = vector.broadcast %cst_41 : f32 to vector<2x1xf32>
    %cst_42 = arith.constant 4.000000e-02 : f32
    %77 = vector.broadcast %cst_42 : f32 to vector<2x1xf32>
    %78 = arith.cmpf ogt, %75, %77 : vector<2x1xf32>
    %cst_43 = arith.constant 4.000000e-02 : f32
    %79 = vector.broadcast %cst_43 : f32 to vector<2x1xf32>
    %80 = arith.subf %75, %79 : vector<2x1xf32>
    %cst_44 = arith.constant 2.000000e+02 : f32
    %81 = vector.broadcast %cst_44 : f32 to vector<2x1xf32>
    %82 = arith.mulf %81, %80 : vector<2x1xf32>
    %83 = arith.select %78, %82, %76 : vector<2x1xi1>, vector<2x1xf32>
    %cst_45 = arith.constant 5.000000e-03 : f32
    %84 = vector.broadcast %cst_45 : f32 to vector<2x1xf32>
    %85 = arith.cmpf olt, %75, %84 : vector<2x1xf32>
    %cst_46 = arith.constant 0.000000e+00 : f32
    %86 = vector.broadcast %cst_46 : f32 to vector<2x1xf32>
    %87 = arith.cmpf ogt, %75, %86 : vector<2x1xf32>
    %88 = arith.andi %85, %87 : vector<2x1xi1>
    %cst_47 = arith.constant 5.000000e-03 : f32
    %89 = vector.broadcast %cst_47 : f32 to vector<2x1xf32>
    %90 = arith.subf %89, %75 : vector<2x1xf32>
    %cst_48 = arith.constant 2.000000e+02 : f32
    %91 = vector.broadcast %cst_48 : f32 to vector<2x1xf32>
    %92 = arith.mulf %91, %90 : vector<2x1xf32>
    %93 = arith.select %88, %92, %76 : vector<2x1xi1>, vector<2x1xf32>
    %cst_49 = arith.constant 0.000000e+00 : f32
    %94 = vector.broadcast %cst_49 : f32 to vector<2x1xf32>
    %95 = arith.cmpf olt, %75, %94 : vector<2x1xf32>
    %cst_50 = arith.constant 5.000000e-03 : f32
    %96 = vector.broadcast %cst_50 : f32 to vector<2x1xf32>
    %97 = arith.subf %96, %75 : vector<2x1xf32>
    %cst_51 = arith.constant 5.000000e+02 : f32
    %98 = vector.broadcast %cst_51 : f32 to vector<2x1xf32>
    %99 = arith.mulf %98, %97 : vector<2x1xf32>
    %100 = arith.select %95, %99, %76 : vector<2x1xi1>, vector<2x1xf32>
    %101 = arith.addf %83, %93 : vector<2x1xf32>
    %102 = arith.addf %101, %100 : vector<2x1xf32>
    %103 = vector.shape_cast %102 : vector<2x1xf32> to vector<1x2x1xf32>
    %cst_52 = arith.constant dense<0.000000e+00> : vector<1xf32>
    %104 = vector.multi_reduction <add>, %103, %cst_52 [1, 2] : vector<1x2x1xf32> to vector<1xf32>
    %105 = vector.shape_cast %104 : vector<1xf32> to vector<1x1x1xf32>
    %106 = vector.extract %105[0, 0, 0] : f32 from vector<1x1x1xf32>
    %cst_53 = arith.constant 2.000000e+00 : f32
    %107 = arith.divf %106, %cst_53 : f32
    %108 = vector.extract_strided_slice %10 {offsets = [0, 0, 0], sizes = [2, 1, 478], strides = [1, 1, 1]} : vector<2x3x478xf32> to vector<2x1x478xf32>
    %109 = arith.fptosi %108 : vector<2x1x478xf32> to vector<2x1x478xi32>
    %110 = vector.extract_strided_slice %10 {offsets = [0, 1, 0], sizes = [2, 1, 478], strides = [1, 1, 1]} : vector<2x3x478xf32> to vector<2x1x478xf32>
    %111 = arith.fptosi %110 : vector<2x1x478xf32> to vector<2x1x478xi32>
    %112 = vector.extract_strided_slice %10 {offsets = [0, 2, 0], sizes = [2, 1, 478], strides = [1, 1, 1]} : vector<2x3x478xf32> to vector<2x1x478xf32>
    %113 = arith.cmpi ne, %109, %111 : vector<2x1x478xi32>
    %cst_54 = arith.constant 0.000000e+00 : f32
    %114 = vector.broadcast %cst_54 : f32 to vector<2x1x478xf32>
    %115 = arith.subf %114, %112 : vector<2x1x478xf32>
    %116 = arith.select %113, %115, %112 : vector<2x1x478xi1>, vector<2x1x478xf32>
    %cst_55 = arith.constant 1.000000e+00 : f32
    %117 = vector.broadcast %cst_55 : f32 to vector<2x1x478xf32>
    %118 = arith.divf %117, %116 : vector<2x1x478xf32>
    %cst_56 = arith.constant 0.000000e+00 : f32
    %119 = vector.broadcast %cst_56 : f32 to vector<2x1x478xf32>
    %120 = arith.select %113, %118, %119 : vector<2x1x478xi1>, vector<2x1x478xf32>
    %c65536_i32 = arith.constant 65536 : i32
    %121 = vector.broadcast %c65536_i32 : i32 to vector<2x1x478xi32>
    %122 = arith.muli %109, %121 : vector<2x1x478xi32>
    %123 = arith.addi %122, %111 : vector<2x1x478xi32>
    %c0_57 = arith.constant 0 : index
    %c0_58 = arith.constant 0 : index
    %124 = vector.load %arg13[%c0_57, %c0_58] : memref<186x1xi32, #tpu.memory_space<vmem>>, vector<186x1xi32>
    %125 = vector.shape_cast %124 : vector<186x1xi32> to vector<1x186x1xi32>
    %126 = vector.broadcast %123 : vector<2x1x478xi32> to vector<2x186x478xi32>
    %127 = vector.broadcast %125 : vector<1x186x1xi32> to vector<2x186x478xi32>
    %128 = arith.cmpi eq, %126, %127 : vector<2x186x478xi32>
    %129 = tpu.iota {dimensions = array<i32: 2>} : vector<2x186x478xi32>
    %130 = arith.sitofp %129 : vector<2x186x478xi32> to vector<2x186x478xf32>
    %cst_59 = arith.constant 4.770000e+02 : f32
    %131 = vector.broadcast %cst_59 : f32 to vector<2x186x478xf32>
    %132 = arith.select %128, %130, %131 : vector<2x186x478xi1>, vector<2x186x478xf32>
    %cst_60 = arith.constant dense<0x7F800000> : vector<2x186xf32>
    %133 = vector.multi_reduction <minimumf>, %132, %cst_60 [2] : vector<2x186x478xf32> to vector<2x186xf32>
    %134 = vector.shape_cast %133 : vector<2x186xf32> to vector<2x186x1xf32>
    %135 = vector.broadcast %134 : vector<2x186x1xf32> to vector<2x186x478xf32>
    %136 = arith.cmpf oeq, %130, %135 : vector<2x186x478xf32>
    %cst_61 = arith.constant 0.000000e+00 : f32
    %137 = vector.shape_cast %120 : vector<2x1x478xf32> to vector<2x1x478xf32>
    %138 = vector.broadcast %137 : vector<2x1x478xf32> to vector<2x186x478xf32>
    %139 = vector.broadcast %cst_61 : f32 to vector<2x186x478xf32>
    %140 = arith.select %136, %138, %139 : vector<2x186x478xi1>, vector<2x186x478xf32>
    %cst_62 = arith.constant dense<0.000000e+00> : vector<2x186xf32>
    %141 = vector.multi_reduction <add>, %140, %cst_62 [2] : vector<2x186x478xf32> to vector<2x186xf32>
    %142 = vector.shape_cast %141 : vector<2x186xf32> to vector<2x186x1xf32>
    %c0_63 = arith.constant 0 : index
    %c0_64 = arith.constant 0 : index
    %c0_65 = arith.constant 0 : index
    %143 = vector.load %arg8[%c0_63, %c0_64, %c0_65] : memref<2x186x1xf32, #tpu.memory_space<vmem>>, vector<2x186x1xf32>
    %c0_66 = arith.constant 0 : index
    %c0_67 = arith.constant 0 : index
    %c0_68 = arith.constant 0 : index
    %144 = vector.load %arg9[%c0_66, %c0_67, %c0_68] : memref<2x186x1xf32, #tpu.memory_space<vmem>>, vector<2x186x1xf32>
    %145 = arith.addf %143, %144 : vector<2x186x1xf32>
    %cst_69 = arith.constant 5.000000e-01 : f32
    %146 = vector.broadcast %cst_69 : f32 to vector<2x186x1xf32>
    %147 = arith.mulf %145, %146 : vector<2x186x1xf32>
    %148 = arith.mulf %147, %147 : vector<2x186x1xf32>
    %149 = arith.mulf %148, %142 : vector<2x186x1xf32>
    %150 = vector.shape_cast %149 : vector<2x186x1xf32> to vector<1x2x186x1xf32>
    %cst_70 = arith.constant dense<0.000000e+00> : vector<1xf32>
    %151 = vector.multi_reduction <add>, %150, %cst_70 [1, 2, 3] : vector<1x2x186x1xf32> to vector<1xf32>
    %152 = vector.shape_cast %151 : vector<1xf32> to vector<1x1x1x1xf32>
    %153 = vector.extract %152[0, 0, 0, 0] : f32 from vector<1x1x1x1xf32>
    %154 = vector.shape_cast %42 : vector<2x186xf32> to vector<1x2x186xf32>
    %cst_71 = arith.constant dense<0.000000e+00> : vector<1xf32>
    %155 = vector.multi_reduction <add>, %154, %cst_71 [1, 2] : vector<1x2x186xf32> to vector<1xf32>
    %156 = vector.shape_cast %155 : vector<1xf32> to vector<1x1x1xf32>
    %157 = vector.extract %156[0, 0, 0] : f32 from vector<1x1x1xf32>
    %cst_72 = arith.constant 1.749800e+01 : f32
    %158 = arith.mulf %cst_72, %157 : f32
    %159 = arith.subf %158, %153 : f32
    %cst_73 = arith.constant 3.720000e+02 : f32
    %160 = arith.divf %159, %cst_73 : f32
    %161 = math.absf %160 : f32
    %cst_74 = arith.constant 1.000000e+02 : f32
    %162 = arith.mulf %cst_74, %19 : f32
    %163 = arith.addf %162, %30 : f32
    %164 = arith.addf %163, %41 : f32
    %165 = arith.addf %164, %50 : f32
    %166 = arith.addf %165, %70 : f32
    %167 = arith.addf %166, %107 : f32
    %cst_75 = arith.constant 1.000000e-01 : f32
    %168 = arith.mulf %cst_75, %161 : f32
    %169 = arith.addf %167, %168 : f32
    %c0_76 = arith.constant 0 : index
    %170 = memref.load %arg14[%c0_76] : memref<8xf32, #tpu.memory_space<smem>>
    memref.store %19, %arg14[%c0_76] : memref<8xf32, #tpu.memory_space<smem>>
    %c1 = arith.constant 1 : index
    %171 = memref.load %arg14[%c1] : memref<8xf32, #tpu.memory_space<smem>>
    memref.store %30, %arg14[%c1] : memref<8xf32, #tpu.memory_space<smem>>
    %c2 = arith.constant 2 : index
    %172 = memref.load %arg14[%c2] : memref<8xf32, #tpu.memory_space<smem>>
    memref.store %41, %arg14[%c2] : memref<8xf32, #tpu.memory_space<smem>>
    %c3 = arith.constant 3 : index
    %173 = memref.load %arg14[%c3] : memref<8xf32, #tpu.memory_space<smem>>
    memref.store %50, %arg14[%c3] : memref<8xf32, #tpu.memory_space<smem>>
    %c4 = arith.constant 4 : index
    %174 = memref.load %arg14[%c4] : memref<8xf32, #tpu.memory_space<smem>>
    memref.store %70, %arg14[%c4] : memref<8xf32, #tpu.memory_space<smem>>
    %c5 = arith.constant 5 : index
    %175 = memref.load %arg14[%c5] : memref<8xf32, #tpu.memory_space<smem>>
    memref.store %107, %arg14[%c5] : memref<8xf32, #tpu.memory_space<smem>>
    %c6 = arith.constant 6 : index
    %176 = memref.load %arg14[%c6] : memref<8xf32, #tpu.memory_space<smem>>
    memref.store %161, %arg14[%c6] : memref<8xf32, #tpu.memory_space<smem>>
    %c7 = arith.constant 7 : index
    %177 = memref.load %arg14[%c7] : memref<8xf32, #tpu.memory_space<smem>>
    memref.store %169, %arg14[%c7] : memref<8xf32, #tpu.memory_space<smem>>
    return
  }
}

</mosaic_0001>

<bundles_post_ra>
// kernel: _my_loss_jit.1
= control target key start
LH: loop header
LB: loop body
LE: loop exit
PB: predicated region body
PF: predicated region fallthrough
CT: control target
= control target key end

     0   :  { %vm301_vm0 = vcmask 500736   ;;  %v2551_v2 = vmov 0   ;;  %s5338_s0 = inlined_call_operand.vmem [shape: f32[2,1116], index: 0, kind: input, shape index: {}]   ;;  %s5339_s1 = inlined_call_operand.vmem [shape: f32[2,1116], index: 1, kind: input, shape index: {}]   ;;  %s5340_s2 = inlined_call_operand.vmem [shape: f32[2,186], index: 2, kind: input, shape index: {}]   ;;  %s5341_s3 = inlined_call_operand.vmem [shape: f32[2,186], index: 3, kind: input, shape index: {}]   ;;  %s5342_s4 = inlined_call_operand.vmem [shape: f32[2,186], index: 4, kind: input, shape index: {}]   ;;  %s5343_s5 = inlined_call_operand.vmem [shape: f32[2,186], index: 5, kind: input, shape index: {}]   ;;  %s5344_s6 = inlined_call_operand.vmem [shape: f32[2,186], index: 6, kind: input, shape index: {}]   ;;  %s5345_s7 = inlined_call_operand.vmem [shape: f32[2,186], index: 7, kind: input, shape index: {}]   ;;  %s5346_s8 = inlined_call_operand.vmem [shape: f32[2,186,1], index: 8, kind: input, shape index: {}]   ;;  %s5347_s9 = inlined_call_operand.vmem [shape: f32[2,186,1], index: 9, kind: input, shape index: {}]   ;;  %s5348_s10 = inlined_call_operand.vmem [shape: f32[2,62], index: 10, kind: input, shape index: {}]   ;;  %s5349_s11 = inlined_call_operand.vmem [shape: f32[2,186], index: 11, kind: input, shape index: {}]   ;;  %s5350_s12 = inlined_call_operand.vmem [shape: f32[2,3,478], index: 12, kind: input, shape index: {}]   ;;  %s5351_s13 = inlined_call_operand.vmem [shape: s32[186,1], index: 13, kind: input, shape index: {}]   ;;  %s5352_s14 = inlined_call_operand.hbm [shape: f32[8], index: 14, kind: output, shape index: {}]  }
   0x1   :  { %v485_v0 = vld [vmem:[%s5351_s13 + $0x10] sm:$0xff]  ;;  %v60_v1 = vld [vmem:[%s5348_s10] sm:$0x3]  ;;  %2514 = vset.pattern.permute.xlu2 %v2551_v2  ;;  %2513 = vset.pattern.permute.xlu1 %v2551_v2  ;;  %v49_v5 = vld [vmem:[%s5338_s0 + $0x8] sm:$0xff] }
   0x2   :  { %v302_v3 = vsel %vm301_vm0, %v60_v1, 0.0  ;;  %530 = vperm.xlu2 %2514, %v485_v0   ;;  %v48_v4 = vld [vmem:[%s5338_s0] sm:$0xff]  ;;  %v52_v7 = vld [vmem:[%s5339_s1 + $0x8] sm:$0xff]  ;;  %2512 = vset.pattern.permute.xlu0 %v2551_v2 }
   0x3   :  { %303 = vadd.xlane.f32.xlu1 %v302_v3  ;;  %v51_v6 = vld [vmem:[%s5339_s1] sm:$0xff]  ;;  %v67_v9 = vsub.f32 %v49_v5, %v52_v7 }
   0x4   :  { %v66_v8 = vsub.f32 %v48_v4, %v51_v6 }
   0x5   :  { %v70_v11 = vmul.f32 %v67_v9, %v67_v9 }
   0x6   :  { %v69_v10 = vmul.f32 %v66_v8, %v66_v8 }
   0x7   :  { %19 = vsyncpa [#allocation3], 0  ;;  %v486_v12 = vld [vmem:[%s5351_s13 + $0x18] sm:$0xff]  ;;  %v50_v13 = vld [vmem:[%s5338_s0 + $0x10] sm:$0x3]  ;;  %vm5382_vm1 = vcmask 1041408  }
   0x8   :  { %v53_v14 = vld [vmem:[%s5339_s1 + $0x10] sm:$0x3]  ;;  %75 = vst [vmem:[#allocation1] ss:$4 sm:$0xff] %v69_v10  ;;  %v488_v16 = vld [vmem:[%s5351_s13 + $0x28] sm:$0xff]  ;;  %v491_v34 = vld [vmem:[%s5351_s13 + $0x40] sm:$0xff] }
   0x9   :  { %77 = vst [vmem:[#allocation1 + $0x20] ss:$4 sm:$0xff] %v70_v11  ;;  %v68_v15 = vsub.f32 %v50_v13, %v53_v14  ;;  %v54_v17 = vld [vmem:[%s5340_s2] sm:$0xf]  ;;  %v484_v36 = vld [vmem:[%s5351_s13 + $0x8] sm:$0xff]  ;;  %v2552_v39 = vmov 0.0  }
   0xa   :  { %533 = vperm.xlu2 %2514, %v486_v12   ;;  %v55_v18 = vld [vmem:[%s5341_s3] sm:$0xf]  ;;  %vm134_vm2 = vcmp.lt.f32.partialorder %v54_v17, 0.0  ;;  %vm113_vm7 = vcmask 746496   ;;  %v494_v52 = vld [vmem:[%s5351_s13 + $0x58] sm:$0xff]  ;;  %vm5377_vm9 = vcmask 467968  }
   0xb   :  { %v71_v19 = vmul.f32 %v68_v15, %v68_v15  ;;  %vm135_vm3 = vcmp.lt.f32.partialorder %v55_v18, 0.0  ;;  %v58_v29 = vld [vmem:[%s5344_s6] sm:$0xf]  ;;  %v228_v55 = vand.u32 2147483647, %v54_v17  ;;  %s2556_s22 = smov [#allocation2]  }
   0xc   :  { %vm136_vm4 = vmor %vm134_vm2, %vm135_vm3  ;;  %v59_v31 = vld [vmem:[%s5345_s7] sm:$0xf]  ;;  %vm166_vm5 = vcmp.lt.f32.partialorder %v58_v29, 0.0  ;;  %v229_v56 = vand.u32 2147483647, %v55_v18 }
   0xd   :  { %v137_v40 = vsel %vm136_vm4, 1.0, %v2552_v39  ;;  %vm167_vm6 = vcmp.lt.f32.partialorder %v59_v31, 0.0  ;;  %v56_v48 = vld [vmem:[%s5342_s4] sm:$0xf] }
   0xe   :  { %vm168_vm8 = vmor %vm166_vm5, %vm167_vm6  ;;  %v57_v49 = vld [vmem:[%s5343_s5] sm:$0xf]  ;;  %v230_v61 = vadd.f32 %v229_v56, %v228_v55  ;;  %v231_v62 = vand.u32 2147483647, %v56_v48  ;;  %vm990_vm5 = vcmask 769024  }
   0xf   :  { %v78_v20 = vld.sshfl [vmem:[#allocation1] sm:$0xff pattern:$0x73625140]  ;;  %v79_v21 = vld.sshfl [vmem:[#allocation1 + $0x8] sm:$0xff pattern:$0x73625140]  ;;  %v197_v57 = vadd.f32 %v57_v49, %v56_v48 }
  0x10   :  { %v80_v22 = vld.sshfl [vmem:[#allocation1 + $0x10] sm:$0xff pattern:$0x73625140]  ;;  %v81_v23 = vld.sshfl [vmem:[#allocation1 + $0x18] sm:$0xff pattern:$0x73625140]  ;;  %v232_v2 = vadd.f32 %v231_v62, %v230_v61 }
  0x11   :  { %86 = vst [vmem:[#allocation1] ss:$4 sm:$0xff] %v71_v19  ;;  %v98_v24 = vsel %vm5382_vm1, %v78_v20, 0.0  ;;  %v99_v25 = vsel %vm5382_vm1, %v79_v21, 0.0  ;;  %v101_v26 = vsel %vm5382_vm1, %v80_v22, 0.0  ;;  %v103_v30 = vsel %vm5382_vm1, %v81_v23, 0.0 }
  0x12   :  { %539 = vperm.xlu2 %2514, %v488_v16   ;;  %v82_v27 = vld.sshfl [vmem:[#allocation1 + $0x20] sm:$0xff pattern:$0x73625140]  ;;  %v100_v28 = vadd.f32 %v99_v25, %v98_v24  ;;  %v83_v32 = vld.sshfl [vmem:[#allocation1 + $0x28] sm:$0xff pattern:$0x73625140] }
  0x13   :  { %v105_v35 = vsel %vm5382_vm1, %v82_v27, 0.0  ;;  %v84_v37 = vld.sshfl [vmem:[#allocation1 + $0x30] sm:$0xff pattern:$0x73625140]  ;;  %v107_v41 = vsel %vm5382_vm1, %v83_v32, 0.0  ;;  %v169_v54 = vsel %vm168_vm8, 1.0, %v2552_v39 }
  0x14   :  { %v102_v33 = vadd.f32 %v101_v26, %v100_v28  ;;  %v85_v42 = vld.sshfl [vmem:[#allocation1 + $0x38] sm:$0xff pattern:$0x73625140]  ;;  %v109_v45 = vsel %vm5382_vm1, %v84_v37, 0.0  ;;  %vm198_vm10 = vcmp.lt.f32.partialorder %v197_v57, 0.0  ;;  %v483_v15 = vld [vmem:[%s5351_s13] sm:$0xff] }
  0x15   :  { %v111_v47 = vsel %vm5382_vm1, %v85_v42, 0.0  ;;  %v199_v1 = vsel %vm198_vm10, 1.0, %v2552_v39  ;;  %v233_v3 = vand.u32 2147483647, %v57_v49  ;;  %v61_v5 = vld [vmem:[%s5349_s11] sm:$0xf] }
  0x16   :  { %v104_v38 = vadd.f32 %v103_v30, %v102_v33  ;;  %vm227_vm11 = vcmp.eq.f32.partialorder %v61_v5, 1.0  ;;  %v490_v23 = vld [vmem:[%s5351_s13 + $0x38] sm:$0xff]  ;;  %v493_v30 = vld [vmem:[%s5351_s13 + $0x50] sm:$0xff]  ;;  %v500_v37 = vld [vmem:[%s5351_s13 + $0x88] sm:$0xff] }
  0x17   :  { %v234_v8 = vadd.f32 %v233_v3, %v232_v2  ;;  %v254_v12 = vsel %vm227_vm11, 1.0, %v2552_v39  ;;  %v503_v42 = vld [vmem:[%s5351_s13 + $0xa0] sm:$0xff]  ;;  %v496_v62 = vld [vmem:[%s5351_s13 + $0x68] sm:$0xff]  ;;  %v787_v2 = vlaneseq }
  0x18   :  { %v87_v43 = vld.sshfl [vmem:[#allocation1] sm:$0xff pattern:$0x73625140]  ;;  %v106_v44 = vadd.f32 %v105_v35, %v104_v38  ;;  %v497_v35 = vld [vmem:[%s5351_s13 + $0x70] sm:$0xff] }
  0x19   :  { %139 = vst [vmem:[#allocation1] ss:$4 sm:$0xff] %v137_v40  ;;  %v114_v51 = vsel %vm113_vm7, %v87_v43, 0.0  ;;  %v235_v9 = vsel %vm227_vm11, %v234_v8, 0.0  ;;  %v492_v40 = vld [vmem:[%s5351_s13 + $0x48] sm:$0xff]  ;;  %v788_v8 = vand.u32 127, %v787_v2 }
  0x1a   :  { %548 = vperm.xlu2 %2514, %v491_v34   ;;  %v108_v46 = vadd.f32 %v107_v41, %v106_v44  ;;  %v487_v34 = vld [vmem:[%s5351_s13 + $0x20] sm:$0xff] }
  0x1b   :  { %v62_v43 = vld [vmem:[%s5350_s12] sm:$0x77] }
  0x1c   :  { %527 = vperm.xlu1 %2513, %v484_v36   ;;  %v110_v50 = vadd.f32 %v109_v45, %v108_v46  ;;  %v489_v36 = vld [vmem:[%s5351_s13 + $0x30] sm:$0xff]  ;;  %v495_v44 = vld [vmem:[%s5351_s13 + $0x60] sm:$0xff]  ;;  %v63_v45 = vld [vmem:[%s5350_s12 + $0x8] sm:$0x77]  ;;  %v2483_v46 = vceil.f32 %v62_v43  ;;  %vm2482_vm12 = vcmp.lt.s32.totalorder %v62_v43, 0 }
  0x1d   :  { %v2488_v48 = vceil.f32 %v63_v45  ;;  %v2489_v49 = vfloor.f32 %v63_v45  ;;  %vm2487_vm13 = vcmp.lt.s32.totalorder %v63_v45, 0 }
  0x1e   :  { %v112_v53 = vadd.f32 %v111_v47, %v110_v50  ;;  %v2484_v47 = vfloor.f32 %v62_v43 }
  0x20   :  { %v115_v58 = vadd.f32 %v114_v51, %v112_v53  ;;  %v140_v59 = vld.sshfl [vmem:[#allocation1] sm:$0xff pattern:$0x73625140]  ;;  %v141_v60 = vld.sshfl [vmem:[#allocation1 + $0x8] sm:$0xff pattern:$0x73625140]  ;;  %v2485_v50 = vsel %vm2482_vm12, %v2483_v46, %v2484_v47  ;;  %v2490_v53 = vsel %vm2487_vm13, %v2488_v48, %v2489_v49 }
  0x21   :  { %171 = vst [vmem:[#allocation1] ss:$4 sm:$0xff] %v169_v54  ;;  %v144_v63 = vsel %vm5382_vm1, %v140_v59, 0.0  ;;  %v146_v0 = vsel %vm5377_vm9, %v141_v60, 0.0  ;;  %v506_v51 = vld [vmem:[%s5351_s13 + $0xb8] sm:$0x3]  ;;  %v2758_v56 = vcvt.f32.s32 %v2490_v53 }
  0x22   :  { %557 = vperm.xlu2 %2514, %v494_v52   ;;  %116 = vadd.xlane.f32.xlu0 %v115_v58  ;;  %v147_v4 = vadd.f32 %v146_v0, %v144_v63  ;;  %v2751_v52 = vcvt.f32.s32 %v2485_v50  ;;  %v498_v54 = vld [vmem:[%s5351_s13 + $0x78] sm:$0xff]  ;;  %v2553_v58 = vmov 2232.0   ;;  %v501_v63 = vld [vmem:[%s5351_s13 + $0x90] sm:$0xff] }
  0x23   :  { %2515 = vrcp.f32 %v2553_v58  ;;  %v361_v59 = vrot.slane %v2758_v56, 5  ;;  %v65_v50 = vld [vmem:[%s5350_s12 + $0x18] sm:$0x77] }
  0x24   :  { %v475_v61 = vmul.u32 65536, %v2751_v52  ;;  %v2499_v2 = vfloor.f32 %v65_v50  ;;  %vm2497_vm7 = vcmp.lt.s32.totalorder %v65_v50, 0 }
  0x25   :  { %v2771_v0 = vrot.slane %v361_v59, 4 }
  0x28   :  { %v172_v6 = vld.sshfl [vmem:[#allocation1] sm:$0xff pattern:$0x73625140]  ;;  %v173_v7 = vld.sshfl [vmem:[#allocation1 + $0x8] sm:$0xff pattern:$0x73625140] }
  0x29   :  { %201 = vst [vmem:[#allocation1] ss:$4 sm:$0xff] %v199_v1  ;;  %v176_v16 = vsel %vm5382_vm1, %v172_v6, 0.0  ;;  %v177_v17 = vsel %vm5377_vm9, %v173_v7, 0.0  ;;  %v476_v1 = vmul.u32 65536, %v2758_v56  ;;  %v2777_v5 = vpop.eup %2515  ;;  %v2554_v6 = vmov 372.0  }
  0x2a   :  { %148 = vadd.xlane.f32.xlu0 %v147_v4  ;;  %v178_v18 = vadd.f32 %v177_v17, %v176_v16  ;;  %2517 = vrcp.f32 %v2554_v6  ;;  %v789_v16 = vadd.s32 128, %v788_v8  ;;  %vm130_vm3 = vweird.f32 %v2777_v5 }
  0x2b   :  { %v480_v7 = vadd.s32 %v476_v1, %v2771_v0  ;;  %v2498_v1 = vceil.f32 %v65_v50 }
  0x30   :  { %v202_v10 = vld.sshfl [vmem:[#allocation1] sm:$0xff pattern:$0x73625140]  ;;  %v203_v11 = vld.sshfl [vmem:[#allocation1 + $0x8] sm:$0xff pattern:$0x73625140]  ;;  %v2787_v17 = vpop.eup %2517 }
  0x31   :  { %237 = vst [vmem:[#allocation1] ss:$4 sm:$0xff] %v235_v9  ;;  %v206_v24 = vsel %vm5382_vm1, %v202_v10, 0.0  ;;  %v207_v25 = vsel %vm5377_vm9, %v203_v11, 0.0  ;;  %v126_v9 = vmul.f32 2232.0, %v2777_v5  ;;  %vm162_vm13 = vweird.f32 %v2787_v17 }
  0x32   :  { %v208_v27 = vadd.f32 %v207_v25, %v206_v24  ;;  %v790_v24 = vadd.s32 256, %v788_v8  ;;  %v791_v25 = vadd.s32 384, %v788_v8 }
  0x38   :  { %v238_v13 = vld.sshfl [vmem:[#allocation1] sm:$0xff pattern:$0x73625140]  ;;  %v239_v14 = vld.sshfl [vmem:[#allocation1 + $0x8] sm:$0xff pattern:$0x73625140] }
  0x39   :  { %256 = vst [vmem:[#allocation1] ss:$4 sm:$0xff] %v254_v12  ;;  %v242_v21 = vsel %vm5382_vm1, %v238_v13, 0.0  ;;  %v243_v22 = vsel %vm5377_vm9, %v239_v14, 0.0  ;;  %v499_v12 = vld [vmem:[%s5351_s13 + $0x80] sm:$0xff]  ;;  %v504_v13 = vld [vmem:[%s5351_s13 + $0xa8] sm:$0xff] }
  0x3a   :  { %v244_v26 = vadd.f32 %v243_v22, %v242_v21  ;;  %v509_v14 = vperm.slane %v480_v7, 0 }
  0x3e   :  { %524 = vperm.xlu0 %2512, %v483_v15   ;;  %v510_v15 = vperm.slane %v480_v7, 4 }
  0x40   :  { %v257_v19 = vld.sshfl [vmem:[#allocation1] sm:$0xff pattern:$0x73625140]  ;;  %v258_v20 = vld.sshfl [vmem:[#allocation1 + $0x8] sm:$0xff pattern:$0x73625140] }
  0x41   :  { %291 = vst [vmem:[#allocation1] ss:$4 sm:$0xff] %v197_v57  ;;  %v261_v28 = vsel %vm5382_vm1, %v257_v19, 0.0  ;;  %v262_v29 = vsel %vm5377_vm9, %v258_v20, 0.0 }
  0x42   :  { %v263_v31 = vadd.f32 %v262_v29, %v261_v28  ;;  %v2798_v28 = vperm.slane %v509_v14, 0  ;;  %v2800_v29 = vperm.slane %v510_v15, 0 }
  0x46   :  { %179 = vadd.xlane.f32.xlu1 %v178_v18  ;;  %545 = vperm.xlu0 %2512, %v490_v23   ;;  %v127_v18 = vsub.f32 1.0, %v126_v9 }
  0x48   :  { %v292_v32 = vld.sshfl [vmem:[#allocation1] sm:$0xff pattern:$0x73625140]  ;;  %v293_v33 = vld.sshfl [vmem:[#allocation1 + $0x8] sm:$0xff pattern:$0x73625140] }
  0x49   :  { %2383 = vst [vmem:[#allocation1] ss:$4 sm:$0xff] %v197_v57  ;;  %v296_v38 = vsel %vm5382_vm1, %v292_v32, 0.0  ;;  %v297_v39 = vsel %vm5377_vm9, %v293_v33, 0.0  ;;  %v359_v57 = vrot.slane %v2751_v52, 5  ;;  %v128_v33 = vmul.f32 %v2777_v5, %v127_v18 }
  0x4a   :  { %v298_v41 = vadd.f32 %v297_v39, %v296_v38 }
  0x4b   :  { %245 = vadd.xlane.f32.xlu2 %v244_v26  ;;  %v2762_v60 = vrot.slane %v359_v57, 4  ;;  %v2795_v26 = vcvt.s32.f32 %v788_v8 }
  0x4d   :  { %v479_v4 = vadd.s32 %v475_v61, %v2762_v60 }
  0x4e   :  { %209 = vadd.xlane.f32.xlu1 %v208_v27  ;;  %554 = vperm.xlu0 %2512, %v493_v30   ;;  %v158_v27 = vmul.f32 372.0, %v2787_v17  ;;  %v2802_v30 = vcvt.s32.f32 %v789_v16 }
  0x4f   :  { %v507_v10 = vperm.slane %v479_v4, 0  ;;  %v508_v11 = vperm.slane %v479_v4, 4 }
  0x50   :  { %v159_v39 = vsub.f32 1.0, %v158_v27 }
  0x51   :  { %v2789_v19 = vperm.slane %v507_v10, 0  ;;  %v2791_v20 = vperm.slane %v508_v11, 0  ;;  %v2500_v11 = vsel %vm2497_vm7, %v2498_v1, %v2499_v2 }
  0x53   :  { %264 = vadd.xlane.f32.xlu2 %v263_v31  ;;  %v64_v31 = vld [vmem:[%s5350_s12 + $0x10] sm:$0x77] }
  0x54   :  { %v2494_v38 = vfloor.f32 %v64_v31  ;;  %vm2492_vm4 = vcmp.lt.s32.totalorder %v64_v31, 0 }
  0x5c   :  { %v2756_v55 = vpop.permute.xlu2 %530 }
  0x5d   :  { %vm603_vm14 = vcmp.eq.s32.totalorder %v2789_v19, %v2756_v55  ;;  %vm604_vm15 = vcmp.eq.s32.totalorder %v2791_v20, %v2756_v55  ;;  %vm605_vm0 = vcmp.eq.s32.totalorder %v2798_v28, %v2756_v55  ;;  %vm606_vm2 = vcmp.eq.s32.totalorder %v2800_v29, %v2756_v55 }
  0x64   :  { %v2774_v3 = vpop.permute.xlu2 %533 }
  0x65   :  { %vm607_vm6 = vcmp.eq.s32.totalorder %v2789_v19, %v2774_v3  ;;  %vm608_vm8 = vcmp.eq.s32.totalorder %v2791_v20, %v2774_v3  ;;  %vm609_vm10 = vcmp.eq.s32.totalorder %v2798_v28, %v2774_v3 }
  0x66   :  { %v808_v10 = vsel %vm607_vm6, %v2795_v26, 477.0  ;;  %v809_v14 = vsel %vm608_vm8, %v2802_v30, 477.0 }
  0x67   :  { %536 = vperm.xlu1 %2513, %v487_v34   ;;  %v502_v34 = vld [vmem:[%s5351_s13 + $0x98] sm:$0xff] }
  0x6b   :  { %566 = vperm.xlu2 %2514, %v497_v35  }
  0x6c   :  { %v2793_v22 = vpop.permute.xlu2 %539 }
  0x6d   :  { %vm615_vm11 = vcmp.eq.s32.totalorder %v2789_v19, %v2793_v22  ;;  %vm616_vm12 = vcmp.eq.s32.totalorder %v2791_v20, %v2793_v22 }
  0x6e   :  { %v816_v16 = vsel %vm615_vm11, %v2795_v26, 477.0  ;;  %v817_v18 = vsel %vm616_vm12, %v2802_v30, 477.0 }
  0x6f   :  { %542 = vperm.xlu1 %2513, %v489_v36   ;;  %v2815_v36 = vcvt.s32.f32 %v790_v24 }
  0x71   :  { %v806_v53 = vsel %vm605_vm0, %v2815_v36, 477.0  ;;  %v810_v27 = vsel %vm609_vm10, %v2815_v36, 477.0 }
  0x73   :  { %575 = vperm.xlu2 %2514, %v500_v37   ;;  %v2493_v37 = vceil.f32 %v64_v31 }
  0x74   :  { %v2835_v57 = vpop.permute.xlu2 %548 }
  0x75   :  { %vm627_vm0 = vcmp.eq.s32.totalorder %v2789_v19, %v2835_v57  ;;  %vm629_vm6 = vcmp.eq.s32.totalorder %v2798_v28, %v2835_v57 }
  0x76   :  { %v2827_v46 = vpop.xlane.xlu1 %303 }
  0x77   :  { %551 = vperm.xlu1 %2513, %v492_v40   ;;  %v2817_v40 = vcvt.s32.f32 %v791_v25  ;;  %2519 = vrcp.f32 %v2827_v46  ;;  %v2873_v25 = vcvt.f32.s32 %v2500_v11 }
  0x78   :  { %299 = vadd.xlane.f32.xlu0 %v298_v41  ;;  %v804_v41 = vsel %vm603_vm14, %v2795_v26, 477.0  ;;  %vm610_vm14 = vcmp.eq.s32.totalorder %v2800_v29, %v2774_v3 }
  0x79   :  { %5384 = vst [vmem:[#allocation6_spill] sm:$0xff] %v2873_v25  ;;  %v811_v31 = vsel %vm610_vm14, %v2817_v40, 477.0  ;;  %v478_v1 = vmul.u32 65536, %v2873_v25 }
  0x7b   :  { %584 = vperm.xlu2 %2514, %v503_v42   ;;  %v805_v42 = vsel %vm604_vm15, %v2802_v30, 477.0  ;;  %vm618_vm15 = vcmp.eq.s32.totalorder %v2800_v29, %v2793_v22 }
  0x7c   :  { %v1001_v49 = vmin.f32 %v804_v41, %v805_v42 }
  0x7d   :  { %v2863_v15 = vpop.eup %2519 }
  0x7e   :  { %v1002_v6 = vmin.f32 %v1001_v49, %v806_v53 }
  0x7f   :  { %560 = vperm.xlu1 %2513, %v495_v44   ;;  %v129_v44 = vadd.f32 %v2777_v5, %v128_v33  ;;  %v2887_v33 = vpop.permute.xlu2 %557 }
  0x80   :  { %vm639_vm7 = vcmp.eq.s32.totalorder %v2789_v19, %v2887_v33  ;;  %vm640_vm8 = vcmp.eq.s32.totalorder %v2791_v20, %v2887_v33  ;;  %vm641_vm10 = vcmp.eq.s32.totalorder %v2798_v28, %v2887_v33 }
  0x81   :  { %v131_v61 = vsel %vm130_vm3, %v2777_v5, %v129_v44  ;;  %vm617_vm3 = vcmp.eq.s32.totalorder %v2798_v28, %v2793_v22 }
  0x82   :  { %v818_v42 = vsel %vm617_vm3, %v2815_v36, 477.0 }
  0x83   :  { %593 = vperm.xlu2 %2514, %v506_v51   ;;  %v160_v51 = vmul.f32 %v2787_v17, %v159_v39 }
  0x85   :  { %v161_v9 = vadd.f32 %v2787_v17, %v160_v51 }
  0x87   :  { %569 = vperm.xlu1 %2513, %v498_v54   ;;  %v807_v54 = vsel %vm606_vm2, %v2817_v40, 477.0  ;;  %v163_v24 = vsel %vm162_vm13, %v2787_v17, %v161_v9  ;;  %vm628_vm2 = vcmp.eq.s32.totalorder %v2791_v20, %v2835_v57  ;;  %v306_v17 = vmul.f32 %v2863_v15, %v2827_v46 }
  0x88   :  { %v1003_v7 = vsel %vm990_vm5, %v807_v54, inf  ;;  %v830_v54 = vsel %vm629_vm6, %v2815_v36, 477.0  ;;  %vm642_vm13 = vcmp.eq.s32.totalorder %v2800_v29, %v2887_v33 }
  0x8c   :  { %563 = vperm.xlu0 %2512, %v496_v62   ;;  %v2495_v62 = vsel %vm2492_vm4, %v2493_v37, %v2494_v38  ;;  %vm630_vm4 = vcmp.eq.s32.totalorder %v2800_v29, %v2835_v57  ;;  %v828_v37 = vsel %vm627_vm0, %v2795_v26, 477.0  ;;  %v829_v38 = vsel %vm628_vm2, %v2802_v30, 477.0 }
  0x8d   :  { %v2849_v5 = vcvt.f32.s32 %v2495_v62  ;;  %v831_v50 = vsel %vm630_vm4, %v2817_v40, 477.0  ;;  %v1037_v51 = vmin.f32 %v828_v37, %v829_v38  ;;  %v841_v62 = vsel %vm640_vm8, %v2802_v30, 477.0 }
  0x8e   :  { %v2943_v2 = vsel %vm990_vm5, %v831_v50, inf  ;;  %vm310_vm0 = vweird.f32 %v2827_v46  ;;  %vm311_vm4 = vweird.f32 %v2863_v15 }
  0x8f   :  { %578 = vperm.xlu1 %2513, %v501_v63   ;;  %v505_v63 = vld [vmem:[%s5351_s13 + $0xb0] sm:$0xff]  ;;  %5383 = vst [vmem:[#allocation5_spill] sm:$0xff] %v2849_v5  ;;  %v477_v41 = vmul.u32 65536, %v2849_v5 }
  0x94   :  { %572 = vperm.xlu0 %2512, %v499_v12  }
  0x95   :  { %v117_v21 = vpop.xlane.xlu0 %116 }
  0x96   :  { %v118_v23 = vrot.slane %v117_v21, 4 }
  0x97   :  { %587 = vperm.xlu1 %2513, %v504_v13   ;;  %v1004_v13 = vmin.f32 %v1002_v6, %v1003_v7  ;;  %v2951_v7 = vmin.f32 %v1037_v51, %v830_v54  ;;  %v314_v51 = vand.u32 2147483647, %v2827_v46 }
  0x98   :  { %v119_v32 = vadd.f32 %v118_v23, %v117_v21  ;;  %v363_v21 = vrot.slane %v2849_v5, 5 }
  0x9a   :  { %v120_v35 = vrot.slane %v119_v32, 2  ;;  %v2900_v39 = vrot.slane %v363_v21, 4 }
  0x9c   :  { %581 = vperm.xlu0 %2512, %v502_v34   ;;  %v121_v43 = vadd.f32 %v120_v35, %v119_v32  ;;  %v1007_v32 = vmin.f32 %v808_v10, %v809_v14  ;;  %v819_v34 = vsel %vm618_vm15, %v2817_v40, 477.0  ;;  %v1019_v35 = vmin.f32 %v816_v16, %v817_v18  ;;  %5385 = vst [vmem:[#allocation7_spill] sm:$0xff] %v2900_v39 }
  0x9d   :  { %v149_v45 = vpop.xlane.xlu0 %148  ;;  %v2919_v49 = vsel %vm990_vm5, %v819_v34, inf }
  0x9e   :  { %v150_v47 = vrot.slane %v149_v45, 4  ;;  %v122_v48 = vrot.slane %v121_v43, 1  ;;  %v2907_v44 = vmin.f32 %v1007_v32, %v810_v27  ;;  %v2925_v53 = vmin.f32 %v1019_v35, %v818_v42 }
  0x9f   :  { %v1040_v27 = vmin.f32 %v2951_v7, %v2943_v2 }
  0xa0   :  { %v151_v58 = vadd.f32 %v150_v47, %v149_v45  ;;  %v123_v59 = vadd.f32 %v122_v48, %v121_v43  ;;  %v365_v43 = vrot.slane %v2873_v25, 5  ;;  %v2910_v45 = vsel %vm990_vm5, %v811_v31, inf  ;;  %v2916_v48 = vpop.permute.xlu1 %527 }
  0xa1   :  { %v307_v47 = vsub.f32 1.0, %v306_v17  ;;  %v1010_v18 = vmin.f32 %v2907_v44, %v2910_v45  ;;  %vm599_vm2 = vcmp.eq.s32.totalorder %v2789_v19, %v2916_v48  ;;  %vm600_vm3 = vcmp.eq.s32.totalorder %v2791_v20, %v2916_v48 }
  0xa2   :  { %v152_v4 = vrot.slane %v151_v58, 2  ;;  %2460 = vpush %v123_v59  ;;  %vm602_vm6 = vcmp.eq.s32.totalorder %v2800_v29, %v2916_v48 }
  0xa3   :  { %2462 = vpush %v131_v61  ;;  %v840_v61 = vsel %vm639_vm7, %v2795_v26, 477.0  ;;  %v308_v31 = vmul.f32 %v2863_v15, %v307_v47 }
  0xa4   :  { %590 = vperm.xlu0 %2512, %v505_v63   ;;  %v153_v8 = vadd.f32 %v152_v4, %v151_v58  ;;  %v481_v58 = vadd.s32 %v477_v41, %v2900_v39  ;;  %v2935_v63 = vrot.slane %v365_v43, 4  ;;  %v1055_v9 = vmin.f32 %v840_v61, %v841_v62  ;;  %v2533_v39 = vld [vmem:[%s5350_s12] sm:$0x77] }
  0xa5   :  { %v2986_v50 = vadd.f32 %v2863_v15, %v308_v31 }
  0xa6   :  { %v154_v12 = vrot.slane %v153_v8, 1  ;;  %5386 = vst [vmem:[#allocation8_spill] sm:$0xff] %v2935_v63  ;;  %v511_v10 = vperm.slane %v481_v58, 0  ;;  %v512_v14 = vperm.slane %v481_v58, 4 }
  0xa8   :  { %v155_v23 = vadd.f32 %v154_v12, %v153_v8  ;;  %v842_v8 = vsel %vm641_vm10, %v2815_v36, 477.0  ;;  %v843_v12 = vsel %vm642_vm13, %v2817_v40, 477.0  ;;  %v2975_v35 = vperm.slane %v511_v10, 0 }
  0xa9   :  { %v2970_v17 = vmin.f32 %v1055_v9, %v842_v8  ;;  %v2973_v34 = vsel %vm990_vm5, %v843_v12, inf  ;;  %v2978_v41 = vperm.slane %v512_v14, 0  ;;  %v801_v9 = vsel %vm600_vm3, %v2802_v30, 477.0 }
  0xaa   :  { %2464 = vpush %v155_v23  ;;  %vm703_vm7 = vcmp.eq.s32.totalorder %v2975_v35, %v2774_v3  ;;  %vm601_vm10 = vcmp.eq.s32.totalorder %v2798_v28, %v2916_v48  ;;  %v803_v12 = vsel %vm602_vm6, %v2817_v40, 477.0  ;;  %vm695_vm13 = vcmp.eq.s32.totalorder %v2975_v35, %v2916_v48 }
  0xab   :  { %2466 = vpush %v163_v24  ;;  %v1022_v24 = vmin.f32 %v2925_v53, %v2919_v49  ;;  %v1058_v58 = vmin.f32 %v2970_v17, %v2973_v34  ;;  %vm704_vm8 = vcmp.eq.s32.totalorder %v2978_v41, %v2774_v3  ;;  %v904_v14 = vsel %vm703_vm7, %v2795_v26, 477.0 }
  0xac   :  { %1005 = vmin.xlane.f32.xlu2 %v1004_v13  ;;  %v482_v13 = vadd.s32 %v478_v1, %v2935_v63  ;;  %v800_v1 = vsel %vm599_vm2, %v2795_v26, 477.0  ;;  %vm700_vm2 = vcmp.eq.s32.totalorder %v2978_v41, %v2756_v55  ;;  %vm711_vm6 = vcmp.eq.s32.totalorder %v2975_v35, %v2793_v22 }
  0xad   :  { %vm712_vm7 = vcmp.eq.s32.totalorder %v2978_v41, %v2793_v22 }
  0xae   :  { %v513_v38 = vperm.slane %v482_v13, 0  ;;  %v514_v47 = vperm.slane %v482_v13, 4  ;;  %v316_v13 = vand.u32 2147483648, %v2827_v46 }
  0xb0   :  { %v2931_v59 = vpop.permute.xlu0 %524  ;;  %v3002_v10 = vperm.slane %v514_v47, 0 }
  0xb1   :  { %vm595_vm11 = vcmp.eq.s32.totalorder %v2789_v19, %v2931_v59  ;;  %vm596_vm12 = vcmp.eq.s32.totalorder %v2791_v20, %v2931_v59  ;;  %vm597_vm14 = vcmp.eq.s32.totalorder %v2798_v28, %v2931_v59  ;;  %vm598_vm15 = vcmp.eq.s32.totalorder %v2800_v29, %v2931_v59 }
  0xb2   :  { %v796_v4 = vsel %vm595_vm11, %v2795_v26, 477.0  ;;  %v797_v6 = vsel %vm596_vm12, %v2802_v30, 477.0  ;;  %v798_v16 = vsel %vm597_vm14, %v2815_v36, 477.0  ;;  %v799_v23 = vsel %vm598_vm15, %v2817_v40, 477.0  ;;  %vm3013_vm11 = vmor %vm310_vm0, %vm311_vm4 }
  0xb3   :  { %v988_v11 = vmin.f32 %v796_v4, %v797_v6  ;;  %v991_v43 = vsel %vm990_vm5, %v799_v23, inf  ;;  %v2997_v4 = vperm.slane %v513_v38, 0  ;;  %v313_v38 = vsel %vm3013_vm11, %v2863_v15, %v2986_v50 }
  0xb4   :  { %vm706_vm14 = vcmp.eq.s32.totalorder %v3002_v10, %v2774_v3  ;;  %v317_v15 = vor.u32 1.1754944e-38, %v316_v13  ;;  %vm696_vm15 = vcmp.eq.s32.totalorder %v2978_v41, %v2916_v48  ;;  %vm699_vm0 = vcmp.eq.s32.totalorder %v2975_v35, %v2756_v55 }
  0xb5   :  { %v989_v37 = vmin.f32 %v988_v11, %v798_v16  ;;  %vm705_vm12 = vcmp.eq.s32.totalorder %v2997_v4, %v2774_v3  ;;  %v907_v3 = vsel %vm706_vm14, %v2817_v40, 477.0  ;;  %vm697_vm3 = vcmp.eq.s32.totalorder %v2997_v4, %v2916_v48 }
  0xb6   :  { %vm698_vm4 = vcmp.eq.s32.totalorder %v3002_v10, %v2916_v48  ;;  %v3063_v45 = vsel %vm990_vm5, %v907_v3, inf  ;;  %vm714_vm11 = vcmp.eq.s32.totalorder %v3002_v10, %v2793_v22  ;;  %vm691_vm14 = vcmp.eq.s32.totalorder %v2975_v35, %v2931_v59 }
  0xb7   :  { %v992_v62 = vmin.f32 %v989_v37, %v991_v43  ;;  %v995_v37 = vmin.f32 %v800_v1, %v801_v9 }
  0xb8   :  { %v3085_v3 = vpop.permute.xlu0 %545 }
  0xb9   :  { %v180_v21 = vpop.xlane.xlu1 %179 }
  0xba   :  { %v181_v32 = vrot.slane %v180_v21, 4 }
  0xbc   :  { %v182_v42 = vadd.f32 %v181_v32, %v180_v21  ;;  %v905_v32 = vsel %vm704_vm8, %v2802_v30, 477.0  ;;  %vm701_vm8 = vcmp.eq.s32.totalorder %v2997_v4, %v2756_v55 }
  0xbd   :  { %v1155_v50 = vmin.f32 %v904_v14, %v905_v32  ;;  %v901_v32 = vsel %vm700_vm2, %v2802_v30, 477.0  ;;  %vm724_vm2 = vcmp.eq.s32.totalorder %v2978_v41, %v2835_v57 }
  0xbe   :  { %v183_v54 = vrot.slane %v182_v42, 2  ;;  %v246_v61 = vpop.xlane.xlu2 %245 }
  0xbf   :  { %v247_v6 = vrot.slane %v246_v61, 4 }
  0xc0   :  { %v184_v8 = vadd.f32 %v183_v54, %v182_v42  ;;  %v802_v54 = vsel %vm601_vm10, %v2815_v36, 477.0  ;;  %vm702_vm10 = vcmp.eq.s32.totalorder %v3002_v10, %v2756_v55  ;;  %v902_v55 = vsel %vm701_vm8, %v2815_v36, 477.0  ;;  %v3201_v53 = vpop.permute.xlu0 %554 }
  0xc1   :  { %v210_v11 = vpop.xlane.xlu1 %209  ;;  %993 = vmin.xlane.f32.xlu1 %v992_v62  ;;  %v248_v16 = vadd.f32 %v247_v6, %v246_v61  ;;  %v997_v61 = vsel %vm990_vm5, %v803_v12, inf  ;;  %v906_v6 = vsel %vm705_vm12, %v2815_v36, 477.0  ;;  %v996_v9 = vmin.f32 %v995_v37, %v802_v54 }
  0xc2   :  { %v211_v21 = vrot.slane %v210_v11, 4  ;;  %v185_v23 = vrot.slane %v184_v8, 1  ;;  %v913_v54 = vsel %vm712_vm7, %v2802_v30, 477.0  ;;  %vm713_vm12 = vcmp.eq.s32.totalorder %v2997_v4, %v2793_v22 }
  0xc3   :  { %v249_v42 = vrot.slane %v248_v16, 2  ;;  %vm624_vm7 = vcmp.eq.s32.totalorder %v2791_v20, %v3085_v3  ;;  %vm693_vm8 = vcmp.eq.s32.totalorder %v2997_v4, %v2931_v59 }
  0xc4   :  { %v212_v43 = vadd.f32 %v211_v21, %v210_v11  ;;  %v186_v47 = vadd.f32 %v185_v23, %v184_v8  ;;  %v896_v11 = vsel %vm695_vm13, %v2795_v26, 477.0  ;;  %v897_v21 = vsel %vm696_vm15, %v2802_v30, 477.0 }
  0xc5   :  { %v250_v1 = vadd.f32 %v249_v42, %v248_v16  ;;  %v3051_v16 = vmin.f32 %v1155_v50, %v906_v6  ;;  %v998_v6 = vmin.f32 %v996_v9, %v997_v61  ;;  %vm315_vm13 = vcmp.eq.f32.partialorder %v314_v51, 8.507059e+37 }
  0xc6   :  { %v213_v62 = vrot.slane %v212_v43, 2  ;;  %2468 = vpush %v186_v47  ;;  %v265_v8 = vpop.xlane.xlu2 %264  ;;  %v912_v47 = vsel %vm711_vm6, %v2795_v26, 477.0  ;;  %v915_v61 = vsel %vm714_vm11, %v2817_v40, 477.0  ;;  %v898_v51 = vsel %vm697_vm3, %v2815_v36, 477.0 }
  0xc7   :  { %v266_v12 = vrot.slane %v265_v8, 4  ;;  %v251_v14 = vrot.slane %v250_v1, 1  ;;  %v1167_v9 = vmin.f32 %v912_v47, %v913_v54  ;;  %vm692_vm15 = vcmp.eq.s32.totalorder %v2978_v41, %v2931_v59 }
  0xc8   :  { %v214_v13 = vadd.f32 %v213_v62, %v212_v43  ;;  %v899_v43 = vsel %vm698_vm4, %v2817_v40, 477.0  ;;  %v1143_v62 = vmin.f32 %v896_v11, %v897_v21  ;;  %v3120_v48 = vsel %vm990_vm5, %v915_v61, inf }
  0xc9   :  { %1011 = vmin.xlane.f32.xlu1 %v1010_v18  ;;  %v267_v23 = vadd.f32 %v266_v12, %v265_v8  ;;  %v252_v44 = vadd.f32 %v251_v14, %v250_v1  ;;  %v900_v18 = vsel %vm699_vm0, %v2795_v26, 477.0  ;;  %v903_v8 = vsel %vm702_vm10, %v2817_v40, 477.0 }
  0xca   :  { %v215_v31 = vrot.slane %v214_v13, 1  ;;  %v1149_v1 = vmin.f32 %v900_v18, %v901_v32  ;;  %v3089_v14 = vsel %vm315_vm13, %v317_v15, %v313_v38  ;;  %v3102_v11 = vsel %vm990_vm5, %v899_v43, inf }
  0xcb   :  { %v268_v37 = vrot.slane %v267_v23, 2  ;;  %v914_v38 = vsel %vm713_vm12, %v2815_v36, 477.0  ;;  %v3108_v21 = vmin.f32 %v1143_v62, %v898_v51  ;;  %vm723_vm0 = vcmp.eq.s32.totalorder %v2975_v35, %v2835_v57 }
  0xcc   :  { %v216_v42 = vadd.f32 %v215_v31, %v214_v13  ;;  %v3113_v31 = vsel %vm990_vm5, %v903_v8, inf  ;;  %v3124_v22 = vmin.f32 %v1167_v9, %v914_v38  ;;  %vm725_vm3 = vcmp.eq.s32.totalorder %v2997_v4, %v2835_v57 }
  0xcd   :  { %v269_v50 = vadd.f32 %v268_v37, %v267_v23  ;;  %v3110_v23 = vmin.f32 %v1149_v1, %v902_v55  ;;  %vm726_vm4 = vcmp.eq.s32.totalorder %v3002_v10, %v2835_v57  ;;  %vm623_vm6 = vcmp.eq.s32.totalorder %v2789_v19, %v3085_v3 }
  0xce   :  { %2470 = vpush %v216_v42  ;;  %v3087_v12 = vpop.permute.xlu2 %566  ;;  %999 = vmin.xlane.f32.xlu0 %v998_v6  ;;  %vm735_vm10 = vcmp.eq.s32.totalorder %v2975_v35, %v2887_v33  ;;  %vm625_vm11 = vcmp.eq.s32.totalorder %v2798_v28, %v3085_v3  ;;  %vm694_vm12 = vcmp.eq.s32.totalorder %v3002_v10, %v2931_v59  ;;  %v893_v18 = vsel %vm692_vm15, %v2802_v30, 477.0 }
  0xcf   :  { %2472 = vpush %v252_v44  ;;  %v270_v13 = vrot.slane %v269_v50, 1  ;;  %v892_v44 = vsel %vm691_vm14, %v2795_v26, 477.0  ;;  %v3156_v32 = vsel %vm723_vm0, %v2795_v26, 477.0  ;;  %v3159_v37 = vsel %vm724_vm2, %v2802_v30, 477.0 }
  0xd0   :  { %5389 = vst [vmem:[#allocation9_spill] sm:$0xff] %v3087_v12  ;;  %v3162_v42 = vsel %vm725_vm3, %v2815_v36, 477.0  ;;  %v3165_v43 = vsel %vm726_vm4, %v2817_v40, 477.0  ;;  %vm626_vm13 = vcmp.eq.s32.totalorder %v2800_v29, %v3085_v3  ;;  %v824_v57 = vsel %vm623_vm6, %v2795_v26, 477.0 }
  0xd1   :  { %v271_v15 = vadd.f32 %v270_v13, %v269_v50  ;;  %v825_v47 = vsel %vm624_vm7, %v2802_v30, 477.0  ;;  %v3180_v54 = vsel %vm735_vm10, %v2795_v26, 477.0  ;;  %v826_v62 = vsel %vm625_vm11, %v2815_v36, 477.0 }
  0xd2   :  { %v894_v1 = vsel %vm693_vm8, %v2815_v36, 477.0  ;;  %v3199_v6 = vsel %vm694_vm12, %v2817_v40, 477.0  ;;  %v1137_v49 = vmin.f32 %v892_v44, %v893_v18  ;;  %v827_v8 = vsel %vm626_vm13, %v2817_v40, 477.0 }
  0xd3   :  { %2474 = vpush %v271_v15  ;;  %s2461_s13 = spop %2460  ;;  %v1031_v13 = vmin.f32 %v824_v57, %v825_v47  ;;  %vm719_vm3 = vcmp.eq.s32.totalorder %v2975_v35, %v3085_v3  ;;  %vm720_vm4 = vcmp.eq.s32.totalorder %v2978_v41, %v3085_v3  ;;  %vm635_vm6 = vcmp.eq.s32.totalorder %v2789_v19, %v3201_v53 }
  0xd4   :  { %s2463_s6 = spop %2462  ;;  %vm636_vm7 = vcmp.eq.s32.totalorder %v2791_v20, %v3201_v53  ;;  %vm721_vm8 = vcmp.eq.s32.totalorder %v2997_v4, %v3085_v3  ;;  %v1033_v15 = vsel %vm990_vm5, %v827_v8, inf  ;;  %vm722_vm10 = vcmp.eq.s32.totalorder %v3002_v10, %v3085_v3 }
  0xd5   :  { %s3167_s7 = smul.f32 %s2463_s6, %s2461_s13  ;;  %v3235_v44 = vmin.f32 %v1137_v49, %v894_v1  ;;  %v1032_v57 = vmin.f32 %v1031_v13, %v826_v62  ;;  %v3242_v47 = vsel %vm719_vm3, %v2795_v26, 477.0  ;;  %v836_v1 = vsel %vm635_vm6, %v2795_v26, 477.0 }
  0xd6   :  { %1023 = vmin.xlane.f32.xlu0 %v1022_v24  ;;  %v3204_v24 = vpop.permute.xlu2 %575  ;;  %v837_v49 = vsel %vm636_vm7, %v2802_v30, 477.0  ;;  %v3260_v62 = vsel %vm721_vm8, %v2815_v36, 477.0  ;;  %vm651_vm11 = vcmp.eq.s32.totalorder %v2789_v19, %v3087_v12  ;;  %vm652_vm12 = vcmp.eq.s32.totalorder %v2791_v20, %v3087_v12 }
  0xd7   :  { %2421 = sst [smem:[#allocation2]] %s3167_s7  ;;  %5390 = vst [vmem:[#allocation10_spill] sm:$0xff] %v3204_v24  ;;  %s2412_s24 = smul.f32 100.0, %s3167_s7  ;;  %vm638_vm13 = vcmp.eq.s32.totalorder %v2800_v29, %v3201_v53  ;;  %v923_v13 = vsel %vm722_vm10, %v2817_v40, 477.0  ;;  %vm637_vm3 = vcmp.eq.s32.totalorder %v2798_v28, %v3201_v53  ;;  %vm663_vm6 = vcmp.eq.s32.totalorder %v2789_v19, %v3204_v24 }
  0xd8   :  { %vm664_vm7 = vcmp.eq.s32.totalorder %v2791_v20, %v3204_v24  ;;  %vm654_vm8 = vcmp.eq.s32.totalorder %v2800_v29, %v3087_v12  ;;  %vm666_vm10 = vcmp.eq.s32.totalorder %v2800_v29, %v3204_v24 }
  0xd9   :  { %v3185_v50 = vpop.permute.xlu1 %536 }
  0xda   :  { %vm611_vm14 = vcmp.eq.s32.totalorder %v2789_v19, %v3185_v50  ;;  %vm612_vm15 = vcmp.eq.s32.totalorder %v2791_v20, %v3185_v50  ;;  %vm613_vm0 = vcmp.eq.s32.totalorder %v2798_v28, %v3185_v50  ;;  %vm614_vm2 = vcmp.eq.s32.totalorder %v2800_v29, %v3185_v50 }
  0xdb   :  { %v812_v59 = vsel %vm611_vm14, %v2795_v26, 477.0  ;;  %v813_v55 = vsel %vm612_vm15, %v2802_v30, 477.0  ;;  %v815_v61 = vsel %vm614_vm2, %v2817_v40, 477.0  ;;  %v814_v51 = vsel %vm613_vm0, %v2815_v36, 477.0  ;;  %s2465_s23 = spop %2464 }
  0xdc   :  { %v1013_v9 = vmin.f32 %v812_v59, %v813_v55  ;;  %s3238_s25 = spop %2466  ;;  %v1015_v18 = vsel %vm990_vm5, %v815_v61, inf  ;;  %v3245_v59 = vsel %vm720_vm4, %v2802_v30, 477.0  ;;  %vm653_vm4 = vcmp.eq.s32.totalorder %v2798_v28, %v3087_v12 }
  0xdd   :  { %s165_s26 = smul.f32 %s3238_s25, %s2465_s23 }
  0xde   :  { %v1014_v38 = vmin.f32 %v1013_v9, %v814_v51  ;;  %1041 = vmin.xlane.f32.xlu0 %v1040_v27  ;;  %v1049_v27 = vmin.f32 %v836_v1, %v837_v49  ;;  %v3291_v3 = vpop.permute.xlu2 %584  ;;  %v852_v51 = vsel %vm651_vm11, %v2795_v26, 477.0  ;;  %v839_v1 = vsel %vm638_vm13, %v2817_v40, 477.0 }
  0xdf   :  { %2423 = sst [smem:[#allocation2 + $0x1]] %s165_s26  ;;  %5391 = vst [vmem:[#allocation11_spill] sm:$0xff] %v3291_v3  ;;  %v1051_v46 = vsel %vm990_vm5, %v839_v1, inf  ;;  %v3324_v49 = vsel %vm990_vm5, %v923_v13, inf  ;;  %v855_v13 = vsel %vm654_vm8, %v2817_v40, 477.0 }
  0xe0   :  { %v1016_v55 = vmin.f32 %v1014_v38, %v1015_v18  ;;  %s3289_s4 = sadd.f32 %s2412_s24, %s165_s26  ;;  %v853_v38 = vsel %vm652_vm12, %v2802_v30, 477.0 }
  0xe1   :  { %v3265_v8 = vpop.permute.xlu1 %542 }
  0xe2   :  { %1017 = vmin.xlane.f32.xlu2 %v1016_v55  ;;  %vm619_vm14 = vcmp.eq.s32.totalorder %v2789_v19, %v3265_v8  ;;  %vm620_vm15 = vcmp.eq.s32.totalorder %v2791_v20, %v3265_v8  ;;  %vm621_vm0 = vcmp.eq.s32.totalorder %v2798_v28, %v3265_v8  ;;  %vm622_vm2 = vcmp.eq.s32.totalorder %v2800_v29, %v3265_v8 }
  0xe3   :  { %v820_v2 = vsel %vm619_vm14, %v2795_v26, 477.0  ;;  %v821_v7 = vsel %vm620_vm15, %v2802_v30, 477.0  ;;  %v823_v61 = vsel %vm622_vm2, %v2817_v40, 477.0  ;;  %v822_v18 = vsel %vm621_vm0, %v2815_v36, 477.0 }
  0xe4   :  { %v1025_v9 = vmin.f32 %v820_v2, %v821_v7  ;;  %v1034_v55 = vmin.f32 %v1032_v57, %v1033_v15  ;;  %v1027_v15 = vsel %vm990_vm5, %v823_v61, inf  ;;  %v1073_v57 = vmin.f32 %v852_v51, %v853_v38 }
  0xe5   :  { %v838_v7 = vsel %vm637_vm3, %v2815_v36, 477.0  ;;  %v854_v51 = vsel %vm653_vm4, %v2815_v36, 477.0  ;;  %v864_v38 = vsel %vm663_vm6, %v2795_v26, 477.0  ;;  %vm665_vm15 = vcmp.eq.s32.totalorder %v2798_v28, %v3204_v24 }
  0xe6   :  { %v1026_v2 = vmin.f32 %v1025_v9, %v822_v18  ;;  %v1050_v18 = vmin.f32 %v1049_v27, %v838_v7  ;;  %1059 = vmin.xlane.f32.xlu0 %v1058_v58  ;;  %v865_v27 = vsel %vm664_vm7, %v2802_v30, 477.0  ;;  %v1074_v17 = vmin.f32 %v1073_v57, %v854_v51  ;;  %v3356_v51 = vpop.permute.xlu2 %593 }
  0xe7   :  { %v867_v57 = vsel %vm666_vm10, %v2817_v40, 477.0  ;;  %5392 = vst [vmem:[#allocation12_spill] sm:$0xff] %v3356_v51  ;;  %vm675_vm0 = vcmp.eq.s32.totalorder %v2789_v19, %v3291_v3  ;;  %vm707_vm2 = vcmp.eq.s32.totalorder %v2975_v35, %v3185_v50  ;;  %vm708_vm3 = vcmp.eq.s32.totalorder %v2978_v41, %v3185_v50 }
  0xe8   :  { %v1028_v9 = vmin.f32 %v1026_v2, %v1027_v15  ;;  %v1091_v2 = vmin.f32 %v864_v38, %v865_v27  ;;  %v1075_v15 = vsel %vm990_vm5, %v855_v13, inf  ;;  %vm676_vm4 = vcmp.eq.s32.totalorder %v2791_v20, %v3291_v3 }
  0xe9   :  { %v3329_v61 = vpop.permute.xlu1 %551  ;;  %v1076_v38 = vmin.f32 %v1074_v17, %v1075_v15  ;;  %vm709_vm6 = vcmp.eq.s32.totalorder %v2997_v4, %v3185_v50  ;;  %vm687_vm7 = vcmp.eq.s32.totalorder %v2789_v19, %v3356_v51  ;;  %v908_v17 = vsel %vm707_vm2, %v2795_v26, 477.0 }
  0xea   :  { %1029 = vmin.xlane.f32.xlu1 %v1028_v9  ;;  %1035 = vmin.xlane.f32.xlu2 %v1034_v55  ;;  %vm631_vm11 = vcmp.eq.s32.totalorder %v2789_v19, %v3329_v61  ;;  %vm632_vm12 = vcmp.eq.s32.totalorder %v2791_v20, %v3329_v61  ;;  %vm633_vm13 = vcmp.eq.s32.totalorder %v2798_v28, %v3329_v61 }
  0xeb   :  { %vm634_vm14 = vcmp.eq.s32.totalorder %v2800_v29, %v3329_v61  ;;  %v832_v34 = vsel %vm631_vm11, %v2795_v26, 477.0  ;;  %v833_v58 = vsel %vm632_vm12, %v2802_v30, 477.0  ;;  %v834_v7 = vsel %vm633_vm13, %v2815_v36, 477.0 }
  0xec   :  { %v835_v55 = vsel %vm634_vm14, %v2817_v40, 477.0  ;;  %v1043_v1 = vmin.f32 %v832_v34, %v833_v58  ;;  %v1052_v9 = vmin.f32 %v1050_v18, %v1051_v46  ;;  %v866_v18 = vsel %vm665_vm15, %v2815_v36, 477.0 }
  0xed   :  { %v1045_v46 = vsel %vm990_vm5, %v835_v55, inf  ;;  %v1092_v13 = vmin.f32 %v1091_v2, %v866_v18  ;;  %v1093_v34 = vsel %vm990_vm5, %v867_v57, inf  ;;  %v909_v55 = vsel %vm708_vm3, %v2802_v30, 477.0 }
  0xee   :  { %v1044_v25 = vmin.f32 %v1043_v1, %v834_v7  ;;  %1077 = vmin.xlane.f32.xlu0 %v1076_v38  ;;  %v876_v1 = vsel %vm675_vm0, %v2795_v26, 477.0  ;;  %vm688_vm13 = vcmp.eq.s32.totalorder %v2791_v20, %v3356_v51  ;;  %vm677_vm14 = vcmp.eq.s32.totalorder %v2798_v28, %v3291_v3 }
  0xef   :  { %vm5378_vm15 = vcmask 762880   ;;  %vm710_vm0 = vcmp.eq.s32.totalorder %v3002_v10, %v3185_v50  ;;  %vm678_vm2 = vcmp.eq.s32.totalorder %v2800_v29, %v3291_v3  ;;  %v1094_v63 = vmin.f32 %v1092_v13, %v1093_v34  ;;  %v300_v50 = vpop.xlane.xlu0 %299 }
  0xf0   :  { %v1046_v27 = vmin.f32 %v1044_v25, %v1045_v46  ;;  %v877_v25 = vsel %vm676_vm4, %v2802_v30, 477.0  ;;  %v1161_v46 = vmin.f32 %v908_v17, %v909_v55  ;;  %v911_v17 = vsel %vm710_vm0, %v2817_v40, 477.0 }
  0xf1   :  { %v3371_v58 = vpop.permute.xlu1 %560  ;;  %v1109_v38 = vmin.f32 %v876_v1, %v877_v25  ;;  %v878_v1 = vsel %vm677_vm14, %v2815_v36, 477.0  ;;  %v879_v25 = vsel %vm678_vm2, %v2817_v40, 477.0  ;;  %vm689_vm3 = vcmp.eq.s32.totalorder %v2798_v28, %v3356_v51 }
  0xf2   :  { %1047 = vmin.xlane.f32.xlu1 %v1046_v27  ;;  %1053 = vmin.xlane.f32.xlu2 %v1052_v9  ;;  %vm643_vm8 = vcmp.eq.s32.totalorder %v2789_v19, %v3371_v58  ;;  %vm644_vm10 = vcmp.eq.s32.totalorder %v2791_v20, %v3371_v58  ;;  %vm645_vm11 = vcmp.eq.s32.totalorder %v2798_v28, %v3371_v58  ;;  %v888_v27 = vsel %vm687_vm7, %v2795_v26, 477.0 }
  0xf3   :  { %vm646_vm12 = vcmp.eq.s32.totalorder %v2800_v29, %v3371_v58  ;;  %v844_v2 = vsel %vm643_vm8, %v2795_v26, 477.0  ;;  %v845_v15 = vsel %vm644_vm10, %v2802_v30, 477.0  ;;  %v846_v57 = vsel %vm645_vm11, %v2815_v36, 477.0 }
  0xf4   :  { %v847_v7 = vsel %vm646_vm12, %v2817_v40, 477.0  ;;  %v1061_v9 = vmin.f32 %v844_v2, %v845_v15  ;;  %v889_v2 = vsel %vm688_vm13, %v2802_v30, 477.0  ;;  %v910_v15 = vsel %vm709_vm6, %v2815_v36, 477.0 }
  0xf5   :  { %v1063_v5 = vsel %vm990_vm5, %v847_v7, inf  ;;  %vm690_vm4 = vcmp.eq.s32.totalorder %v2800_v29, %v3356_v51  ;;  %v1110_v34 = vmin.f32 %v1109_v38, %v878_v1  ;;  %v1127_v7 = vsel %vm5382_vm1, %v888_v27, inf  ;;  %v3461_v51 = vld [vmem:[%s5350_s12 + $0x8] sm:$0x77] }
  0xf6   :  { %v1062_v18 = vmin.f32 %v1061_v9, %v846_v57  ;;  %1095 = vmin.xlane.f32.xlu0 %v1094_v63  ;;  %v1128_v9 = vsel %vm5382_vm1, %v889_v2, inf  ;;  %v3426_v57 = vmin.f32 %v1161_v46, %v910_v15  ;;  %v890_v38 = vsel %vm689_vm3, %v2815_v36, 477.0 }
  0xf7   :  { %s2469_s5 = spop %2468  ;;  %v891_v46 = vsel %vm690_vm4, %v2817_v40, 477.0  ;;  %v1129_v15 = vmin.f32 %v1127_v7, %v1128_v9  ;;  %v1111_v1 = vsel %vm990_vm5, %v879_v25, inf  ;;  %v3465_v7 = vsel %vm990_vm5, %v911_v17, inf }
  0xf8   :  { %s3415_s27 = smul.f32 %s2469_s5, %s3238_s25  ;;  %v1064_v55 = vmin.f32 %v1062_v18, %v1063_v5  ;;  %v3450_v18 = vmul.f32 %v3089_v14, %v300_v50  ;;  %v372_v14 = vsub.f32 0.0, %v3461_v51  ;;  %v1112_v50 = vmin.f32 %v1110_v34, %v1111_v1 }
  0xf9   :  { %v3422_v13 = vpop.permute.xlu1 %569  ;;  %v5394_v25 = vmin.f32 %v3242_v47, %v3245_v59  ;;  %v1130_v3 = vsel %vm5382_vm1, %v890_v38, inf  ;;  %v1133_v24 = vsel %vm5378_vm15, %v891_v46, inf  ;;  %v2456_v38 = vrot.slane %v2533_v39, 10 }
  0xfa   :  { %5393 = vst [vmem:[#allocation13_spill] sm:$0xff] %v3422_v13  ;;  %s2414_s28 = sadd.f32 %s3289_s4, %s3415_s27  ;;  %1065 = vmin.xlane.f32.xlu1 %v1064_v55  ;;  %vm655_vm6 = vcmp.eq.s32.totalorder %v2789_v19, %v3422_v13  ;;  %vm656_vm7 = vcmp.eq.s32.totalorder %v2791_v20, %v3422_v13  ;;  %vm657_vm8 = vcmp.eq.s32.totalorder %v2798_v28, %v3422_v13  ;;  %v2451_v1 = vadd.f32 -0.04, %v3450_v18 }
  0xfb   :  { %vm658_vm10 = vcmp.eq.s32.totalorder %v2800_v29, %v3422_v13  ;;  %2425 = sst [smem:[#allocation2 + $0x2]] %s3415_s27  ;;  %v856_v5 = vsel %vm655_vm6, %v2795_v26, 477.0  ;;  %v857_v63 = vsel %vm656_vm7, %v2802_v30, 477.0  ;;  %v858_v55 = vsel %vm657_vm8, %v2815_v36, 477.0 }
  0xfc   :  { %v859_v27 = vsel %vm658_vm10, %v2817_v40, 477.0  ;;  %v1079_v2 = vmin.f32 %v856_v5, %v857_v63  ;;  %v371_v13 = vsub.f32 0.0, %v2533_v39  ;;  %v3471_v9 = vmin.f32 %v5394_v25, %v3260_v62 }
  0xfd   :  { %v1081_v63 = vsel %vm990_vm5, %v859_v27, inf  ;;  %v2457_v46 = vrot.slane %v3461_v51, 10  ;;  %vm367_vm0 = vcmp.ne.s32.totalorder %v2751_v52, %v2762_v60  ;;  %vm368_vm7 = vcmp.ne.s32.totalorder %v2758_v56, %v2771_v0 }
  0xfe   :  { %v1080_v5 = vmin.f32 %v1079_v2, %v858_v55  ;;  %v1131_v2 = vmin.f32 %v1129_v15, %v1130_v3  ;;  %1113 = vmin.xlane.f32.xlu0 %v1112_v50  ;;  %v3481_v59 = vpop.permute.xlu0 %563  ;;  %v2452_v27 = vrot.slane %v371_v13, 10  ;;  %v2453_v55 = vrot.slane %v372_v14, 10 }
  0xff   :  { %s2471_s16 = spop %2470  ;;  %vm647_vm11 = vcmp.eq.s32.totalorder %v2789_v19, %v3481_v59  ;;  %vm648_vm12 = vcmp.eq.s32.totalorder %v2791_v20, %v3481_v59  ;;  %vm649_vm13 = vcmp.eq.s32.totalorder %v2798_v28, %v3481_v59  ;;  %vm650_vm14 = vcmp.eq.s32.totalorder %v2800_v29, %v3481_v59 }
 0x100   :  { %s226_s17 = smul.f32 %s2471_s16, %s3238_s25  ;;  %v1082_v17 = vmin.f32 %v1080_v5, %v1081_v63  ;;  %v848_v39 = vsel %vm647_vm11, %v2795_v26, 477.0  ;;  %v849_v3 = vsel %vm648_vm12, %v2802_v30, 477.0  ;;  %v850_v51 = vsel %vm649_vm13, %v2815_v36, 477.0  ;;  %s3502_s19 = spop %2472 }
 0x101   :  { %v3483_v62 = vpop.permute.xlu1 %578  ;;  %v851_v13 = vsel %vm650_vm14, %v2817_v40, 477.0  ;;  %v1067_v15 = vmin.f32 %v848_v39, %v849_v3  ;;  %vm324_vm8 = vcmp.lt.f32.partialorder %v3450_v18, 0.005  ;;  %vm325_vm10 = vcmp.gt.f32.partialorder %v3450_v18, 0.0 }
 0x102   :  { %5395 = vst [vmem:[#allocation14_spill] sm:$0xff] %v3483_v62  ;;  %s3489_s18 = sadd.f32 %s2414_s28, %s226_s17  ;;  %1083 = vmin.xlane.f32.xlu1 %v1082_v17  ;;  %vm667_vm2 = vcmp.eq.s32.totalorder %v2789_v19, %v3483_v62  ;;  %vm668_vm3 = vcmp.eq.s32.totalorder %v2791_v20, %v3483_v62  ;;  %vm669_vm4 = vcmp.eq.s32.totalorder %v2798_v28, %v3483_v62  ;;  %v1069_v39 = vsel %vm990_vm5, %v851_v13, inf  ;;  %vm3610_vm15 = vmand %vm324_vm8, %vm325_vm10 }
 0x103   :  { %2427 = sst [smem:[#allocation2 + $0x3]] %s226_s17  ;;  %vm670_vm6 = vcmp.eq.s32.totalorder %v2800_v29, %v3483_v62  ;;  %v868_v14 = vsel %vm667_vm2, %v2795_v26, 477.0  ;;  %v869_v50 = vsel %vm668_vm3, %v2802_v30, 477.0  ;;  %v1068_v5 = vmin.f32 %v1067_v15, %v850_v51 }
 0x104   :  { %s2475_s0 = spop %2474  ;;  %v871_v63 = vsel %vm670_vm6, %v2817_v40, 477.0  ;;  %v1134_v17 = vmin.f32 %v1131_v2, %v1133_v24  ;;  %v1097_v3 = vmin.f32 %v868_v14, %v869_v50  ;;  %v870_v47 = vsel %vm669_vm4, %v2815_v36, 477.0 }
 0x105   :  { %v3517_v25 = vstv %s2475_s0  ;;  %v1070_v34 = vmin.f32 %v1068_v5, %v1069_v39  ;;  %v322_v62 = vmul.f32 200.0, %v2451_v1  ;;  %v3530_v51 = vsel %vm367_vm0, %v2452_v27, %v2456_v38 }
 0x106   :  { %2521 = vrcp.f32 %v3517_v25  ;;  %1135 = vmin.xlane.f32.xlu0 %v1134_v17  ;;  %v3532_v24 = vpop.permute.xlu0 %572  ;;  %v1098_v13 = vmin.f32 %v1097_v3, %v870_v47  ;;  %v1099_v15 = vsel %vm990_vm5, %v871_v63, inf  ;;  %v5398_v14 = vsub.f32 0.005, %v3450_v18 }
 0x107   :  { %5396 = vst [vmem:[#allocation15_spill] sm:$0xff] %v3532_v24  ;;  %v3544_v50 = vsel %vm368_vm7, %v2453_v55, %v2457_v46  ;;  %1071 = vmin.xlane.f32.xlu2 %v1070_v34  ;;  %vm659_vm11 = vcmp.eq.s32.totalorder %v2789_v19, %v3532_v24  ;;  %vm660_vm12 = vcmp.eq.s32.totalorder %v2791_v20, %v3532_v24  ;;  %vm320_vm2 = vcmp.gt.f32.partialorder %v3450_v18, 0.04 }
 0x108   :  { %v3539_v1 = vmul.f32 200.0, %v5398_v14  ;;  %vm661_vm13 = vcmp.eq.s32.totalorder %v2798_v28, %v3532_v24  ;;  %vm662_vm14 = vcmp.eq.s32.totalorder %v2800_v29, %v3532_v24  ;;  %v1100_v47 = vmin.f32 %v1098_v13, %v1099_v15 }
 0x109   :  { %v3534_v2 = vpop.permute.xlu1 %587  ;;  %v860_v27 = vsel %vm659_vm11, %v2795_v26, 477.0  ;;  %v861_v55 = vsel %vm660_vm12, %v2802_v30, 477.0  ;;  %2523 = vrcp.f32 %v3530_v51  ;;  %v863_v34 = vsel %vm662_vm14, %v2817_v40, 477.0 }
 0x10a   :  { %5397 = vst [vmem:[#allocation16_spill] sm:$0xff] %v3534_v2  ;;  %v1085_v38 = vmin.f32 %v860_v27, %v861_v55  ;;  %vm679_vm3 = vcmp.eq.s32.totalorder %v2789_v19, %v3534_v2  ;;  %vm680_vm4 = vcmp.eq.s32.totalorder %v2791_v20, %v3534_v2  ;;  %1101 = vmin.xlane.f32.xlu1 %v1100_v47  ;;  %v862_v5 = vsel %vm661_vm13, %v2815_v36, 477.0 }
 0x10b   :  { %vm681_vm6 = vcmp.eq.s32.totalorder %v2798_v28, %v3534_v2  ;;  %vm682_vm11 = vcmp.eq.s32.totalorder %v2800_v29, %v3534_v2  ;;  %v880_v63 = vsel %vm679_vm3, %v2795_v26, 477.0  ;;  %vm736_vm12 = vcmp.eq.s32.totalorder %v2978_v41, %v2887_v33 }
 0x10c   :  { %v3563_v46 = vpop.eup %2521  ;;  %v1086_v39 = vmin.f32 %v1085_v38, %v862_v5  ;;  %v881_v3 = vsel %vm680_vm4, %v2802_v30, 477.0  ;;  %2525 = vrcp.f32 %v3544_v50  ;;  %v1087_v13 = vsel %vm990_vm5, %v863_v34, inf }
 0x10d   :  { %v275_v17 = vmul.f32 %v3563_v46, %v3517_v25  ;;  %v883_v15 = vsel %vm682_vm11, %v2817_v40, 477.0  ;;  %v1115_v14 = vmin.f32 %v880_v63, %v881_v3  ;;  %vm279_vm13 = vweird.f32 %v3517_v25 }
 0x10e   :  { %v1088_v27 = vmin.f32 %v1086_v39, %v1087_v13  ;;  %v882_v55 = vsel %vm681_vm6, %v2815_v36, 477.0  ;;  %v283_v2 = vand.u32 2147483647, %v3517_v25  ;;  %v5399_v38 = vmin.f32 %v3426_v57, %v3465_v7  ;;  %v3587_v5 = vpop.permute.xlu0 %581 }
 0x10f   :  { %v276_v47 = vsub.f32 1.0, %v275_v17  ;;  %v3582_v12 = vpop.eup %2523  ;;  %5400 = vst [vmem:[#allocation17_spill] sm:$0xff] %v3587_v5  ;;  %v1116_v34 = vmin.f32 %v1115_v14, %v882_v55  ;;  %v1117_v24 = vsel %vm990_vm5, %v883_v15, inf  ;;  %vm280_vm14 = vweird.f32 %v3563_v46 }
 0x110   :  { %1165 = vmin.xlane.f32.xlu0 %v5399_v38  ;;  %v285_v63 = vand.u32 2147483648, %v3517_v25  ;;  %vm737_vm3 = vcmp.eq.s32.totalorder %v2997_v4, %v2887_v33  ;;  %1089 = vmin.xlane.f32.xlu2 %v1088_v27  ;;  %vm671_vm4 = vcmp.eq.s32.totalorder %v2789_v19, %v3587_v5  ;;  %vm672_vm6 = vcmp.eq.s32.totalorder %v2791_v20, %v3587_v5  ;;  %vm3626_vm8 = vmor %vm279_vm13, %vm280_vm14 }
 0x111   :  { %vm673_vm11 = vcmp.eq.s32.totalorder %v2798_v28, %v3587_v5  ;;  %vm674_vm9 = vcmp.eq.s32.totalorder %v2800_v29, %v3587_v5  ;;  %v1118_v57 = vmin.f32 %v1116_v34, %v1117_v24  ;;  %v872_v7 = vsel %vm671_vm4, %v2795_v26, 477.0 }
 0x112   :  { %v873_v17 = vsel %vm672_vm6, %v2802_v30, 477.0  ;;  %v323_v39 = vsel %vm320_vm2, %v322_v62, 0.0  ;;  %v3614_v13 = vpop.eup %2525  ;;  %v875_v15 = vsel %vm674_vm9, %v2817_v40, 477.0  ;;  %v277_v14 = vmul.f32 %v3563_v46, %v276_v47 }
 0x113   :  { %v1103_v24 = vmin.f32 %v872_v7, %v873_v17  ;;  %v329_v27 = vsel %vm3610_vm15, %v3539_v1, 0.0  ;;  %1119 = vmin.xlane.f32.xlu1 %v1118_v57  ;;  %v874_v62 = vsel %vm673_vm11, %v2815_v36, 477.0  ;;  %v286_v38 = vor.u32 1.1754944e-38, %v285_v63 }
 0x114   :  { %v1139_v34 = vsel %vm990_vm5, %v3199_v6, inf  ;;  %v412_v47 = vmul.f32 %v3582_v12, %v3530_v51  ;;  %v278_v1 = vadd.f32 %v3563_v46, %v277_v14  ;;  %vm284_vm9 = vcmp.eq.f32.partialorder %v283_v2, 8.507059e+37 }
 0x115   :  { %v1104_v7 = vmin.f32 %v1103_v24, %v874_v62  ;;  %v5405_v57 = vsub.f32 0.005, %v3450_v18  ;;  %v1182_v25 = vmin.f32 %v3471_v9, %v3324_v49  ;;  %v1105_v3 = vsel %vm990_vm5, %v875_v15, inf }
 0x116   :  { %v333_v5 = vadd.f32 %v329_v27, %v323_v39  ;;  %v427_v63 = vmul.f32 %v3614_v13, %v3544_v50  ;;  %v282_v24 = vsel %vm3626_vm8, %v3563_v46, %v278_v1  ;;  %v1140_v14 = vmin.f32 %v3235_v44, %v1139_v34  ;;  %v3652_v49 = vpop.permute.xlu0 %590 }
 0x117   :  { %v331_v17 = vmul.f32 500.0, %v5405_v57  ;;  %v1106_v6 = vmin.f32 %v1104_v7, %v1105_v3  ;;  %v3650_v2 = vsel %vm736_vm12, %v2802_v30, 477.0  ;;  %v287_v9 = vsel %vm284_vm9, %v286_v38, %v282_v24 }
 0x118   :  { %1183 = vmin.xlane.f32.xlu0 %v1182_v25  ;;  %vm330_vm15 = vcmp.lt.f32.partialorder %v3450_v18, 0.0  ;;  %v413_v39 = vsub.f32 1.0, %v412_v47  ;;  %vm731_vm10 = vcmp.eq.s32.totalorder %v2975_v35, %v3201_v53  ;;  %2476 = vpush %v287_v9  ;;  %vm683_vm2 = vcmp.eq.s32.totalorder %v2789_v19, %v3652_v49 }
 0x119   :  { %1107 = vmin.xlane.f32.xlu2 %v1106_v6  ;;  %v332_v46 = vsel %vm330_vm15, %v331_v17, 0.0  ;;  %vm684_vm12 = vcmp.eq.s32.totalorder %v2791_v20, %v3652_v49  ;;  %vm732_vm13 = vcmp.eq.s32.totalorder %v2978_v41, %v3201_v53  ;;  %vm715_vm14 = vcmp.eq.s32.totalorder %v2975_v35, %v3265_v8 }
 0x11a   :  { %v334_v44 = vadd.f32 %v333_v5, %v332_v46  ;;  %vm716_vm4 = vcmp.eq.s32.totalorder %v2978_v41, %v3265_v8  ;;  %v428_v18 = vsub.f32 1.0, %v427_v63  ;;  %vm5381_vm6 = vcmask 1024  }
 0x11b   :  { %v1185_v15 = vmin.f32 %v3156_v32, %v3159_v37  ;;  %v938_v19 = vsel %vm737_vm3, %v2815_v36, 477.0  ;;  %v1203_v20 = vmin.f32 %v3180_v54, %v3650_v2  ;;  %1141 = vmin.xlane.f32.xlu1 %v1140_v14  ;;  %v884_v5 = vsel %vm683_vm2, %v2795_v26, 477.0 }
 0x11c   :  { %v885_v27 = vsel %vm684_vm12, %v2802_v30, 477.0  ;;  %v414_v62 = vmul.f32 %v3582_v12, %v413_v39  ;;  %v3682_v32 = vsel %vm731_vm10, %v2795_v26, 477.0  ;;  %vm717_vm11 = vcmp.eq.s32.totalorder %v2997_v4, %v3265_v8 }
 0x11d   :  { %v916_v37 = vsel %vm715_vm14, %v2795_v26, 477.0  ;;  %v917_v54 = vsel %vm716_vm4, %v2802_v30, 477.0  ;;  %v933_v55 = vsel %vm732_vm13, %v2802_v30, 477.0  ;;  %vm738_vm3 = vcmp.eq.s32.totalorder %v3002_v10, %v2887_v33 }
 0x11e   :  { %v336_v38 = vsel %vm5381_vm6, %v334_v44, 0.0  ;;  %vm416_vm8 = vweird.f32 %v3530_v51  ;;  %vm417_vm9 = vweird.f32 %v3582_v12  ;;  %v429_v34 = vmul.f32 %v3614_v13, %v428_v18 }
 0x11f   :  { %vm685_vm15 = vcmp.eq.s32.totalorder %v2798_v28, %v3652_v49  ;;  %v1121_v47 = vmin.f32 %v884_v5, %v885_v27  ;;  %v420_v7 = vand.u32 2147483647, %v3530_v51  ;;  %v422_v1 = vand.u32 2147483648, %v3530_v51  ;;  %vm3709_vm14 = vmor %vm416_vm8, %vm417_vm9  ;;  %v1006_v0 = vpop.xlane.xlu2 %1005 }
 0x120   :  { %vm686_vm10 = vcmp.eq.s32.totalorder %v2800_v29, %v3652_v49  ;;  %v415_v57 = vadd.f32 %v3582_v12, %v414_v62  ;;  %vm431_vm2 = vweird.f32 %v3544_v50  ;;  %vm432_vm12 = vweird.f32 %v3614_v13 }
 0x121   :  { %337 = vadd.xlane.f32.xlu2 %v336_v38  ;;  %vm718_vm13 = vcmp.eq.s32.totalorder %v3002_v10, %v3265_v8  ;;  %v1173_v17 = vmin.f32 %v916_v37, %v917_v54  ;;  %v437_v51 = vand.u32 2147483648, %v3544_v50  ;;  %vm727_vm4 = vcmp.eq.s32.totalorder %v2975_v35, %v3329_v61  ;;  %vm3724_vm8 = vmor %vm431_vm2, %vm432_vm12 }
 0x122   :  { %v886_v29 = vsel %vm685_vm15, %v2815_v36, 477.0  ;;  %v430_v25 = vadd.f32 %v3614_v13, %v429_v34  ;;  %v435_v3 = vand.u32 2147483647, %v3544_v50  ;;  %vm728_vm6 = vcmp.eq.s32.totalorder %v2978_v41, %v3329_v61 }
 0x123   :  { %v887_v63 = vsel %vm686_vm10, %v2817_v40, 477.0  ;;  %v1122_v6 = vmin.f32 %v1121_v47, %v886_v29  ;;  %v423_v24 = vor.u32 1.1754944e-38, %v422_v1  ;;  %vm733_vm9 = vcmp.eq.s32.totalorder %v2997_v4, %v3201_v53 }
 0x124   :  { %v5410_v2 = vmin.f32 %v3051_v16, %v3063_v45  ;;  %v918_v9 = vsel %vm717_vm11, %v2815_v36, 477.0  ;;  %v419_v50 = vsel %vm3709_vm14, %v3582_v12, %v415_v57  ;;  %vm421_vm15 = vcmp.eq.f32.partialorder %v420_v7, 8.507059e+37 }
 0x125   :  { %v1197_v39 = vmin.f32 %v3682_v32, %v933_v55  ;;  %v919_v46 = vsel %vm718_vm13, %v2817_v40, 477.0  ;;  %v438_v44 = vor.u32 1.1754944e-38, %v437_v51  ;;  %v928_v16 = vsel %vm727_vm4, %v2795_v26, 477.0 }
 0x126   :  { %1159 = vmin.xlane.f32.xlu1 %v5410_v2  ;;  %v929_v45 = vsel %vm728_vm6, %v2802_v30, 477.0  ;;  %v1123_v18 = vsel %vm990_vm5, %v887_v63, inf  ;;  %v1174_v5 = vmin.f32 %v1173_v17, %v918_v9  ;;  %v434_v12 = vsel %vm3724_vm8, %v3614_v13, %v430_v25  ;;  %v5411_v2 = vld [vmem:[#allocation15_spill] sm:$0xff] }
 0x127   :  { %vm436_vm11 = vcmp.eq.f32.partialorder %v435_v3, 8.507059e+37  ;;  %v1124_v27 = vmin.f32 %v1122_v6, %v1123_v18  ;;  %v424_v62 = vsel %vm421_vm15, %v423_v24, %v419_v50  ;;  %v3755_v8 = vmin.f32 %v1185_v15, %v3162_v42 }
 0x128   :  { %vm734_vm10 = vcmp.eq.s32.totalorder %v3002_v10, %v3201_v53  ;;  %vm729_vm2 = vcmp.eq.s32.totalorder %v2997_v4, %v3329_v61  ;;  %v1191_v32 = vmin.f32 %v928_v16, %v929_v45  ;;  %v939_v37 = vsel %vm738_vm3, %v2817_v40, 477.0 }
 0x129   :  { %v3765_v54 = vmin.f32 %v1203_v20, %v938_v19  ;;  %1125 = vmin.xlane.f32.xlu2 %v1124_v27  ;;  %v1175_v13 = vsel %vm990_vm5, %v919_v46, inf  ;;  %v439_v55 = vsel %vm436_vm11, %v438_v44, %v434_v12  ;;  %v934_v42 = vsel %vm733_vm9, %v2815_v36, 477.0 }
 0x12a   :  { %vm730_vm6 = vcmp.eq.s32.totalorder %v3002_v10, %v3329_v61  ;;  %v1176_v15 = vmin.f32 %v1174_v5, %v1175_v13  ;;  %v471_v33 = vsel %vm367_vm0, %v424_v62, 0.0  ;;  %v935_v19 = vsel %vm734_vm10, %v2817_v40, 477.0 }
 0x12b   :  { %v3778_v20 = vmin.f32 %v1197_v39, %v934_v42  ;;  %v1146_v38 = vmin.f32 %v3108_v21, %v3102_v11  ;;  %v3784_v34 = vsel %vm990_vm5, %v3165_v43, inf  ;;  %v930_v53 = vsel %vm729_vm2, %v2815_v36, 477.0 }
 0x12c   :  { %v3788_v61 = vsel %vm990_vm5, %v939_v37, inf  ;;  %v1152_v52 = vmin.f32 %v3110_v23, %v3113_v31  ;;  %v472_v60 = vsel %vm368_vm7, %v439_v55, 0.0  ;;  %v931_v47 = vsel %vm730_vm6, %v2817_v40, 477.0 }
 0x12d   :  { %v3796_v11 = vmin.f32 %v1191_v32, %v930_v53  ;;  %v1170_v21 = vmin.f32 %v3124_v22, %v3120_v48  ;;  %v1480_v43 = vperm.slane %v471_v33, 0  ;;  %v1481_v7 = vperm.slane %v471_v33, 4  ;;  %v5412_v53 = vld [vmem:[#allocation9_spill] sm:$0xff] }
 0x12e   :  { %1177 = vmin.xlane.f32.xlu1 %v1176_v15  ;;  %v3801_v1 = vsel %vm990_vm5, %v935_v19, inf  ;;  %v1188_v57 = vmin.f32 %v3755_v8, %v3784_v34  ;;  %vm743_vm0 = vcmp.eq.s32.totalorder %v2975_v35, %v3481_v59  ;;  %v1206_v56 = vmin.f32 %v3765_v54, %v3788_v61 }
 0x12f   :  { %v1200_v23 = vmin.f32 %v3778_v20, %v3801_v1  ;;  %v1482_v31 = vperm.slane %v472_v60, 0  ;;  %v1483_v17 = vperm.slane %v472_v60, 4  ;;  %v3812_v28 = vsel %vm990_vm5, %v931_v47, inf }
 0x130   :  { %vm744_vm7 = vcmp.eq.s32.totalorder %v2978_v41, %v3481_v59  ;;  %v1194_v51 = vmin.f32 %v3796_v11, %v3812_v28  ;;  %vm745_vm3 = vcmp.eq.s32.totalorder %v2997_v4, %v3481_v59  ;;  %vm739_vm12 = vcmp.eq.s32.totalorder %v2975_v35, %v3371_v58 }
 0x131   :  { %vm740_vm13 = vcmp.eq.s32.totalorder %v2978_v41, %v3371_v58  ;;  %1147 = vmin.xlane.f32.xlu2 %v1146_v38  ;;  %v3824_v29 = vperm.slane %v1480_v43, 0  ;;  %v3826_v25 = vperm.slane %v1481_v7, 0  ;;  %vm746_vm14 = vcmp.eq.s32.totalorder %v3002_v10, %v3481_v59 }
 0x132   :  { %v944_v3 = vsel %vm743_vm0, %v2795_v26, 477.0  ;;  %vm741_vm4 = vcmp.eq.s32.totalorder %v2997_v4, %v3371_v58  ;;  %vm1292_vm8 = vcmp.eq.f32.partialorder %v2795_v26, %v1006_v0  ;;  %vm1293_vm9 = vcmp.eq.f32.partialorder %v2802_v30, %v1006_v0 }
 0x133   :  { %vm1295_vm15 = vcmp.eq.f32.partialorder %v2817_v40, %v1006_v0  ;;  %v945_v63 = vsel %vm744_vm7, %v2802_v30, 477.0  ;;  %v3837_v24 = vperm.slane %v1482_v31, 0  ;;  %v3839_v14 = vperm.slane %v1483_v17, 0 }
 0x134   :  { %v994_v6 = vpop.xlane.xlu1 %993  ;;  %vm755_vm11 = vcmp.eq.s32.totalorder %v2975_v35, %v5411_v2  ;;  %vm756_vm10 = vcmp.eq.s32.totalorder %v2978_v41, %v5411_v2  ;;  %v1512_v39 = vsel %vm1292_vm8, %v3824_v29, 0.0  ;;  %v1513_v46 = vsel %vm1293_vm9, %v3826_v25, 0.0 }
 0x135   :  { %vm1284_vm2 = vcmp.eq.f32.partialorder %v2795_v26, %v994_v6  ;;  %vm1285_vm6 = vcmp.eq.f32.partialorder %v2802_v30, %v994_v6  ;;  %vm1286_vm0 = vcmp.eq.f32.partialorder %v2815_v36, %v994_v6  ;;  %vm1287_vm1 = vcmp.eq.f32.partialorder %v2817_v40, %v994_v6 }
 0x136   :  { %v1504_v9 = vsel %vm1284_vm2, %v3824_v29, 0.0  ;;  %v1505_v50 = vsel %vm1285_vm6, %v3826_v25, 0.0  ;;  %v1507_v44 = vsel %vm1287_vm1, %v3839_v14, 0.0  ;;  %v940_v45 = vsel %vm739_vm12, %v2795_v26, 477.0 }
 0x137   :  { %v1696_v16 = vadd.f32 %v1505_v50, %v1504_v9  ;;  %v941_v18 = vsel %vm740_vm13, %v2802_v30, 477.0  ;;  %v1506_v5 = vsel %vm1286_vm0, %v3837_v24, 0.0  ;;  %v1215_v12 = vmin.f32 %v944_v3, %v945_v63 }
 0x138   :  { %v956_v27 = vsel %vm755_vm11, %v2795_v26, 477.0  ;;  %v957_v62 = vsel %vm756_vm10, %v2802_v30, 477.0  ;;  %v946_v37 = vsel %vm745_vm3, %v2815_v36, 477.0  ;;  %v947_v13 = vsel %vm746_vm14, %v2817_v40, 477.0 }
 0x139   :  { %v1697_v32 = vadd.f32 %v1696_v16, %v1506_v5  ;;  %vm742_vm1 = vcmp.eq.s32.totalorder %v3002_v10, %v3371_v58  ;;  %1153 = vmin.xlane.f32.xlu2 %v1152_v52  ;;  %v1698_v55 = vsel %vm990_vm5, %v1507_v44, 0.0  ;;  %vm1294_vm7 = vcmp.eq.f32.partialorder %v2815_v36, %v1006_v0 }
 0x13a   :  { %v1708_v42 = vadd.f32 %v1513_v46, %v1512_v39  ;;  %v1209_v15 = vmin.f32 %v940_v45, %v941_v18  ;;  %v1515_v19 = vsel %vm1295_vm15, %v3839_v14, 0.0  ;;  %vm757_vm3 = vcmp.eq.s32.totalorder %v2997_v4, %v5411_v2  ;;  %v5413_v39 = vld [vmem:[#allocation10_spill] sm:$0xff] }
 0x13b   :  { %v1699_v33 = vadd.f32 %v1698_v55, %v1697_v32  ;;  %v1233_v59 = vmin.f32 %v956_v27, %v957_v62  ;;  %v3888_v38 = vmin.f32 %v1215_v12, %v946_v37  ;;  %vm758_vm12 = vcmp.eq.s32.totalorder %v3002_v10, %v5411_v2 }
 0x13c   :  { %vm747_vm13 = vcmp.eq.s32.totalorder %v2975_v35, %v5412_v53  ;;  %vm748_vm14 = vcmp.eq.s32.totalorder %v2978_v41, %v5412_v53  ;;  %v1514_v52 = vsel %vm1294_vm7, %v3837_v24, 0.0  ;;  %v3898_v60 = vsel %vm990_vm5, %v947_v13, inf  ;;  %v3908_v7 = vpop.xlane.xlu1 %1011 }
 0x13d   :  { %1700 = vadd.xlane.f32.xlu0 %v1699_v33  ;;  %v942_v47 = vsel %vm741_vm4, %v2815_v36, 477.0  ;;  %v943_v43 = vsel %vm742_vm1, %v2817_v40, 477.0  ;;  %v1709_v0 = vadd.f32 %v1708_v42, %v1514_v52  ;;  %v1710_v31 = vsel %vm990_vm5, %v1515_v19, 0.0 }
 0x13e   :  { %v3911_v17 = vmin.f32 %v1209_v15, %v942_v47  ;;  %v958_v3 = vsel %vm757_vm3, %v2815_v36, 477.0  ;;  %v959_v63 = vsel %vm758_vm12, %v2817_v40, 477.0  ;;  %v948_v2 = vsel %vm747_vm13, %v2795_v26, 477.0 }
 0x13f   :  { %v3915_v6 = vmin.f32 %v1233_v59, %v958_v3  ;;  %v949_v9 = vsel %vm748_vm14, %v2802_v30, 477.0  ;;  %v1218_v58 = vmin.f32 %v3888_v38, %v3898_v60  ;;  %v3922_v50 = vsel %vm990_vm5, %v943_v43, inf  ;;  %v5414_v43 = vld [vmem:[#allocation11_spill] sm:$0xff] }
 0x140   :  { %vm749_vm4 = vcmp.eq.s32.totalorder %v2997_v4, %v5412_v53  ;;  %vm750_vm8 = vcmp.eq.s32.totalorder %v3002_v10, %v5412_v53  ;;  %vm1296_vm9 = vcmp.eq.f32.partialorder %v2795_v26, %v3908_v7  ;;  %vm1297_vm15 = vcmp.eq.f32.partialorder %v2802_v30, %v3908_v7 }
 0x141   :  { %vm759_vm11 = vcmp.eq.s32.totalorder %v2975_v35, %v5413_v39  ;;  %vm760_vm10 = vcmp.eq.s32.totalorder %v2978_v41, %v5413_v39  ;;  %1171 = vmin.xlane.f32.xlu2 %v1170_v21  ;;  %v1711_v46 = vadd.f32 %v1710_v31, %v1709_v0  ;;  %v1212_v44 = vmin.f32 %v3911_v17, %v3922_v50  ;;  %v1000_v48 = vpop.xlane.xlu0 %999 }
 0x142   :  { %v3942_v16 = vsel %vm990_vm5, %v959_v63, inf  ;;  %v1221_v45 = vmin.f32 %v948_v2, %v949_v9  ;;  %v950_v5 = vsel %vm749_vm4, %v2815_v36, 477.0  ;;  %v951_v12 = vsel %vm750_vm8, %v2817_v40, 477.0 }
 0x143   :  { %v1236_v18 = vmin.f32 %v3915_v6, %v3942_v16  ;;  %vm762_vm2 = vcmp.eq.s32.totalorder %v3002_v10, %v5413_v39  ;;  %v1516_v22 = vsel %vm1296_vm9, %v3824_v29, 0.0  ;;  %v1517_v21 = vsel %vm1297_vm15, %v3826_v25, 0.0 }
 0x144   :  { %v960_v27 = vsel %vm759_vm11, %v2795_v26, 477.0  ;;  %v961_v62 = vsel %vm760_vm10, %v2802_v30, 477.0  ;;  %vm1288_vm6 = vcmp.eq.f32.partialorder %v2795_v26, %v1000_v48  ;;  %vm1289_vm0 = vcmp.eq.f32.partialorder %v2802_v30, %v1000_v48 }
 0x145   :  { %1712 = vadd.xlane.f32.xlu0 %v1711_v46  ;;  %vm1290_vm1 = vcmp.eq.f32.partialorder %v2815_v36, %v1000_v48  ;;  %vm1291_vm7 = vcmp.eq.f32.partialorder %v2817_v40, %v1000_v48  ;;  %v1508_v32 = vsel %vm1288_vm6, %v3824_v29, 0.0  ;;  %v1509_v37 = vsel %vm1289_vm0, %v3826_v25, 0.0 }
 0x146   :  { %v3960_v13 = vmin.f32 %v1221_v45, %v950_v5  ;;  %vm761_vm3 = vcmp.eq.s32.totalorder %v2997_v4, %v5413_v39  ;;  %v1511_v55 = vsel %vm1291_vm7, %v3839_v14, 0.0  ;;  %v1702_v42 = vadd.f32 %v1509_v37, %v1508_v32  ;;  %v5415_v45 = vld [vmem:[#allocation13_spill] sm:$0xff] }
 0x147   :  { %v3966_v15 = vsel %vm990_vm5, %v951_v12, inf  ;;  %v963_v33 = vsel %vm762_vm2, %v2817_v40, 477.0  ;;  %v1510_v19 = vsel %vm1290_vm1, %v3837_v24, 0.0  ;;  %vm1298_vm12 = vcmp.eq.f32.partialorder %v2815_v36, %v3908_v7 }
 0x148   :  { %v1714_v59 = vadd.f32 %v1517_v21, %v1516_v22  ;;  %v1239_v53 = vmin.f32 %v960_v27, %v961_v62  ;;  %v1703_v52 = vadd.f32 %v1702_v42, %v1510_v19  ;;  %vm1299_vm13 = vcmp.eq.f32.partialorder %v2817_v40, %v3908_v7 }
 0x149   :  { %v962_v47 = vsel %vm761_vm3, %v2815_v36, 477.0  ;;  %vm771_vm14 = vcmp.eq.s32.totalorder %v2975_v35, %v5414_v43  ;;  %1189 = vmin.xlane.f32.xlu2 %v1188_v57  ;;  %v1704_v0 = vsel %vm990_vm5, %v1511_v55, 0.0  ;;  %v1224_v31 = vmin.f32 %v3960_v13, %v3966_v15  ;;  %s2477_s1 = spop %2476  ;;  %v1024_v8 = vpop.xlane.xlu0 %1023 }
 0x14a   :  { %v3987_v3 = vsel %vm990_vm5, %v963_v33, inf  ;;  %vm772_vm4 = vcmp.eq.s32.totalorder %v2978_v41, %v5414_v43  ;;  %v1705_v7 = vadd.f32 %v1704_v0, %v1703_v52  ;;  %v1518_v63 = vsel %vm1298_vm12, %v3837_v24, 0.0  ;;  %s3997_s2 = smul.f32 %s2477_s1, %s3502_s19 }
 0x14b   :  { %vm773_vm8 = vcmp.eq.s32.totalorder %v2997_v4, %v5414_v43  ;;  %vm774_vm9 = vcmp.eq.s32.totalorder %v3002_v10, %v5414_v43  ;;  %v1519_v34 = vsel %vm1299_vm13, %v3839_v14, 0.0  ;;  %v1715_v57 = vadd.f32 %v1714_v59, %v1518_v63  ;;  %v5416_v59 = vld [vmem:[#allocation12_spill] sm:$0xff] }
 0x14c   :  { %v4000_v2 = vmin.f32 %v1239_v53, %v962_v47  ;;  %v972_v9 = vsel %vm771_vm14, %v2795_v26, 477.0  ;;  %vm1304_vm15 = vcmp.eq.f32.partialorder %v2795_v26, %v1024_v8  ;;  %vm1305_vm11 = vcmp.eq.f32.partialorder %v2802_v30, %v1024_v8  ;;  %1706 = vadd.xlane.f32.xlu1 %v1705_v7  ;;  %s2416_s3 = sadd.f32 %s3489_s18, %s3997_s2 }
 0x14d   :  { %vm1306_vm10 = vcmp.eq.f32.partialorder %v2815_v36, %v1024_v8  ;;  %vm1307_vm2 = vcmp.eq.f32.partialorder %v2817_v40, %v1024_v8  ;;  %v1524_v39 = vsel %vm1304_vm15, %v3824_v29, 0.0  ;;  %v1525_v46 = vsel %vm1305_vm11, %v3826_v25, 0.0  ;;  %2429 = sst [smem:[#allocation2 + $0x4]] %s3997_s2 }
 0x14e   :  { %vm751_vm6 = vcmp.eq.s32.totalorder %v2975_v35, %v5415_v45  ;;  %vm752_vm0 = vcmp.eq.s32.totalorder %v2978_v41, %v5415_v45  ;;  %v1716_v5 = vsel %vm990_vm5, %v1519_v34, 0.0  ;;  %v1527_v12 = vsel %vm1307_vm2, %v3839_v14, 0.0 }
 0x14f   :  { %v1726_v48 = vadd.f32 %v1525_v46, %v1524_v39  ;;  %v973_v22 = vsel %vm772_vm4, %v2802_v30, 477.0  ;;  %v1717_v21 = vadd.f32 %v1716_v5, %v1715_v57  ;;  %v1526_v27 = vsel %vm1306_vm10, %v3837_v24, 0.0 }
 0x150   :  { %v974_v62 = vsel %vm773_vm8, %v2815_v36, 477.0  ;;  %v975_v32 = vsel %vm774_vm9, %v2817_v40, 477.0  ;;  %vm754_vm1 = vcmp.eq.s32.totalorder %v3002_v10, %v5415_v45  ;;  %v952_v55 = vsel %vm751_vm6, %v2795_v26, 477.0 }
 0x151   :  { %v1727_v37 = vadd.f32 %v1726_v48, %v1526_v27  ;;  %v953_v42 = vsel %vm752_vm0, %v2802_v30, 477.0  ;;  %1718 = vadd.xlane.f32.xlu2 %v1717_v21  ;;  %v1728_v33 = vsel %vm990_vm5, %v1527_v12, 0.0  ;;  %v1257_v19 = vmin.f32 %v972_v9, %v973_v22  ;;  %v1042_v43 = vpop.xlane.xlu0 %1041 }
 0x152   :  { %vm783_vm7 = vcmp.eq.s32.totalorder %v2975_v35, %v5416_v59  ;;  %vm784_vm3 = vcmp.eq.s32.totalorder %v2978_v41, %v5416_v59  ;;  %v1242_v52 = vmin.f32 %v4000_v2, %v3987_v3  ;;  %v4046_v47 = vsel %vm990_vm5, %v975_v32, inf  ;;  %v5425_v3 = vld [vmem:[#allocation5_spill] sm:$0xff] }
 0x153   :  { %v1729_v53 = vadd.f32 %v1728_v33, %v1727_v37  ;;  %vm785_vm12 = vcmp.eq.s32.totalorder %v2997_v4, %v5416_v59  ;;  %vm753_vm13 = vcmp.eq.s32.totalorder %v2997_v4, %v5415_v45  ;;  %v955_v0 = vsel %vm754_vm1, %v2817_v40, 477.0 }
 0x154   :  { %v1227_v7 = vmin.f32 %v952_v55, %v953_v42  ;;  %vm786_vm14 = vcmp.eq.s32.totalorder %v3002_v10, %v5416_v59  ;;  %vm1316_vm4 = vcmp.eq.f32.partialorder %v2795_v26, %v1042_v43  ;;  %vm1317_vm8 = vcmp.eq.f32.partialorder %v2802_v30, %v1042_v43 }
 0x155   :  { %1730 = vadd.xlane.f32.xlu0 %v1729_v53  ;;  %v1018_v63 = vpop.xlane.xlu2 %1017  ;;  %vm1318_vm9 = vcmp.eq.f32.partialorder %v2815_v36, %v1042_v43  ;;  %vm1319_vm15 = vcmp.eq.f32.partialorder %v2817_v40, %v1042_v43  ;;  %v1536_v8 = vsel %vm1316_vm4, %v3824_v29, 0.0  ;;  %v1537_v34 = vsel %vm1317_vm8, %v3826_v25, 0.0 }
 0x156   :  { %vm1300_vm11 = vcmp.eq.f32.partialorder %v2795_v26, %v1018_v63  ;;  %vm1301_vm10 = vcmp.eq.f32.partialorder %v2802_v30, %v1018_v63  ;;  %v1539_v57 = vsel %vm1319_vm15, %v3839_v14, 0.0  ;;  %v1744_v9 = vadd.f32 %v1537_v34, %v1536_v8 }
 0x157   :  { %vm1302_vm2 = vcmp.eq.f32.partialorder %v2815_v36, %v1018_v63  ;;  %v4065_v39 = vmin.f32 %v1257_v19, %v974_v62  ;;  %v1538_v46 = vsel %vm1318_vm9, %v3837_v24, 0.0  ;;  %vm1303_vm6 = vcmp.eq.f32.partialorder %v2817_v40, %v1018_v63 }
 0x158   :  { %v1520_v5 = vsel %vm1300_vm11, %v3824_v29, 0.0  ;;  %v1521_v12 = vsel %vm1301_vm10, %v3826_v25, 0.0  ;;  %v1745_v48 = vadd.f32 %v1744_v9, %v1538_v46  ;;  %v1523_v22 = vsel %vm1303_vm6, %v3839_v14, 0.0 }
 0x159   :  { %v1720_v21 = vadd.f32 %v1521_v12, %v1520_v5  ;;  %v954_v27 = vsel %vm753_vm13, %v2815_v36, 477.0  ;;  %v1746_v62 = vsel %vm990_vm5, %v1539_v57, 0.0  ;;  %v1522_v32 = vsel %vm1302_vm2, %v3837_v24, 0.0  ;;  %v1060_v53 = vpop.xlane.xlu0 %1059 }
 0x15a   :  { %v4079_v37 = vsel %vm990_vm5, %v955_v0, inf  ;;  %v984_v55 = vsel %vm783_vm7, %v2795_v26, 477.0  ;;  %v1747_v42 = vadd.f32 %v1746_v62, %v1745_v48  ;;  %v4085_v19 = vmin.f32 %v1227_v7, %v954_v27 }
 0x15b   :  { %v1721_v33 = vadd.f32 %v1720_v21, %v1522_v32  ;;  %v985_v45 = vsel %vm784_vm3, %v2802_v30, 477.0  ;;  %v1722_v43 = vsel %vm990_vm5, %v1523_v22, 0.0  ;;  %v1260_v0 = vmin.f32 %v4065_v39, %v4046_v47 }
 0x15c   :  { %v986_v63 = vsel %vm785_vm12, %v2815_v36, 477.0  ;;  %v4102_v7 = vsel %vm786_vm14, %v2817_v40, 477.0  ;;  %vm1328_vm0 = vcmp.eq.f32.partialorder %v2795_v26, %v1060_v53  ;;  %vm1329_vm1 = vcmp.eq.f32.partialorder %v2802_v30, %v1060_v53 }
 0x15d   :  { %1748 = vadd.xlane.f32.xlu0 %v1747_v42  ;;  %v1030_v8 = vpop.xlane.xlu1 %1029  ;;  %v1036_v34 = vpop.xlane.xlu2 %1035  ;;  %v1723_v57 = vadd.f32 %v1722_v43, %v1721_v33  ;;  %vm5417_vm7 = vcmask 1041408   ;;  %vm1330_vm15 = vcmp.eq.f32.partialorder %v2815_v36, %v1060_v53  ;;  %vm1331_vm10 = vcmp.eq.f32.partialorder %v2817_v40, %v1060_v53 }
 0x15e   :  { %v4107_v9 = vsel %vm5417_vm7, %v984_v55, inf  ;;  %vm1308_vm3 = vcmp.eq.f32.partialorder %v2795_v26, %v1030_v8  ;;  %vm1309_vm12 = vcmp.eq.f32.partialorder %v2802_v30, %v1030_v8  ;;  %vm1312_vm13 = vcmp.eq.f32.partialorder %v2795_v26, %v1036_v34  ;;  %vm5418_vm2 = vmmov %vm5417_vm7 }
 0x15f   :  { %vm1313_vm14 = vcmp.eq.f32.partialorder %v2802_v30, %v1036_v34  ;;  %1724 = vadd.xlane.f32.xlu1 %v1723_v57  ;;  %vm1310_vm4 = vcmp.eq.f32.partialorder %v2815_v36, %v1030_v8  ;;  %vm1311_vm8 = vcmp.eq.f32.partialorder %v2817_v40, %v1030_v8  ;;  %v1528_v59 = vsel %vm1308_vm3, %v3824_v29, 0.0  ;;  %vm5419_vm6 = vmmov %vm5418_vm2 }
 0x160   :  { %v1529_v46 = vsel %vm1309_vm12, %v3826_v25, 0.0  ;;  %v1531_v5 = vsel %vm1311_vm8, %v3839_v14, 0.0  ;;  %vm1314_vm9 = vcmp.eq.f32.partialorder %v2815_v36, %v1036_v34  ;;  %v1530_v48 = vsel %vm1310_vm4, %v3837_v24, 0.0 }
 0x161   :  { %v1732_v12 = vadd.f32 %v1529_v46, %v1528_v59  ;;  %vm1315_vm11 = vcmp.eq.f32.partialorder %v2817_v40, %v1036_v34  ;;  %v1532_v22 = vsel %vm1312_vm13, %v3824_v29, 0.0  ;;  %v1533_v21 = vsel %vm1313_vm14, %v3826_v25, 0.0 }
 0x162   :  { %v1734_v62 = vsel %vm990_vm5, %v1531_v5, 0.0  ;;  %v1535_v32 = vsel %vm1315_vm11, %v3839_v14, 0.0  ;;  %v1738_v55 = vadd.f32 %v1533_v21, %v1532_v22  ;;  %v1534_v42 = vsel %vm1314_vm9, %v3837_v24, 0.0 }
 0x163   :  { %v1733_v27 = vadd.f32 %v1732_v12, %v1530_v48  ;;  %v1548_v33 = vsel %vm1328_vm0, %v3824_v29, 0.0  ;;  %v1549_v43 = vsel %vm1329_vm1, %v3826_v25, 0.0  ;;  %v4135_v57 = vsel %vm5418_vm2, %v985_v45, inf  ;;  %v5420_v48 = vld [vmem:[#allocation14_spill] sm:$0xff] }
 0x164   :  { %v1739_v34 = vadd.f32 %v1738_v55, %v1534_v42  ;;  %v4138_v59 = vsel %vm5419_vm6, %v986_v63, inf  ;;  %v1740_v5 = vsel %vm990_vm5, %v1535_v32, 0.0  ;;  %v1762_v12 = vadd.f32 %v1549_v43, %v1548_v33 }
 0x165   :  { %v1735_v8 = vadd.f32 %v1734_v62, %v1733_v27  ;;  %1201 = vmin.xlane.f32.xlu0 %v1200_v23  ;;  %v1048_v46 = vpop.xlane.xlu1 %1047  ;;  %vm763_vm0 = vcmp.eq.s32.totalorder %v2975_v35, %v5420_v48  ;;  %vm764_vm1 = vcmp.eq.s32.totalorder %v2978_v41, %v5420_v48  ;;  %v1054_v45 = vpop.xlane.xlu2 %1053  ;;  %v1550_v20 = vsel %vm1330_vm15, %v3837_v24, 0.0 }
 0x166   :  { %vm1320_vm7 = vcmp.eq.f32.partialorder %v2795_v26, %v1048_v46  ;;  %vm1321_vm3 = vcmp.eq.f32.partialorder %v2802_v30, %v1048_v46  ;;  %v1551_v1 = vsel %vm1331_vm10, %v3839_v14, 0.0  ;;  %v1741_v23 = vadd.f32 %v1740_v5, %v1739_v34  ;;  %v1078_v62 = vpop.xlane.xlu0 %1077  ;;  %v5421_v34 = vld [vmem:[#allocation17_spill] sm:$0xff] }
 0x167   :  { %1736 = vadd.xlane.f32.xlu2 %v1735_v8  ;;  %v1763_v63 = vadd.f32 %v1762_v12, %v1550_v20  ;;  %vm1322_vm12 = vcmp.eq.f32.partialorder %v2815_v36, %v1048_v46  ;;  %vm1323_vm13 = vcmp.eq.f32.partialorder %v2817_v40, %v1048_v46  ;;  %v1540_v22 = vsel %vm1320_vm7, %v3824_v29, 0.0 }
 0x168   :  { %v1541_v21 = vsel %vm1321_vm3, %v3826_v25, 0.0  ;;  %vm765_vm14 = vcmp.eq.s32.totalorder %v2997_v4, %v5420_v48  ;;  %vm766_vm4 = vcmp.eq.s32.totalorder %v3002_v10, %v5420_v48  ;;  %vm1324_vm8 = vcmp.eq.f32.partialorder %v2795_v26, %v1054_v45  ;;  %1742 = vadd.xlane.f32.xlu1 %v1741_v23 }
 0x169   :  { %vm1325_vm9 = vcmp.eq.f32.partialorder %v2802_v30, %v1054_v45  ;;  %v1543_v53 = vsel %vm1323_vm13, %v3839_v14, 0.0  ;;  %v1750_v27 = vadd.f32 %v1541_v21, %v1540_v22  ;;  %v1764_v32 = vsel %vm990_vm5, %v1551_v1, 0.0 }
 0x16a   :  { %v1542_v55 = vsel %vm1322_vm12, %v3837_v24, 0.0  ;;  %v964_v42 = vsel %vm763_vm0, %v2795_v26, 477.0  ;;  %v965_v33 = vsel %vm764_vm1, %v2802_v30, 477.0  ;;  %v1765_v43 = vadd.f32 %v1764_v32, %v1763_v63 }
 0x16b   :  { %v1751_v8 = vadd.f32 %v1750_v27, %v1542_v55  ;;  %vm767_vm15 = vcmp.eq.s32.totalorder %v2975_v35, %v5421_v34  ;;  %vm768_vm11 = vcmp.eq.s32.totalorder %v2978_v41, %v5421_v34  ;;  %v1752_v46 = vsel %vm990_vm5, %v1543_v53, 0.0 }
 0x16c   :  { %v1544_v5 = vsel %vm1324_vm8, %v3824_v29, 0.0  ;;  %v1545_v12 = vsel %vm1325_vm9, %v3826_v25, 0.0  ;;  %v1230_v20 = vmin.f32 %v4085_v19, %v4079_v37  ;;  %vm1340_vm10 = vcmp.eq.f32.partialorder %v2795_v26, %v1078_v62 }
 0x16d   :  { %vm1341_vm2 = vcmp.eq.f32.partialorder %v2802_v30, %v1078_v62  ;;  %1766 = vadd.xlane.f32.xlu0 %v1765_v43  ;;  %v1066_v1 = vpop.xlane.xlu1 %1065  ;;  %v1753_v23 = vadd.f32 %v1752_v46, %v1751_v8  ;;  %v967_v63 = vsel %vm766_vm4, %v2817_v40, 477.0  ;;  %v968_v22 = vsel %vm767_vm15, %v2795_v26, 477.0 }
 0x16e   :  { %v969_v21 = vsel %vm768_vm11, %v2802_v30, 477.0  ;;  %v966_v53 = vsel %vm765_vm14, %v2815_v36, 477.0  ;;  %v1245_v27 = vmin.f32 %v964_v42, %v965_v33  ;;  %vm1332_vm6 = vcmp.eq.f32.partialorder %v2795_v26, %v1066_v1  ;;  %v4250_v38 = vpop.xlane.xlu0 %1095 }
 0x16f   :  { %vm1333_vm0 = vcmp.eq.f32.partialorder %v2802_v30, %v1066_v1  ;;  %1754 = vadd.xlane.f32.xlu2 %v1753_v23  ;;  %vm1326_vm1 = vcmp.eq.f32.partialorder %v2815_v36, %v1054_v45  ;;  %v1756_v32 = vadd.f32 %v1545_v12, %v1544_v5  ;;  %vm1327_vm7 = vcmp.eq.f32.partialorder %v2817_v40, %v1054_v45 }
 0x170   :  { %v1560_v55 = vsel %vm1340_vm10, %v3824_v29, 0.0  ;;  %v1561_v48 = vsel %vm1341_vm2, %v3826_v25, 0.0  ;;  %v4209_v42 = vsel %vm990_vm5, %v967_v63, inf  ;;  %1195 = vmin.xlane.f32.xlu1 %v1194_v51  ;;  %vm769_vm3 = vcmp.eq.s32.totalorder %v2997_v4, %v5421_v34 }
 0x171   :  { %vm770_vm12 = vcmp.eq.s32.totalorder %v3002_v10, %v5421_v34  ;;  %v1277_v45 = vmin.f32 %v4107_v9, %v4135_v57  ;;  %vm5422_vm13 = vcmask 762880   ;;  %v1546_v43 = vsel %vm1326_vm1, %v3837_v24, 0.0 }
 0x172   :  { %v4222_v33 = vsel %vm5422_vm13, %v4102_v7, inf  ;;  %v1552_v8 = vsel %vm1332_vm6, %v3824_v29, 0.0  ;;  %v1553_v11 = vsel %vm1333_vm0, %v3826_v25, 0.0  ;;  %v1251_v28 = vmin.f32 %v968_v22, %v969_v21  ;;  %v5423_v7 = vld [vmem:[#allocation16_spill] sm:$0xff] }
 0x173   :  { %v1547_v51 = vsel %vm1327_vm7, %v3839_v14, 0.0  ;;  %v1757_v46 = vadd.f32 %v1756_v32, %v1546_v43  ;;  %vm1342_vm14 = vcmp.eq.f32.partialorder %v2815_v36, %v1078_v62  ;;  %v1780_v5 = vadd.f32 %v1561_v48, %v1560_v55 }
 0x174   :  { %vm1343_vm4 = vcmp.eq.f32.partialorder %v2817_v40, %v1078_v62  ;;  %v970_v9 = vsel %vm769_vm3, %v2815_v36, 477.0  ;;  %v4231_v57 = vmin.f32 %v1245_v27, %v966_v53  ;;  %vm775_vm8 = vcmp.eq.s32.totalorder %v2975_v35, %v5423_v7 }
 0x175   :  { %1219 = vmin.xlane.f32.xlu0 %v1218_v58  ;;  %vm1334_vm9 = vcmp.eq.f32.partialorder %v2815_v36, %v1066_v1  ;;  %v1768_v12 = vadd.f32 %v1553_v11, %v1552_v8  ;;  %v971_v23 = vsel %vm770_vm12, %v2817_v40, 477.0  ;;  %vm776_vm15 = vcmp.eq.s32.totalorder %v2978_v41, %v5423_v7  ;;  %v4284_v43 = vpop.xlane.xlu1 %1083 }
 0x176   :  { %v1758_v63 = vsel %vm990_vm5, %v1547_v51, 0.0  ;;  %v1562_v22 = vsel %vm1342_vm14, %v3837_v24, 0.0  ;;  %vm1335_vm11 = vcmp.eq.f32.partialorder %v2817_v40, %v1066_v1  ;;  %vm777_vm10 = vcmp.eq.s32.totalorder %v2997_v4, %v5423_v7 }
 0x177   :  { %1207 = vmin.xlane.f32.xlu2 %v1206_v56  ;;  %v1759_v60 = vadd.f32 %v1758_v63, %v1757_v46  ;;  %v1563_v58 = vsel %vm1343_vm4, %v3839_v14, 0.0  ;;  %v1781_v34 = vadd.f32 %v1780_v5, %v1562_v22  ;;  %v4258_v21 = vmin.f32 %v1251_v28, %v970_v9 }
 0x178   :  { %v1554_v53 = vsel %vm1334_vm9, %v3837_v24, 0.0  ;;  %vm778_vm2 = vcmp.eq.s32.totalorder %v3002_v10, %v5423_v7  ;;  %v976_v1 = vsel %vm775_vm8, %v2795_v26, 477.0  ;;  %v977_v54 = vsel %vm776_vm15, %v2802_v30, 477.0 }
 0x179   :  { %1760 = vadd.xlane.f32.xlu1 %v1759_v60  ;;  %v1555_v61 = vsel %vm1335_vm11, %v3839_v14, 0.0  ;;  %v1769_v56 = vadd.f32 %v1768_v12, %v1554_v53  ;;  %v1248_v62 = vmin.f32 %v4231_v57, %v4209_v42  ;;  %v4272_v27 = vmin.f32 %v1277_v45, %v4138_v59 }
 0x17a   :  { %vm1352_vm6 = vcmp.eq.f32.partialorder %v2795_v26, %v4250_v38  ;;  %v1782_v32 = vsel %vm990_vm5, %v1563_v58, 0.0  ;;  %v4278_v55 = vsel %vm990_vm5, %v971_v23, inf  ;;  %v978_v48 = vsel %vm777_vm10, %v2815_v36, 477.0  ;;  %v1072_v51 = vpop.xlane.xlu2 %1071 }
 0x17b   :  { %v1783_v8 = vadd.f32 %v1782_v32, %v1781_v34  ;;  %v1254_v59 = vmin.f32 %v4258_v21, %v4278_v55  ;;  %v979_v45 = vsel %vm778_vm2, %v2817_v40, 477.0  ;;  %v1263_v11 = vmin.f32 %v976_v1, %v977_v54 }
 0x17c   :  { %vm1353_vm0 = vcmp.eq.f32.partialorder %v2802_v30, %v4250_v38  ;;  %v1770_v28 = vsel %vm990_vm5, %v1555_v61, 0.0  ;;  %vm779_vm1 = vcmp.eq.s32.totalorder %v2975_v35, %v3652_v49  ;;  %vm780_vm7 = vcmp.eq.s32.totalorder %v2978_v41, %v3652_v49  ;;  %v4339_v41 = vpop.xlane.xlu0 %1113 }
 0x17d   :  { %1784 = vadd.xlane.f32.xlu0 %v1783_v8  ;;  %v1771_v46 = vadd.f32 %v1770_v28, %v1769_v56  ;;  %v1572_v5 = vsel %vm1352_vm6, %v3824_v29, 0.0  ;;  %vm781_vm3 = vcmp.eq.s32.totalorder %v2997_v4, %v3652_v49  ;;  %vm782_vm12 = vcmp.eq.s32.totalorder %v3002_v10, %v3652_v49  ;;  %v4354_v54 = vpop.xlane.xlu1 %1101 }
 0x17e   :  { %vm1344_vm13 = vcmp.eq.f32.partialorder %v2795_v26, %v4284_v43  ;;  %vm1345_vm14 = vcmp.eq.f32.partialorder %v2802_v30, %v4284_v43  ;;  %vm1336_vm4 = vcmp.eq.f32.partialorder %v2795_v26, %v1072_v51  ;;  %vm1337_vm8 = vcmp.eq.f32.partialorder %v2802_v30, %v1072_v51 }
 0x17f   :  { %1772 = vadd.xlane.f32.xlu2 %v1771_v46  ;;  %vm1338_vm9 = vcmp.eq.f32.partialorder %v2815_v36, %v1072_v51  ;;  %v1556_v9 = vsel %vm1336_vm4, %v3824_v29, 0.0  ;;  %v1557_v7 = vsel %vm1337_vm8, %v3826_v25, 0.0  ;;  %v1573_v12 = vsel %vm1353_vm0, %v3826_v25, 0.0 }
 0x180   :  { %vm1339_vm15 = vcmp.eq.f32.partialorder %v2817_v40, %v1072_v51  ;;  %v1774_v23 = vadd.f32 %v1557_v7, %v1556_v9  ;;  %v980_v63 = vsel %vm779_vm1, %v2795_v26, 477.0  ;;  %v981_v22 = vsel %vm780_vm7, %v2802_v30, 477.0 }
 0x181   :  { %1213 = vmin.xlane.f32.xlu1 %v1212_v44  ;;  %v1564_v60 = vsel %vm1344_vm13, %v3824_v29, 0.0  ;;  %v1565_v58 = vsel %vm1345_vm14, %v3826_v25, 0.0  ;;  %v982_v34 = vsel %vm781_vm3, %v2815_v36, 477.0  ;;  %v983_v35 = vsel %vm782_vm12, %v2817_v40, 477.0 }
 0x182   :  { %v1558_v53 = vsel %vm1338_vm9, %v3837_v24, 0.0  ;;  %vm1354_vm11 = vcmp.eq.f32.partialorder %v2815_v36, %v4250_v38  ;;  %vm1355_vm10 = vcmp.eq.f32.partialorder %v2817_v40, %v4250_v38  ;;  %v1798_v17 = vadd.f32 %v1573_v12, %v1572_v5 }
 0x183   :  { %v1559_v50 = vsel %vm1339_vm15, %v3839_v14, 0.0  ;;  %v1775_v4 = vadd.f32 %v1774_v23, %v1558_v53  ;;  %v1269_v44 = vmin.f32 %v980_v63, %v981_v22  ;;  %vm1346_vm2 = vcmp.eq.f32.partialorder %v2815_v36, %v4284_v43  ;;  %v1090_v61 = vpop.xlane.xlu2 %1089 }
 0x184   :  { %v1786_v10 = vadd.f32 %v1565_v58, %v1564_v60  ;;  %v4349_v49 = vmin.f32 %v1263_v11, %v978_v48  ;;  %v4352_v1 = vsel %vm990_vm5, %v979_v45, inf  ;;  %v1574_v38 = vsel %vm1354_vm11, %v3837_v24, 0.0  ;;  %v4405_v63 = vpop.xlane.xlu0 %1135 }
 0x185   :  { %1237 = vmin.xlane.f32.xlu0 %v1236_v18  ;;  %v1575_v56 = vsel %vm1355_vm10, %v3839_v14, 0.0  ;;  %vm1347_vm6 = vcmp.eq.f32.partialorder %v2817_v40, %v4284_v43  ;;  %v2555_v32 = vmov 2.0   ;;  %vm1364_vm0 = vcmp.eq.f32.partialorder %v2795_v26, %v4339_v41 }
 0x186   :  { %2527 = vrcp.f32 %v2555_v32  ;;  %vm1365_vm1 = vcmp.eq.f32.partialorder %v2802_v30, %v4339_v41  ;;  %v1776_v48 = vsel %vm990_vm5, %v1559_v50, 0.0  ;;  %v1799_v8 = vadd.f32 %v1798_v17, %v1574_v38 }
 0x187   :  { %vm1348_vm7 = vcmp.eq.f32.partialorder %v2795_v26, %v1090_v61  ;;  %vm1349_vm3 = vcmp.eq.f32.partialorder %v2802_v30, %v1090_v61  ;;  %1225 = vmin.xlane.f32.xlu2 %v1224_v31  ;;  %v1777_v6 = vadd.f32 %v1776_v48, %v1775_v4  ;;  %v1566_v16 = vsel %vm1346_vm2, %v3837_v24, 0.0 }
 0x188   :  { %vm1356_vm12 = vcmp.eq.f32.partialorder %v2795_v26, %v4354_v54  ;;  %vm1357_vm13 = vcmp.eq.f32.partialorder %v2802_v30, %v4354_v54  ;;  %v1567_v18 = vsel %vm1347_vm6, %v3839_v14, 0.0  ;;  %v1787_v45 = vadd.f32 %v1786_v10, %v1566_v16 }
 0x189   :  { %1778 = vadd.xlane.f32.xlu1 %v1777_v6  ;;  %v1584_v11 = vsel %vm1364_vm0, %v3824_v29, 0.0  ;;  %v1585_v13 = vsel %vm1365_vm1, %v3826_v25, 0.0  ;;  %v4385_v15 = vsel %vm990_vm5, %v983_v35, inf  ;;  %v1281_v31 = vmin.f32 %v4272_v27, %v4222_v33 }
 0x18a   :  { %v1800_v43 = vsel %vm990_vm5, %v1575_v56, 0.0  ;;  %v1568_v28 = vsel %vm1348_vm7, %v3824_v29, 0.0  ;;  %v1569_v51 = vsel %vm1349_vm3, %v3826_v25, 0.0  ;;  %v4392_v46 = vmin.f32 %v1269_v44, %v982_v34  ;;  %v4437_v56 = vpop.xlane.xlu1 %1119 }
 0x18b   :  { %v1801_v9 = vadd.f32 %v1800_v43, %v1799_v8  ;;  %v1788_v7 = vsel %vm990_vm5, %v1567_v18, 0.0  ;;  %v1576_v12 = vsel %vm1356_vm12, %v3824_v29, 0.0  ;;  %v1577_v23 = vsel %vm1357_vm13, %v3826_v25, 0.0 }
 0x18c   :  { %v4394_v5 = vpop.eup %2527  ;;  %v1789_v22 = vadd.f32 %v1788_v7, %v1787_v45  ;;  %vm1366_vm14 = vcmp.eq.f32.partialorder %v2815_v36, %v4339_v41  ;;  %v1816_v60 = vadd.f32 %v1585_v13, %v1584_v11  ;;  %v1266_v58 = vmin.f32 %v4349_v49, %v4352_v1  ;;  %v4411_v34 = vpop.xlane.xlu2 %1107  ;;  %v2536_v7 = vld [vmem:[%s5350_s12 + $0x18] sm:$0x77] }
 0x18d   :  { %1802 = vadd.xlane.f32.xlu0 %v1801_v9  ;;  %vm1350_vm4 = vcmp.eq.f32.partialorder %v2815_v36, %v1090_v61  ;;  %vm1351_vm8 = vcmp.eq.f32.partialorder %v2817_v40, %v1090_v61  ;;  %v1792_v35 = vadd.f32 %v1569_v51, %v1568_v28  ;;  %vm1367_vm9 = vcmp.eq.f32.partialorder %v2817_v40, %v4339_v41 }
 0x18e   :  { %v347_v53 = vmul.f32 2.0, %v4394_v5  ;;  %vm1358_vm15 = vcmp.eq.f32.partialorder %v2815_v36, %v4354_v54  ;;  %vm1359_vm11 = vcmp.eq.f32.partialorder %v2817_v40, %v4354_v54  ;;  %v1804_v17 = vadd.f32 %v1577_v23, %v1576_v12 }
 0x18f   :  { %vm1376_vm10 = vcmp.eq.f32.partialorder %v2795_v26, %v4405_v63  ;;  %vm1377_vm2 = vcmp.eq.f32.partialorder %v2802_v30, %v4405_v63  ;;  %1790 = vadd.xlane.f32.xlu2 %v1789_v22  ;;  %v1586_v50 = vsel %vm1366_vm14, %v3837_v24, 0.0  ;;  %v1272_v4 = vmin.f32 %v4392_v46, %v4385_v15  ;;  %v2039_v15 = vld [vmem:[%s5347_s9 + $0x8] sm:$0xff] }
 0x190   :  { %v1570_v44 = vsel %vm1350_vm4, %v3837_v24, 0.0  ;;  %v1571_v10 = vsel %vm1351_vm8, %v3839_v14, 0.0  ;;  %v1587_v61 = vsel %vm1367_vm9, %v3839_v14, 0.0  ;;  %v1817_v38 = vadd.f32 %v1816_v60, %v1586_v50  ;;  %v5424_v60 = vld [vmem:[#allocation7_spill] sm:$0xff] }
 0x191   :  { %vm1378_vm6 = vcmp.eq.f32.partialorder %v2815_v36, %v4405_v63  ;;  %1231 = vmin.xlane.f32.xlu1 %v1230_v20  ;;  %v1793_v41 = vadd.f32 %v1792_v35, %v1570_v44  ;;  %v1578_v32 = vsel %vm1358_vm15, %v3837_v24, 0.0  ;;  %v1579_v48 = vsel %vm1359_vm11, %v3839_v14, 0.0  ;;  %v5427_v35 = vld [vmem:[#allocation6_spill] sm:$0xff] }
 0x192   :  { %vm1360_vm0 = vcmp.eq.f32.partialorder %v2795_v26, %v4411_v34  ;;  %vm1361_vm1 = vcmp.eq.f32.partialorder %v2802_v30, %v4411_v34  ;;  %v348_v8 = vsub.f32 1.0, %v347_v53  ;;  %v1805_v37 = vadd.f32 %v1804_v17, %v1578_v32  ;;  %v4575_v42 = vpop.xlane.xlu1 %1141 }
 0x193   :  { %v1596_v19 = vsel %vm1376_vm10, %v3824_v29, 0.0  ;;  %v1597_v20 = vsel %vm1377_vm2, %v3826_v25, 0.0  ;;  %v1794_v54 = vsel %vm990_vm5, %v1571_v10, 0.0  ;;  %v1818_v6 = vsel %vm990_vm5, %v1587_v61, 0.0 }
 0x194   :  { %vm1368_vm7 = vcmp.eq.f32.partialorder %v2795_v26, %v4437_v56  ;;  %vm1369_vm3 = vcmp.eq.f32.partialorder %v2802_v30, %v4437_v56  ;;  %v1819_v16 = vadd.f32 %v1818_v6, %v1817_v38  ;;  %vm1362_vm12 = vcmp.eq.f32.partialorder %v2815_v36, %v4411_v34  ;;  %v338_v18 = vpop.xlane.xlu2 %337  ;;  %v4533_v6 = vpop.xlane.xlu0 %1165 }
 0x195   :  { %1255 = vmin.xlane.f32.xlu0 %v1254_v59  ;;  %vm351_vm13 = vweird.f32 %v4394_v5  ;;  %v1806_v45 = vsel %vm990_vm5, %v1579_v48, 0.0  ;;  %v1580_v11 = vsel %vm1360_vm0, %v3824_v29, 0.0  ;;  %v1581_v13 = vsel %vm1361_vm1, %v3826_v25, 0.0  ;;  %v2535_v59 = vld [vmem:[%s5350_s12 + $0x10] sm:$0x77] }
 0x196   :  { %v339_v43 = vrot.slane %v338_v18, 4  ;;  %v1795_v28 = vadd.f32 %v1794_v54, %v1793_v41  ;;  %v349_v51 = vmul.f32 %v4394_v5, %v348_v8  ;;  %v1807_v21 = vadd.f32 %v1806_v45, %v1805_v37 }
 0x197   :  { %1243 = vmin.xlane.f32.xlu2 %v1242_v52  ;;  %vm1363_vm14 = vcmp.eq.f32.partialorder %v2817_v40, %v4411_v34  ;;  %v1582_v55 = vsel %vm1362_vm12, %v3837_v24, 0.0  ;;  %v373_v9 = vsub.f32 0.0, %v2535_v59  ;;  %v374_v12 = vsub.f32 0.0, %v2536_v7  ;;  %v5426_v52 = vld [vmem:[#allocation8_spill] sm:$0xff] }
 0x198   :  { %v340_v23 = vadd.f32 %v339_v43, %v338_v18  ;;  %v1810_v22 = vadd.f32 %v1581_v13, %v1580_v11  ;;  %vm369_vm4 = vcmp.ne.s32.totalorder %v5425_v3, %v5424_v60  ;;  %v2458_v2 = vrot.slane %v2535_v59, 10 }
 0x199   :  { %1796 = vadd.xlane.f32.xlu1 %v1795_v28  ;;  %vm1379_vm8 = vcmp.eq.f32.partialorder %v2817_v40, %v4405_v63  ;;  %vm370_vm9 = vcmp.ne.s32.totalorder %v5427_v35, %v5426_v52  ;;  %v2454_v53 = vrot.slane %v373_v9, 10  ;;  %v2455_v17 = vrot.slane %v374_v12, 10  ;;  %v1990_v28 = vld [vmem:[%s5346_s8] sm:$0xff]  ;;  %v2043_v52 = vld [vmem:[%s5347_s9 + $0x28] sm:$0xff] }
 0x19a   :  { %v341_v50 = vrot.slane %v340_v23, 2  ;;  %vm5428_vm15 = vcmask 1041408   ;;  %v2459_v61 = vrot.slane %v2536_v7, 10  ;;  %v350_v38 = vadd.f32 %v4394_v5, %v349_v51  ;;  %v2038_v51 = vld [vmem:[%s5347_s9] sm:$0xff] }
 0x19b   :  { %v1834_v44 = vsel %vm5428_vm15, %v1596_v19, 0.0  ;;  %vm5429_vm11 = vmmov %vm5428_vm15  ;;  %v1583_v41 = vsel %vm1363_vm14, %v3839_v14, 0.0  ;;  %v1598_v32 = vsel %vm1378_vm6, %v3837_v24, 0.0  ;;  %v4516_v48 = vsel %vm369_vm4, %v2454_v53, %v2458_v2 }
 0x19c   :  { %v1835_v10 = vsel %vm5429_vm11, %v1597_v20, 0.0  ;;  %v342_v8 = vadd.f32 %v341_v50, %v340_v23  ;;  %vm1371_vm10 = vcmp.eq.f32.partialorder %v2817_v40, %v4437_v56  ;;  %v4523_v37 = vsel %vm370_vm9, %v2455_v17, %v2459_v61  ;;  %v4526_v34 = vpop.xlane.xlu2 %1125  ;;  %vm5430_vm6 = vmmov %vm5429_vm11  ;;  %v1992_v50 = vld [vmem:[%s5346_s8 + $0x10] sm:$0xff] }
 0x19d   :  { %2529 = vrcp.f32 %v4516_v48  ;;  %1820 = vadd.xlane.f32.xlu0 %v1819_v16  ;;  %v1811_v19 = vadd.f32 %v1810_v22, %v1582_v55  ;;  %v1599_v20 = vsel %vm1379_vm8, %v3839_v14, 0.0  ;;  %v1836_v54 = vadd.f32 %v1835_v10, %v1834_v44  ;;  %v2040_v44 = vld [vmem:[%s5347_s9 + $0x10] sm:$0xff] }
 0x19e   :  { %2531 = vrcp.f32 %v4523_v37  ;;  %v343_v18 = vrot.slane %v342_v8, 1  ;;  %vm1370_vm2 = vcmp.eq.f32.partialorder %v2815_v36, %v4437_v56  ;;  %v1588_v16 = vsel %vm1368_vm7, %v3824_v29, 0.0 }
 0x19f   :  { %v1589_v63 = vsel %vm1369_vm3, %v3826_v25, 0.0  ;;  %v352_v45 = vsel %vm351_vm13, %v4394_v5, %v350_v38  ;;  %1808 = vadd.xlane.f32.xlu2 %v1807_v21  ;;  %v1812_v11 = vsel %vm990_vm5, %v1583_v41, 0.0  ;;  %v1837_v13 = vsel %vm5430_vm6, %v1598_v32, 0.0 }
 0x1a0   :  { %v1591_v43 = vsel %vm1371_vm10, %v3839_v14, 0.0  ;;  %vm1372_vm0 = vcmp.eq.f32.partialorder %v2795_v26, %v4526_v34  ;;  %vm1373_vm1 = vcmp.eq.f32.partialorder %v2802_v30, %v4526_v34  ;;  %v344_v5 = vadd.f32 %v343_v18, %v342_v8  ;;  %v4615_v18 = vpop.xlane.xlu0 %1183 }
 0x1a1   :  { %vm5431_vm7 = vcmask 762880   ;;  %1249 = vmin.xlane.f32.xlu1 %v1248_v62  ;;  %v1813_v55 = vadd.f32 %v1812_v11, %v1811_v19  ;;  %v1838_v59 = vadd.f32 %v1837_v13, %v1836_v54  ;;  %v1590_v9 = vsel %vm1370_vm2, %v3837_v24, 0.0  ;;  %v1991_v19 = vld [vmem:[%s5346_s8 + $0x8] sm:$0xff]  ;;  %v2041_v11 = vld [vmem:[%s5347_s9 + $0x18] sm:$0xff] }
 0x1a2   :  { %v1839_v21 = vsel %vm5431_vm7, %v1599_v20, 0.0  ;;  %v1822_v7 = vadd.f32 %v1589_v63, %v1588_v16  ;;  %2478 = vpush %v344_v5  ;;  %v1824_v23 = vsel %vm990_vm5, %v1591_v43, 0.0  ;;  %vm446_vm3 = vweird.f32 %v4516_v48 }
 0x1a3   :  { %v2530_v12 = vpop.eup %2529  ;;  %v450_v22 = vand.u32 2147483647, %v4516_v48  ;;  %v2086_v2 = vadd.f32 %v2038_v51, %v1990_v28  ;;  %2480 = vpush %v352_v45  ;;  %v452_v62 = vand.u32 2147483648, %v4516_v48  ;;  %v1592_v56 = vsel %vm1372_vm0, %v3824_v29, 0.0 }
 0x1a4   :  { %v2532_v53 = vpop.eup %2531  ;;  %v442_v57 = vmul.f32 %v2530_v12, %v4516_v48  ;;  %v1593_v17 = vsel %vm1373_vm1, %v3826_v25, 0.0  ;;  %vm461_vm12 = vweird.f32 %v4523_v37  ;;  %v465_v61 = vand.u32 2147483647, %v4523_v37  ;;  %v4597_v38 = vpop.xlane.xlu2 %1147 }
 0x1a5   :  { %v457_v10 = vmul.f32 %v2532_v53, %v4523_v37  ;;  %v467_v29 = vand.u32 2147483648, %v4523_v37  ;;  %1273 = vmin.xlane.f32.xlu0 %v1272_v4  ;;  %vm447_vm13 = vweird.f32 %v2530_v12  ;;  %vm1374_vm14 = vcmp.eq.f32.partialorder %v2815_v36, %v4526_v34 }
 0x1a6   :  { %v443_v25 = vsub.f32 1.0, %v442_v57  ;;  %vm1375_vm8 = vcmp.eq.f32.partialorder %v2817_v40, %v4526_v34  ;;  %vm462_vm15 = vweird.f32 %v2532_v53  ;;  %v1828_v32 = vadd.f32 %v1593_v17, %v1592_v56  ;;  %vm4620_vm11 = vmor %vm446_vm3, %vm447_vm13 }
 0x1a7   :  { %v458_v41 = vsub.f32 1.0, %v457_v10  ;;  %v2088_v8 = vadd.f32 %v2040_v44, %v1992_v50  ;;  %1261 = vmin.xlane.f32.xlu2 %v1260_v0  ;;  %v1840_v46 = vadd.f32 %v1839_v21, %v1838_v59  ;;  %v1823_v4 = vadd.f32 %v1822_v7, %v1590_v9  ;;  %v1993_v0 = vld [vmem:[%s5346_s8 + $0x18] sm:$0xff]  ;;  %vm4637_vm2 = vmor %vm461_vm12, %vm462_vm15  ;;  %v1995_v44 = vld [vmem:[%s5346_s8 + $0x28] sm:$0xff] }
 0x1a8   :  { %v444_v20 = vmul.f32 %v2530_v12, %v443_v25  ;;  %v2134_v54 = vmul.f32 0.5, %v2086_v2  ;;  %vm4624_vm10 = vcmp.eq.f32.partialorder %v450_v22, 8.507059e+37  ;;  %v453_v45 = vor.u32 1.1754944e-38, %v452_v62  ;;  %v4660_v22 = vpop.xlane.xlu1 %1159 }
 0x1a9   :  { %v459_v47 = vmul.f32 %v2532_v53, %v458_v41  ;;  %v468_v39 = vor.u32 1.1754944e-38, %v467_v29  ;;  %1814 = vadd.xlane.f32.xlu1 %v1813_v55  ;;  %v1594_v43 = vsel %vm1374_vm14, %v3837_v24, 0.0  ;;  %v1595_v28 = vsel %vm1375_vm8, %v3839_v14, 0.0 }
 0x1aa   :  { %v445_v48 = vadd.f32 %v2530_v12, %v444_v20  ;;  %v2087_v51 = vadd.f32 %v2039_v15, %v1991_v19  ;;  %vm466_vm6 = vcmp.eq.f32.partialorder %v465_v61, 8.507059e+37  ;;  %v1829_v21 = vadd.f32 %v1828_v32, %v1594_v43 }
 0x1ab   :  { %v460_v5 = vadd.f32 %v2532_v53, %v459_v47  ;;  %v2136_v55 = vmul.f32 0.5, %v2088_v8  ;;  %v1825_v37 = vadd.f32 %v1824_v23, %v1823_v4  ;;  %v4651_v9 = vmul.f32 %v2134_v54, %v2134_v54 }
 0x1ac   :  { %v449_v59 = vsel %vm4620_vm11, %v2530_v12, %v445_v48  ;;  %v2089_v7 = vadd.f32 %v2041_v11, %v1993_v0  ;;  %vm1384_vm0 = vcmp.eq.f32.partialorder %v2795_v26, %v4597_v38  ;;  %v1830_v34 = vsel %vm990_vm5, %v1595_v28, 0.0  ;;  %v1154_v12 = vpop.xlane.xlu2 %1153 }
 0x1ad   :  { %v454_v24 = vsel %vm4624_vm10, %v453_v45, %v449_v59  ;;  %v464_v14 = vsel %vm4637_vm2, %v2532_v53, %v460_v5  ;;  %vm1385_vm1 = vcmp.eq.f32.partialorder %v2802_v30, %v4597_v38  ;;  %1841 = vadd.xlane.f32.xlu0 %v1840_v46  ;;  %v2135_v57 = vmul.f32 0.5, %v2087_v51 }
 0x1ae   :  { %v469_v23 = vsel %vm466_vm6, %v468_v39, %v464_v14  ;;  %v473_v2 = vsel %vm369_vm4, %v454_v24, 0.0  ;;  %vm1380_vm7 = vcmp.eq.f32.partialorder %v2795_v26, %v4575_v42  ;;  %v1831_v62 = vadd.f32 %v1830_v34, %v1829_v21 }
 0x1af   :  { %v474_v53 = vsel %vm370_vm9, %v469_v23, 0.0  ;;  %v4672_v56 = vmul.f32 %v2136_v55, %v2136_v55  ;;  %vm1386_vm3 = vcmp.eq.f32.partialorder %v2815_v36, %v4597_v38  ;;  %vm1381_vm12 = vcmp.eq.f32.partialorder %v2802_v30, %v4575_v42  ;;  %1826 = vadd.xlane.f32.xlu2 %v1825_v37 }
 0x1b0   :  { %v1484_v60 = vperm.slane %v473_v2, 0  ;;  %v1485_v3 = vperm.slane %v473_v2, 4  ;;  %v1486_v17 = vperm.slane %v474_v53, 0  ;;  %v2137_v50 = vmul.f32 0.5, %v2089_v7  ;;  %v1701_v10 = vpop.xlane.xlu0 %1700  ;;  %v4747_v39 = vpop.xlane.xlu1 %1177 }
 0x1b1   :  { %vm1392_vm4 = vcmp.eq.f32.partialorder %v2795_v26, %v4660_v22  ;;  %vm1388_vm9 = vcmp.eq.f32.partialorder %v2795_v26, %v1154_v12  ;;  %vm1389_vm13 = vcmp.eq.f32.partialorder %v2802_v30, %v1154_v12  ;;  %v1487_v35 = vperm.slane %v474_v53, 4  ;;  %1267 = vmin.xlane.f32.xlu1 %v1266_v58 }
 0x1b2   :  { %vm1387_vm14 = vcmp.eq.f32.partialorder %v2817_v40, %v4597_v38  ;;  %vm1383_vm8 = vcmp.eq.f32.partialorder %v2817_v40, %v4575_v42  ;;  %vm1391_vm11 = vcmp.eq.f32.partialorder %v2817_v40, %v1154_v12  ;;  %v4698_v61 = vperm.slane %v1484_v60, 0 }
 0x1b3   :  { %v4700_v29 = vperm.slane %v1485_v3, 0  ;;  %v4702_v25 = vmul.f32 %v2135_v57, %v2135_v57  ;;  %vm1382_vm10 = vcmp.eq.f32.partialorder %v2815_v36, %v4575_v42  ;;  %vm1390_vm2 = vcmp.eq.f32.partialorder %v2815_v36, %v1154_v12 }
 0x1b4   :  { %v4707_v41 = vperm.slane %v1487_v35, 0  ;;  %v4709_v32 = vadd.f32 %v2043_v52, %v1995_v44  ;;  %vm1394_vm6 = vcmp.eq.f32.partialorder %v2815_v36, %v4660_v22  ;;  %v4713_v49 = vperm.slane %v1486_v17, 0  ;;  %v1172_v20 = vpop.xlane.xlu2 %1171 }
 0x1b5   :  { %v1608_v1 = vsel %vm1388_vm9, %v4698_v61, 0.0  ;;  %v1609_v58 = vsel %vm1389_vm13, %v4700_v29, 0.0  ;;  %v4721_v8 = vmul.f32 %v2137_v50, %v2137_v50  ;;  %vm1396_vm15 = vcmp.eq.f32.partialorder %v2795_v26, %v4533_v6 }
 0x1b6   :  { %v1611_v19 = vsel %vm1391_vm11, %v4707_v41, 0.0  ;;  %v1855_v15 = vadd.f32 %v1609_v58, %v1608_v1  ;;  %v1604_v46 = vsel %vm1384_vm0, %v4698_v61, 0.0  ;;  %v1605_v4 = vsel %vm1385_vm1, %v4700_v29, 0.0 }
 0x1b7   :  { %v1610_v54 = vsel %vm1390_vm2, %v4713_v49, 0.0  ;;  %v1857_v16 = vsel %vm990_vm5, %v1611_v19, 0.0  ;;  %v1606_v63 = vsel %vm1386_vm3, %v4713_v49, 0.0  ;;  %v1849_v45 = vadd.f32 %v1605_v4, %v1604_v46  ;;  %1282 = vmin.xlane.f32.xlu2 %v1281_v31 }
 0x1b8   :  { %vm1395_vm9 = vcmp.eq.f32.partialorder %v2817_v40, %v4660_v22  ;;  %vm1397_vm0 = vcmp.eq.f32.partialorder %v2802_v30, %v4533_v6  ;;  %vm1400_vm13 = vcmp.eq.f32.partialorder %v2795_v26, %v1172_v20  ;;  %vm1401_vm1 = vcmp.eq.f32.partialorder %v2802_v30, %v1172_v20  ;;  %v1713_v51 = vpop.xlane.xlu0 %1712 }
 0x1b9   :  { %v1856_v47 = vadd.f32 %v1855_v15, %v1610_v54  ;;  %vm1402_vm11 = vcmp.eq.f32.partialorder %v2815_v36, %v1172_v20  ;;  %vm2278_vm2 = vcmask 7168   ;;  %vm1403_vm3 = vcmp.eq.f32.partialorder %v2817_v40, %v1172_v20  ;;  %1832 = vadd.xlane.f32.xlu1 %v1831_v62 }
 0x1ba   :  { %v1620_v0 = vsel %vm1400_vm13, %v4698_v61, 0.0  ;;  %v1621_v11 = vsel %vm1401_vm1, %v4700_v29, 0.0  ;;  %v1607_v48 = vsel %vm1387_vm14, %v4707_v41, 0.0  ;;  %v1623_v43 = vsel %vm1403_vm3, %v4707_v41, 0.0 }
 0x1bb   :  { %v1858_v13 = vadd.f32 %v1857_v16, %v1856_v47  ;;  %v1873_v28 = vadd.f32 %v1621_v11, %v1620_v0  ;;  %v1850_v5 = vadd.f32 %v1849_v45, %v1606_v63  ;;  %v2230_v33 = vmul.f32 %v4651_v9, %v1701_v10 }
 0x1bc   :  { %v1622_v27 = vsel %vm1402_vm11, %v4713_v49, 0.0  ;;  %v1600_v31 = vsel %vm1380_vm7, %v4698_v61, 0.0  ;;  %vm1399_vm13 = vcmp.eq.f32.partialorder %v2817_v40, %v4533_v6  ;;  %vm1404_vm14 = vcmp.eq.f32.partialorder %v2795_v26, %v4747_v39  ;;  %v1190_v2 = vpop.xlane.xlu2 %1189 }
 0x1bd   :  { %vm1405_vm1 = vcmp.eq.f32.partialorder %v2802_v30, %v4747_v39  ;;  %1859 = vadd.xlane.f32.xlu0 %v1858_v13  ;;  %v1874_v38 = vadd.f32 %v1873_v28, %v1622_v27  ;;  %v1875_v21 = vsel %vm990_vm5, %v1623_v43, 0.0  ;;  %v2232_v55 = vmul.f32 %v4672_v56, %v1713_v51 }
 0x1be   :  { %v1601_v37 = vsel %vm1381_vm12, %v4700_v29, 0.0  ;;  %v1851_v59 = vsel %vm990_vm5, %v1607_v48, 0.0  ;;  %v1603_v9 = vsel %vm1383_vm8, %v4707_v41, 0.0  ;;  %v1612_v24 = vsel %vm1392_vm4, %v4698_v61, 0.0 }
 0x1bf   :  { %v1843_v7 = vadd.f32 %v1601_v37, %v1600_v31  ;;  %vm1408_vm7 = vcmp.eq.f32.partialorder %v2795_v26, %v4615_v18  ;;  %v1876_v14 = vadd.f32 %v1875_v21, %v1874_v38  ;;  %v1852_v34 = vadd.f32 %v1851_v59, %v1850_v5  ;;  %v1707_v50 = vpop.xlane.xlu1 %1706  ;;  %v1994_v31 = vld [vmem:[%s5346_s8 + $0x20] sm:$0xff] }
 0x1c0   :  { %v1602_v12 = vsel %vm1382_vm10, %v4713_v49, 0.0  ;;  %vm5438_vm12 = vcmp.eq.f32.partialorder %v2802_v30, %v4660_v22  ;;  %vm1409_vm8 = vcmp.eq.f32.partialorder %v2802_v30, %v4615_v18  ;;  %v1845_v53 = vsel %vm990_vm5, %v1603_v9, 0.0 }
 0x1c1   :  { %v1613_v23 = vsel %vm5438_vm12, %v4700_v29, 0.0  ;;  %v1844_v57 = vadd.f32 %v1843_v7, %v1602_v12  ;;  %v1614_v62 = vsel %vm1394_vm6, %v4713_v49, 0.0  ;;  %vm1412_vm4 = vcmp.eq.f32.partialorder %v2795_v26, %v1190_v2  ;;  %1853 = vadd.xlane.f32.xlu2 %v1852_v34 }
 0x1c2   :  { %v1861_v56 = vadd.f32 %v1613_v23, %v1612_v24  ;;  %vm1413_vm10 = vcmp.eq.f32.partialorder %v2802_v30, %v1190_v2  ;;  %vm1414_vm11 = vcmp.eq.f32.partialorder %v2815_v36, %v1190_v2  ;;  %vm1415_vm3 = vcmp.eq.f32.partialorder %v2817_v40, %v1190_v2  ;;  %v1996_v2 = vld [vmem:[%s5346_s8 + $0x30] sm:$0xff] }
 0x1c3   :  { %v1846_v42 = vadd.f32 %v1845_v53, %v1844_v57  ;;  %v1632_v60 = vsel %vm1412_vm4, %v4698_v61, 0.0  ;;  %v1633_v3 = vsel %vm1413_vm10, %v4700_v29, 0.0  ;;  %v1616_v17 = vsel %vm1396_vm15, %v4698_v61, 0.0  ;;  %v1998_v57 = vld [vmem:[%s5346_s8 + $0x40] sm:$0xff] }
 0x1c4   :  { %v1891_v44 = vadd.f32 %v1633_v3, %v1632_v60  ;;  %v1615_v52 = vsel %vm1395_vm9, %v4707_v41, 0.0  ;;  %v1862_v35 = vadd.f32 %v1861_v56, %v1614_v62  ;;  %vm1398_vm6 = vcmp.eq.f32.partialorder %v2815_v36, %v4533_v6  ;;  %v1719_v11 = vpop.xlane.xlu2 %1718  ;;  %v1997_v56 = vld [vmem:[%s5346_s8 + $0x38] sm:$0xff] }
 0x1c5   :  { %v2231_v10 = vmul.f32 %v4702_v25, %v1707_v50  ;;  %1847 = vadd.xlane.f32.xlu1 %v1846_v42  ;;  %v1634_v1 = vsel %vm1414_vm11, %v4713_v49, 0.0  ;;  %v1635_v58 = vsel %vm1415_vm3, %v4707_v41, 0.0  ;;  %v1617_v19 = vsel %vm1397_vm0, %v4700_v29, 0.0  ;;  %1877 = vadd.xlane.f32.xlu0 %v1876_v14  ;;  %v2045_v42 = vld [vmem:[%s5347_s9 + $0x38] sm:$0xff] }
 0x1c6   :  { %v2279_v15 = vsel %vm2278_vm2, %v2230_v33, 0.0  ;;  %v1892_v22 = vadd.f32 %v1891_v44, %v1634_v1  ;;  %v1619_v46 = vsel %vm1399_vm13, %v4707_v41, 0.0  ;;  %v1867_v25 = vadd.f32 %v1617_v19, %v1616_v17 }
 0x1c7   :  { %v2282_v4 = vsel %vm2278_vm2, %v2232_v55, 0.0  ;;  %v2280_v20 = vsel %vm2278_vm2, %v2231_v10, 0.0  ;;  %v1863_v54 = vsel %vm990_vm5, %v1615_v52, 0.0  ;;  %v1618_v16 = vsel %vm1398_vm6, %v4713_v49, 0.0 }
 0x1c8   :  { %v2281_v63 = vadd.f32 %v2280_v20, %v2279_v15  ;;  %v1893_v45 = vsel %vm990_vm5, %v1635_v58, 0.0  ;;  %v1864_v47 = vadd.f32 %v1863_v54, %v1862_v35  ;;  %v1868_v0 = vadd.f32 %v1867_v25, %v1618_v16  ;;  %v1731_v21 = vpop.xlane.xlu0 %1730  ;;  %v2047_v20 = vld [vmem:[%s5347_s9 + $0x48] sm:$0xff] }
 0x1c9   :  { %v1869_v48 = vsel %vm990_vm5, %v1619_v46, 0.0  ;;  %vm1406_vm15 = vcmp.eq.f32.partialorder %v2815_v36, %v4747_v39  ;;  %v1624_v6 = vsel %vm1404_vm14, %v4698_v61, 0.0  ;;  %v1625_v13 = vsel %vm1405_vm1, %v4700_v29, 0.0 }
 0x1ca   :  { %v2233_v43 = vmul.f32 %v4721_v8, %v1719_v11  ;;  %v2283_v28 = vadd.f32 %v2282_v4, %v2281_v63  ;;  %v1894_v51 = vadd.f32 %v1893_v45, %v1892_v22  ;;  %v1870_v5 = vadd.f32 %v1869_v48, %v1868_v0  ;;  %v2042_v8 = vld [vmem:[%s5347_s9 + $0x20] sm:$0xff]  ;;  %v1999_v4 = vld [vmem:[%s5346_s8 + $0x48] sm:$0xff] }
 0x1cb   :  { %v1879_v33 = vadd.f32 %v1625_v13, %v1624_v6  ;;  %vm1410_vm9 = vcmp.eq.f32.partialorder %v2815_v36, %v4615_v18  ;;  %vm1411_vm0 = vcmp.eq.f32.partialorder %v2817_v40, %v4615_v18  ;;  %v1628_v27 = vsel %vm1408_vm7, %v4698_v61, 0.0 }
 0x1cc   :  { %v2284_v38 = vsel %vm2278_vm2, %v2233_v43, 0.0  ;;  %1871 = vadd.xlane.f32.xlu2 %v1870_v5  ;;  %vm1407_vm13 = vcmp.eq.f32.partialorder %v2817_v40, %v4747_v39  ;;  %v1629_v55 = vsel %vm1409_vm8, %v4700_v29, 0.0  ;;  %v1626_v9 = vsel %vm1406_vm15, %v4713_v49, 0.0  ;;  %v2044_v39 = vld [vmem:[%s5347_s9 + $0x30] sm:$0xff] }
 0x1cd   :  { %v2285_v37 = vadd.f32 %v2284_v38, %v2283_v28  ;;  %1865 = vadd.xlane.f32.xlu1 %v1864_v47  ;;  %v1885_v59 = vadd.f32 %v1629_v55, %v1628_v27  ;;  %1895 = vadd.xlane.f32.xlu0 %v1894_v51  ;;  %v1630_v7 = vsel %vm1410_vm9, %v4713_v49, 0.0  ;;  %v1631_v24 = vsel %vm1411_vm0, %v4707_v41, 0.0  ;;  %v2001_v38 = vld [vmem:[%s5346_s8 + $0x58] sm:$0xff] }
 0x1ce   :  { %v2090_v14 = vadd.f32 %v2042_v8, %v1994_v31  ;;  %v2139_v34 = vmul.f32 0.5, %v4709_v32  ;;  %v1627_v12 = vsel %vm1407_vm13, %v4707_v41, 0.0  ;;  %v1880_v18 = vadd.f32 %v1879_v33, %v1626_v9  ;;  %v2046_v32 = vld [vmem:[%s5347_s9 + $0x40] sm:$0xff] }
 0x1cf   :  { %v1886_v23 = vadd.f32 %v1885_v59, %v1630_v7  ;;  %v1887_v62 = vsel %vm990_vm5, %v1631_v24, 0.0  ;;  %v1881_v60 = vsel %vm990_vm5, %v1627_v12, 0.0  ;;  %v2092_v17 = vadd.f32 %v2044_v39, %v1996_v2  ;;  %v2000_v24 = vld [vmem:[%s5346_s8 + $0x50] sm:$0xff] }
 0x1d0   :  { %v2138_v53 = vmul.f32 0.5, %v2090_v14  ;;  %v2187_v50 = vmul.f32 %v2139_v34, %v2139_v34  ;;  %v1882_v44 = vadd.f32 %v1881_v60, %v1880_v18  ;;  %v2094_v35 = vadd.f32 %v2046_v32, %v1998_v57  ;;  %v1749_v10 = vpop.xlane.xlu0 %1748  ;;  %v2048_v14 = vld [vmem:[%s5347_s9 + $0x50] sm:$0xff] }
 0x1d1   :  { %v1888_v3 = vadd.f32 %v1887_v62, %v1886_v23  ;;  %v2093_v1 = vadd.f32 %v2045_v42, %v1997_v56  ;;  %v2140_v19 = vmul.f32 0.5, %v2092_v17  ;;  %v2095_v47 = vadd.f32 %v2047_v20, %v1999_v4  ;;  %v2002_v62 = vld [vmem:[%s5346_s8 + $0x60] sm:$0xff] }
 0x1d2   :  { %v2186_v52 = vmul.f32 %v2138_v53, %v2138_v53  ;;  %v1725_v58 = vpop.xlane.xlu1 %1724  ;;  %v2235_v15 = vmul.f32 %v2187_v50, %v1731_v21  ;;  %v2142_v46 = vmul.f32 0.5, %v2094_v35  ;;  %v2049_v21 = vld [vmem:[%s5347_s9 + $0x58] sm:$0xff]  ;;  %v2096_v53 = vadd.f32 %v2048_v14, %v2000_v24  ;;  %v2050_v56 = vld [vmem:[%s5347_s9 + $0x60] sm:$0xff] }
 0x1d3   :  { %s2479_s29 = spop %2478  ;;  %v2141_v25 = vmul.f32 0.5, %v2093_v1  ;;  %v2188_v63 = vmul.f32 %v2140_v19, %v2140_v19  ;;  %v2143_v27 = vmul.f32 0.5, %v2095_v47  ;;  %v2097_v18 = vadd.f32 %v2049_v21, %v2001_v38 }
 0x1d4   :  { %1889 = vadd.xlane.f32.xlu2 %v1888_v3  ;;  %v2234_v22 = vmul.f32 %v2186_v52, %v1725_v58  ;;  %s2481_s30 = spop %2480  ;;  %v2288_v45 = vsel %vm2278_vm2, %v2235_v15, 0.0  ;;  %v2190_v0 = vmul.f32 %v2142_v46, %v2142_v46  ;;  %v2098_v52 = vadd.f32 %v2050_v56, %v2002_v62 }
 0x1d5   :  { %1883 = vadd.xlane.f32.xlu1 %v1882_v44  ;;  %s354_s0 = smul.f32 %s2481_s30, %s2479_s29  ;;  %v2189_v6 = vmul.f32 %v2141_v25, %v2141_v25  ;;  %v2191_v2 = vmul.f32 %v2143_v27, %v2143_v27  ;;  %v2145_v3 = vmul.f32 0.5, %v2097_v18  ;;  %v2144_v44 = vmul.f32 0.5, %v2096_v53  ;;  %v2053_v53 = vld [vmem:[%s5347_s9 + $0x78] sm:$0xff] }
 0x1d6   :  { %v2286_v54 = vsel %vm2278_vm2, %v2234_v22, 0.0  ;;  %v2146_v20 = vmul.f32 0.5, %v2098_v52 }
 0x1d7   :  { %v2287_v16 = vadd.f32 %v2286_v54, %v2285_v37  ;;  %s4909_s1 = sadd.f32 %s2416_s3, %s354_s0  ;;  %v2238_v37 = vmul.f32 %v2190_v0, %v1749_v10  ;;  %v2193_v19 = vmul.f32 %v2145_v3, %v2145_v3  ;;  %v2192_v25 = vmul.f32 %v2144_v44, %v2144_v44  ;;  %s2441_s3 = sshll.u32 %s5352_s14, 4  ;;  %s2442_s3 = int_to_ptr.hbm [resolvable:$true] %s2441_s3 }
 0x1d8   :  { %2431 = sst [smem:[#allocation2 + $0x5]] %s354_s0  ;;  %v1202_v11 = vpop.xlane.xlu0 %1201 }
 0x1d9   :  { %v2289_v48 = vadd.f32 %v2288_v45, %v2287_v16  ;;  %vm1420_vm14 = vcmp.eq.f32.partialorder %v2795_v26, %v1202_v11  ;;  %vm1421_vm1 = vcmp.eq.f32.partialorder %v2802_v30, %v1202_v11  ;;  %vm1422_vm7 = vcmp.eq.f32.partialorder %v2815_v36, %v1202_v11 }
 0x1da   :  { %v1737_v13 = vpop.xlane.xlu2 %1736  ;;  %vm1423_vm12 = vcmp.eq.f32.partialorder %v2817_v40, %v1202_v11  ;;  %v1640_v28 = vsel %vm1420_vm14, %v4698_v61, 0.0  ;;  %v1641_v51 = vsel %vm1421_vm1, %v4700_v29, 0.0  ;;  %v1642_v55 = vsel %vm1422_vm7, %v4713_v49, 0.0 }
 0x1db   :  { %v2236_v43 = vmul.f32 %v2188_v63, %v1737_v13  ;;  %v1643_v5 = vsel %vm1423_vm12, %v4707_v41, 0.0  ;;  %v1903_v33 = vadd.f32 %v1641_v51, %v1640_v28  ;;  %v1743_v8 = vpop.xlane.xlu1 %1742  ;;  %v2294_v32 = vsel %vm2278_vm2, %v2238_v37, 0.0 }
 0x1dc   :  { %v2237_v9 = vmul.f32 %v2189_v6, %v1743_v8  ;;  %v1905_v34 = vsel %vm990_vm5, %v1643_v5, 0.0  ;;  %v2052_v6 = vld [vmem:[%s5347_s9 + $0x70] sm:$0xff]  ;;  %v2051_v8 = vld [vmem:[%s5347_s9 + $0x68] sm:$0xff] }
 0x1dd   :  { %v2290_v31 = vsel %vm2278_vm2, %v2236_v43, 0.0  ;;  %v1904_v7 = vadd.f32 %v1903_v33, %v1642_v55 }
 0x1de   :  { %v2291_v59 = vadd.f32 %v2290_v31, %v2289_v48  ;;  %v2292_v12 = vsel %vm2278_vm2, %v2237_v9, 0.0  ;;  %v2004_v48 = vld [vmem:[%s5346_s8 + $0x70] sm:$0xff]  ;;  %v2003_v31 = vld [vmem:[%s5346_s8 + $0x68] sm:$0xff] }
 0x1df   :  { %v1906_v23 = vadd.f32 %v1905_v34, %v1904_v7  ;;  %v2100_v38 = vadd.f32 %v2052_v6, %v2004_v48  ;;  %v2194_v7 = vmul.f32 %v2146_v20, %v2146_v20 }
 0x1e0   :  { %v2293_v39 = vadd.f32 %v2292_v12, %v2291_v59  ;;  %v1767_v57 = vpop.xlane.xlu0 %1766 }
 0x1e1   :  { %1907 = vadd.xlane.f32.xlu2 %v1906_v23  ;;  %v2241_v0 = vmul.f32 %v2193_v19, %v1767_v57  ;;  %v2099_v23 = vadd.f32 %v2051_v8, %v2003_v31  ;;  %v2005_v57 = vld [vmem:[%s5346_s8 + $0x78] sm:$0xff] }
 0x1e2   :  { %v1755_v42 = vpop.xlane.xlu2 %1754  ;;  %v2295_v60 = vadd.f32 %v2294_v32, %v2293_v39 }
 0x1e3   :  { %v2239_v17 = vmul.f32 %v2191_v2, %v1755_v42  ;;  %v1196_v50 = vpop.xlane.xlu1 %1195  ;;  %v2300_v2 = vsel %vm2278_vm2, %v2241_v0, 0.0  ;;  %v2148_v42 = vmul.f32 0.5, %v2100_v38  ;;  %v2007_v0 = vld [vmem:[%s5346_s8 + $0x88] sm:$0xff] }
 0x1e4   :  { %vm1416_vm8 = vcmp.eq.f32.partialorder %v2795_v26, %v1196_v50  ;;  %vm1417_vm4 = vcmp.eq.f32.partialorder %v2802_v30, %v1196_v50  ;;  %vm1418_vm10 = vcmp.eq.f32.partialorder %v2815_v36, %v1196_v50  ;;  %vm1419_vm11 = vcmp.eq.f32.partialorder %v2817_v40, %v1196_v50 }
 0x1e5   :  { %v2296_v35 = vsel %vm2278_vm2, %v2239_v17, 0.0  ;;  %v1636_v1 = vsel %vm1416_vm8, %v4698_v61, 0.0  ;;  %v1637_v58 = vsel %vm1417_vm4, %v4700_v29, 0.0  ;;  %v1639_v15 = vsel %vm1419_vm11, %v4707_v41, 0.0 }
 0x1e6   :  { %v2297_v10 = vadd.f32 %v2296_v35, %v2295_v60  ;;  %v1897_v22 = vadd.f32 %v1637_v58, %v1636_v1  ;;  %v1638_v4 = vsel %vm1418_vm10, %v4713_v49, 0.0  ;;  %v1899_v16 = vsel %vm990_vm5, %v1639_v15, 0.0 }
 0x1e7   :  { %v2147_v17 = vmul.f32 0.5, %v2099_v23  ;;  %v2101_v50 = vadd.f32 %v2053_v53, %v2005_v57  ;;  %v2196_v1 = vmul.f32 %v2148_v42, %v2148_v42 }
 0x1e8   :  { %v1220_v46 = vpop.xlane.xlu0 %1219  ;;  %v1898_v54 = vadd.f32 %v1897_v22, %v1638_v4 }
 0x1e9   :  { %vm1432_vm3 = vcmp.eq.f32.partialorder %v2795_v26, %v1220_v46  ;;  %vm1433_vm6 = vcmp.eq.f32.partialorder %v2802_v30, %v1220_v46  ;;  %vm1434_vm15 = vcmp.eq.f32.partialorder %v2815_v36, %v1220_v46  ;;  %vm1435_vm9 = vcmp.eq.f32.partialorder %v2817_v40, %v1220_v46 }
 0x1ea   :  { %v1208_v63 = vpop.xlane.xlu2 %1207  ;;  %v1652_v45 = vsel %vm1432_vm3, %v4698_v61, 0.0  ;;  %v1653_v47 = vsel %vm1433_vm6, %v4700_v29, 0.0  ;;  %v1900_v11 = vadd.f32 %v1899_v16, %v1898_v54  ;;  %v1655_v43 = vsel %vm1435_vm9, %v4707_v41, 0.0 }
 0x1eb   :  { %vm1424_vm0 = vcmp.eq.f32.partialorder %v2795_v26, %v1208_v63  ;;  %vm1425_vm13 = vcmp.eq.f32.partialorder %v2802_v30, %v1208_v63  ;;  %v1921_v28 = vadd.f32 %v1653_v47, %v1652_v45  ;;  %vm1426_vm14 = vcmp.eq.f32.partialorder %v2815_v36, %v1208_v63 }
 0x1ec   :  { %v1761_v13 = vpop.xlane.xlu1 %1760  ;;  %vm1427_vm1 = vcmp.eq.f32.partialorder %v2817_v40, %v1208_v63  ;;  %1901 = vadd.xlane.f32.xlu1 %v1900_v11  ;;  %v1654_v5 = vsel %vm1434_vm15, %v4713_v49, 0.0  ;;  %v1644_v33 = vsel %vm1424_vm0, %v4698_v61, 0.0  ;;  %v1645_v27 = vsel %vm1425_vm13, %v4700_v29, 0.0  ;;  %v2055_v11 = vld [vmem:[%s5347_s9 + $0x88] sm:$0xff] }
 0x1ed   :  { %v2240_v51 = vmul.f32 %v2192_v25, %v1761_v13  ;;  %v1922_v21 = vadd.f32 %v1921_v28, %v1654_v5  ;;  %v1647_v55 = vsel %vm1427_vm1, %v4707_v41, 0.0  ;;  %v1909_v37 = vadd.f32 %v1645_v27, %v1644_v33  ;;  %v2006_v33 = vld [vmem:[%s5346_s8 + $0x80] sm:$0xff] }
 0x1ee   :  { %v1923_v9 = vsel %vm990_vm5, %v1655_v43, 0.0  ;;  %v1646_v24 = vsel %vm1426_vm14, %v4713_v49, 0.0  ;;  %v1911_v39 = vsel %vm990_vm5, %v1647_v55, 0.0  ;;  %v2195_v22 = vmul.f32 %v2147_v17, %v2147_v17  ;;  %v2054_v27 = vld [vmem:[%s5347_s9 + $0x80] sm:$0xff] }
 0x1ef   :  { %v2298_v59 = vsel %vm2278_vm2, %v2240_v51, 0.0  ;;  %v1924_v12 = vadd.f32 %v1923_v9, %v1922_v21  ;;  %v1910_v18 = vadd.f32 %v1909_v37, %v1646_v24  ;;  %v2149_v25 = vmul.f32 0.5, %v2101_v50 }
 0x1f0   :  { %v2299_v14 = vadd.f32 %v2298_v59, %v2297_v10  ;;  %v1785_v34 = vpop.xlane.xlu0 %1784  ;;  %v2103_v31 = vadd.f32 %v2055_v11, %v2007_v0 }
 0x1f1   :  { %1925 = vadd.xlane.f32.xlu2 %v1924_v12  ;;  %v1912_v56 = vadd.f32 %v1911_v39, %v1910_v18  ;;  %v2244_v45 = vmul.f32 %v2196_v1, %v1785_v34  ;;  %v2197_v59 = vmul.f32 %v2149_v25, %v2149_v25  ;;  %v2102_v12 = vadd.f32 %v2054_v27, %v2006_v33  ;;  %v2056_v39 = vld [vmem:[%s5347_s9 + $0x90] sm:$0xff] }
 0x1f2   :  { %v1773_v32 = vpop.xlane.xlu2 %1772  ;;  %v2301_v62 = vadd.f32 %v2300_v2, %v2299_v14  ;;  %v2008_v2 = vld [vmem:[%s5346_s8 + $0x90] sm:$0xff] }
 0x1f3   :  { %v2242_v60 = vmul.f32 %v2194_v7, %v1773_v32  ;;  %1913 = vadd.xlane.f32.xlu0 %v1912_v56  ;;  %v2306_v18 = vsel %vm2278_vm2, %v2244_v45, 0.0  ;;  %v2010_v45 = vld [vmem:[%s5346_s8 + $0xa0] sm:$0xff] }
 0x1f4   :  { %v1214_v3 = vpop.xlane.xlu1 %1213 }
 0x1f5   :  { %v2302_v44 = vsel %vm2278_vm2, %v2242_v60, 0.0  ;;  %vm1428_vm7 = vcmp.eq.f32.partialorder %v2795_v26, %v1214_v3  ;;  %vm1429_vm12 = vcmp.eq.f32.partialorder %v2802_v30, %v1214_v3  ;;  %vm1430_vm8 = vcmp.eq.f32.partialorder %v2815_v36, %v1214_v3 }
 0x1f6   :  { %v2303_v52 = vadd.f32 %v2302_v44, %v2301_v62  ;;  %vm1431_vm4 = vcmp.eq.f32.partialorder %v2817_v40, %v1214_v3  ;;  %v1648_v35 = vsel %vm1428_vm7, %v4698_v61, 0.0  ;;  %v1649_v10 = vsel %vm1429_vm12, %v4700_v29, 0.0 }
 0x1f7   :  { %v1651_v58 = vsel %vm1431_vm4, %v4707_v41, 0.0  ;;  %v1915_v19 = vadd.f32 %v1649_v10, %v1648_v35  ;;  %v1650_v46 = vsel %vm1430_vm8, %v4713_v49, 0.0  ;;  %v2151_v62 = vmul.f32 0.5, %v2103_v31 }
 0x1f8   :  { %v1238_v15 = vpop.xlane.xlu0 %1237  ;;  %v1917_v20 = vsel %vm990_vm5, %v1651_v58, 0.0  ;;  %v2150_v60 = vmul.f32 0.5, %v2102_v12  ;;  %v2104_v3 = vadd.f32 %v2056_v39, %v2008_v2 }
 0x1f9   :  { %vm1444_vm10 = vcmp.eq.f32.partialorder %v2795_v26, %v1238_v15  ;;  %vm1445_vm11 = vcmp.eq.f32.partialorder %v2802_v30, %v1238_v15  ;;  %v1916_v4 = vadd.f32 %v1915_v19, %v1650_v46  ;;  %vm1446_vm3 = vcmp.eq.f32.partialorder %v2815_v36, %v1238_v15 }
 0x1fa   :  { %v1226_v54 = vpop.xlane.xlu2 %1225  ;;  %vm1447_vm6 = vcmp.eq.f32.partialorder %v2817_v40, %v1238_v15  ;;  %v1664_v16 = vsel %vm1444_vm10, %v4698_v61, 0.0  ;;  %v1665_v63 = vsel %vm1445_vm11, %v4700_v29, 0.0  ;;  %v1666_v28 = vsel %vm1446_vm3, %v4713_v49, 0.0 }
 0x1fb   :  { %vm1436_vm15 = vcmp.eq.f32.partialorder %v2795_v26, %v1226_v54  ;;  %vm1437_vm9 = vcmp.eq.f32.partialorder %v2802_v30, %v1226_v54  ;;  %v1918_v47 = vadd.f32 %v1917_v20, %v1916_v4  ;;  %v1667_v6 = vsel %vm1447_vm6, %v4707_v41, 0.0 }
 0x1fc   :  { %v1779_v48 = vpop.xlane.xlu1 %1778  ;;  %v1939_v13 = vadd.f32 %v1665_v63, %v1664_v16  ;;  %vm1438_vm0 = vcmp.eq.f32.partialorder %v2815_v36, %v1226_v54  ;;  %vm1439_vm13 = vcmp.eq.f32.partialorder %v2817_v40, %v1226_v54  ;;  %v1656_v51 = vsel %vm1436_vm15, %v4698_v61, 0.0 }
 0x1fd   :  { %v2243_v43 = vmul.f32 %v2195_v22, %v1779_v48  ;;  %1919 = vadd.xlane.f32.xlu1 %v1918_v47  ;;  %v1657_v5 = vsel %vm1437_vm9, %v4700_v29, 0.0  ;;  %v1659_v38 = vsel %vm1439_vm13, %v4707_v41, 0.0  ;;  %v1941_v37 = vsel %vm990_vm5, %v1667_v6, 0.0  ;;  %v2058_v47 = vld [vmem:[%s5347_s9 + $0xa0] sm:$0xff] }
 0x1fe   :  { %v1940_v8 = vadd.f32 %v1939_v13, %v1666_v28  ;;  %v1927_v21 = vadd.f32 %v1657_v5, %v1656_v51  ;;  %v1658_v9 = vsel %vm1438_vm0, %v4713_v49, 0.0  ;;  %v1929_v23 = vsel %vm990_vm5, %v1659_v38, 0.0  ;;  %v2009_v51 = vld [vmem:[%s5346_s8 + $0x98] sm:$0xff] }
 0x1ff   :  { %v2304_v55 = vsel %vm2278_vm2, %v2243_v43, 0.0  ;;  %v2199_v35 = vmul.f32 %v2151_v62, %v2151_v62  ;;  %v2198_v19 = vmul.f32 %v2150_v60, %v2150_v60  ;;  %v2152_v22 = vmul.f32 0.5, %v2104_v3  ;;  %v2057_v5 = vld [vmem:[%s5347_s9 + $0x98] sm:$0xff] }
 0x200   :  { %v2305_v7 = vadd.f32 %v2304_v55, %v2303_v52  ;;  %v1803_v24 = vpop.xlane.xlu0 %1802  ;;  %v1942_v14 = vadd.f32 %v1941_v37, %v1940_v8  ;;  %v1928_v34 = vadd.f32 %v1927_v21, %v1658_v9  ;;  %v2106_v33 = vadd.f32 %v2058_v47, %v2010_v45 }
 0x201   :  { %v2247_v16 = vmul.f32 %v2199_v35, %v1803_v24  ;;  %v2200_v55 = vmul.f32 %v2152_v22, %v2152_v22 }
 0x202   :  { %1943 = vadd.xlane.f32.xlu2 %v1942_v14  ;;  %v1791_v57 = vpop.xlane.xlu2 %1790  ;;  %v2307_v53 = vadd.f32 %v2306_v18, %v2305_v7  ;;  %v1930_v32 = vadd.f32 %v1929_v23, %v1928_v34  ;;  %v2105_v14 = vadd.f32 %v2057_v5, %v2009_v51  ;;  %v2011_v18 = vld [vmem:[%s5346_s8 + $0xa8] sm:$0xff] }
 0x203   :  { %v2245_v56 = vmul.f32 %v2197_v59, %v1791_v57  ;;  %v2312_v34 = vsel %vm2278_vm2, %v2247_v16, 0.0  ;;  %v2059_v23 = vld [vmem:[%s5347_s9 + $0xa8] sm:$0xff] }
 0x204   :  { %v1232_v42 = vpop.xlane.xlu1 %1231  ;;  %1931 = vadd.xlane.f32.xlu0 %v1930_v32 }
 0x205   :  { %v2308_v17 = vsel %vm2278_vm2, %v2245_v56, 0.0  ;;  %vm1440_vm14 = vcmp.eq.f32.partialorder %v2795_v26, %v1232_v42  ;;  %vm1441_vm1 = vcmp.eq.f32.partialorder %v2802_v30, %v1232_v42  ;;  %vm1442_vm7 = vcmp.eq.f32.partialorder %v2815_v36, %v1232_v42 }
 0x206   :  { %v2309_v50 = vadd.f32 %v2308_v17, %v2307_v53  ;;  %vm1443_vm12 = vcmp.eq.f32.partialorder %v2817_v40, %v1232_v42  ;;  %v1660_v44 = vsel %vm1440_vm14, %v4698_v61, 0.0  ;;  %v1661_v52 = vsel %vm1441_vm1, %v4700_v29, 0.0 }
 0x207   :  { %v1663_v10 = vsel %vm1443_vm12, %v4707_v41, 0.0  ;;  %v1933_v1 = vadd.f32 %v1661_v52, %v1660_v44  ;;  %v1662_v15 = vsel %vm1442_vm7, %v4713_v49, 0.0  ;;  %v2154_v53 = vmul.f32 0.5, %v2106_v33 }
 0x208   :  { %v1256_v58 = vpop.xlane.xlu0 %1255  ;;  %v1935_v25 = vsel %vm990_vm5, %v1663_v10, 0.0  ;;  %v2153_v56 = vmul.f32 0.5, %v2105_v14  ;;  %v2107_v42 = vadd.f32 %v2059_v23, %v2011_v18 }
 0x209   :  { %vm1456_vm8 = vcmp.eq.f32.partialorder %v2795_v26, %v1256_v58  ;;  %vm1457_vm4 = vcmp.eq.f32.partialorder %v2802_v30, %v1256_v58  ;;  %v1934_v46 = vadd.f32 %v1933_v1, %v1662_v15  ;;  %vm1458_vm10 = vcmp.eq.f32.partialorder %v2815_v36, %v1256_v58 }
 0x20a   :  { %v1244_v4 = vpop.xlane.xlu2 %1243  ;;  %vm1459_vm11 = vcmp.eq.f32.partialorder %v2817_v40, %v1256_v58  ;;  %v1676_v20 = vsel %vm1456_vm8, %v4698_v61, 0.0  ;;  %v1677_v54 = vsel %vm1457_vm4, %v4700_v29, 0.0  ;;  %v1678_v13 = vsel %vm1458_vm10, %v4713_v49, 0.0 }
 0x20b   :  { %vm1448_vm3 = vcmp.eq.f32.partialorder %v2795_v26, %v1244_v4  ;;  %vm1449_vm6 = vcmp.eq.f32.partialorder %v2802_v30, %v1244_v4  ;;  %v1936_v63 = vadd.f32 %v1935_v25, %v1934_v46  ;;  %v1679_v11 = vsel %vm1459_vm11, %v4707_v41, 0.0 }
 0x20c   :  { %v1797_v0 = vpop.xlane.xlu1 %1796  ;;  %v1957_v48 = vadd.f32 %v1677_v54, %v1676_v20  ;;  %vm1450_vm15 = vcmp.eq.f32.partialorder %v2815_v36, %v1244_v4  ;;  %vm1451_vm9 = vcmp.eq.f32.partialorder %v2817_v40, %v1244_v4  ;;  %v1668_v43 = vsel %vm1448_vm3, %v4698_v61, 0.0 }
 0x20d   :  { %v2246_v6 = vmul.f32 %v2198_v19, %v1797_v0  ;;  %1937 = vadd.xlane.f32.xlu1 %v1936_v63  ;;  %v1669_v28 = vsel %vm1449_vm6, %v4700_v29, 0.0  ;;  %v1671_v31 = vsel %vm1451_vm9, %v4707_v41, 0.0  ;;  %v1959_v21 = vsel %vm990_vm5, %v1679_v11, 0.0 }
 0x20e   :  { %v1958_v27 = vadd.f32 %v1957_v48, %v1678_v13  ;;  %v1945_v8 = vadd.f32 %v1669_v28, %v1668_v43  ;;  %v1670_v37 = vsel %vm1450_vm15, %v4713_v49, 0.0  ;;  %v1947_v12 = vsel %vm990_vm5, %v1671_v31, 0.0 }
 0x20f   :  { %v2310_v38 = vsel %vm2278_vm2, %v2246_v6, 0.0  ;;  %v2202_v44 = vmul.f32 %v2154_v53, %v2154_v53  ;;  %v2201_v1 = vmul.f32 %v2153_v56, %v2153_v56  ;;  %v2155_v19 = vmul.f32 0.5, %v2107_v42 }
 0x210   :  { %v2311_v59 = vadd.f32 %v2310_v38, %v2309_v50  ;;  %v1821_v9 = vpop.xlane.xlu0 %1820  ;;  %v1960_v7 = vadd.f32 %v1959_v21, %v1958_v27  ;;  %v1946_v24 = vadd.f32 %v1945_v8, %v1670_v37 }
 0x211   :  { %v2250_v20 = vmul.f32 %v2202_v44, %v1821_v9  ;;  %v2203_v5 = vmul.f32 %v2155_v19, %v2155_v19  ;;  %v2061_v44 = vld [vmem:[%s5347_s9 + $0xb8] sm:$0x3] }
 0x212   :  { %1961 = vadd.xlane.f32.xlu2 %v1960_v7  ;;  %v1809_v2 = vpop.xlane.xlu2 %1808  ;;  %v2313_v39 = vadd.f32 %v2312_v34, %v2311_v59  ;;  %v1948_v57 = vadd.f32 %v1947_v12, %v1946_v24 }
 0x213   :  { %v2248_v32 = vmul.f32 %v2200_v55, %v1809_v2  ;;  %v2318_v38 = vsel %vm2278_vm2, %v2250_v20, 0.0  ;;  %v2016_v20 = vld [vmem:[%s5346_s8 + $0xd0] sm:$0xff] }
 0x214   :  { %v1250_v62 = vpop.xlane.xlu1 %1249  ;;  %1949 = vadd.xlane.f32.xlu0 %v1948_v57 }
 0x215   :  { %v2314_v60 = vsel %vm2278_vm2, %v2248_v32, 0.0  ;;  %vm1452_vm0 = vcmp.eq.f32.partialorder %v2795_v26, %v1250_v62  ;;  %vm1453_vm13 = vcmp.eq.f32.partialorder %v2802_v30, %v1250_v62  ;;  %vm1454_vm14 = vcmp.eq.f32.partialorder %v2815_v36, %v1250_v62 }
 0x216   :  { %v2315_v3 = vadd.f32 %v2314_v60, %v2313_v39  ;;  %vm1455_vm1 = vcmp.eq.f32.partialorder %v2817_v40, %v1250_v62  ;;  %v1672_v17 = vsel %vm1452_vm0, %v4698_v61, 0.0  ;;  %v1673_v50 = vsel %vm1453_vm13, %v4700_v29, 0.0 }
 0x217   :  { %v1675_v52 = vsel %vm1455_vm1, %v4707_v41, 0.0  ;;  %v1951_v35 = vadd.f32 %v1673_v50, %v1672_v17  ;;  %v1674_v58 = vsel %vm1454_vm14, %v4713_v49, 0.0 }
 0x218   :  { %v1274_v10 = vpop.xlane.xlu0 %1273  ;;  %v1953_v22 = vsel %vm990_vm5, %v1675_v52, 0.0  ;;  %v2014_v52 = vld [vmem:[%s5346_s8 + $0xc0] sm:$0xff] }
 0x219   :  { %vm1468_vm7 = vcmp.eq.f32.partialorder %v2795_v26, %v1274_v10  ;;  %vm1469_vm12 = vcmp.eq.f32.partialorder %v2802_v30, %v1274_v10  ;;  %v1952_v15 = vadd.f32 %v1951_v35, %v1674_v58  ;;  %vm1470_vm8 = vcmp.eq.f32.partialorder %v2815_v36, %v1274_v10  ;;  %v2062_v35 = vld [vmem:[%s5347_s9 + $0xc0] sm:$0xff] }
 0x21a   :  { %v1262_v46 = vpop.xlane.xlu2 %1261  ;;  %vm1471_vm4 = vcmp.eq.f32.partialorder %v2817_v40, %v1274_v10  ;;  %v1688_v25 = vsel %vm1468_vm7, %v4698_v61, 0.0  ;;  %v1689_v4 = vsel %vm1469_vm12, %v4700_v29, 0.0  ;;  %v1690_v0 = vsel %vm1470_vm8, %v4713_v49, 0.0 }
 0x21b   :  { %vm1460_vm10 = vcmp.eq.f32.partialorder %v2795_v26, %v1262_v46  ;;  %vm1461_vm11 = vcmp.eq.f32.partialorder %v2802_v30, %v1262_v46  ;;  %v1954_v54 = vadd.f32 %v1953_v22, %v1952_v15  ;;  %v1691_v63 = vsel %vm1471_vm4, %v4707_v41, 0.0  ;;  %v2015_v22 = vld [vmem:[%s5346_s8 + $0xc8] sm:$0xff] }
 0x21c   :  { %v1815_v16 = vpop.xlane.xlu1 %1814  ;;  %v1975_v45 = vadd.f32 %v1689_v4, %v1688_v25  ;;  %vm1462_vm3 = vcmp.eq.f32.partialorder %v2815_v36, %v1262_v46  ;;  %vm1463_vm6 = vcmp.eq.f32.partialorder %v2817_v40, %v1262_v46  ;;  %v1680_v11 = vsel %vm1460_vm10, %v4698_v61, 0.0  ;;  %v2063_v46 = vld [vmem:[%s5347_s9 + $0xc8] sm:$0xff] }
 0x21d   :  { %v2249_v47 = vmul.f32 %v2201_v1, %v1815_v16  ;;  %1955 = vadd.xlane.f32.xlu1 %v1954_v54  ;;  %v1681_v48 = vsel %vm1461_vm11, %v4700_v29, 0.0  ;;  %v1683_v13 = vsel %vm1463_vm6, %v4707_v41, 0.0  ;;  %v1977_v51 = vsel %vm990_vm5, %v1691_v63, 0.0 }
 0x21e   :  { %v1976_v6 = vadd.f32 %v1975_v45, %v1690_v0  ;;  %v1963_v43 = vadd.f32 %v1681_v48, %v1680_v11  ;;  %v1682_v33 = vsel %vm1462_vm3, %v4713_v49, 0.0  ;;  %v1965_v21 = vsel %vm990_vm5, %v1683_v13, 0.0  ;;  %v2064_v45 = vld [vmem:[%s5347_s9 + $0xd0] sm:$0xff]  ;;  %v2065_v0 = vld [vmem:[%s5347_s9 + $0xd8] sm:$0xff] }
 0x21f   :  { %v2316_v28 = vsel %vm2278_vm2, %v2249_v47, 0.0  ;;  %vm5439_vm8 = vcmask 1041408   ;;  %vm5442_vm10 = vcmask 762880   ;;  %v2110_v19 = vadd.f32 %v2062_v35, %v2014_v52  ;;  %v2017_v47 = vld [vmem:[%s5346_s8 + $0xd8] sm:$0xff] }
 0x220   :  { %v2317_v27 = vadd.f32 %v2316_v28, %v2315_v3  ;;  %v1978_v31 = vadd.f32 %v1977_v51, %v1976_v6  ;;  %v1964_v8 = vadd.f32 %v1963_v43, %v1682_v33  ;;  %vm5440_vm4 = vmmov %vm5439_vm8  ;;  %v2111_v16 = vadd.f32 %v2063_v46, %v2015_v22  ;;  %v1842_v63 = vpop.xlane.xlu0 %1841 }
 0x221   :  { %v2158_v4 = vmul.f32 0.5, %v2110_v19  ;;  %v2112_v13 = vadd.f32 %v2064_v45, %v2016_v20  ;;  %v2113_v51 = vadd.f32 %v2065_v0, %v2017_v47  ;;  %vm5443_vm11 = vcmask 1024   ;;  %v2071_v19 = vld [vmem:[%s5347_s9 + $0x108] sm:$0xff]  ;;  %v2024_v0 = vld [vmem:[%s5346_s8 + $0x110] sm:$0xff]  ;;  %vm5444_vm3 = vmmov %vm5440_vm4 }
 0x222   :  { %1979 = vadd.xlane.f32.xlu2 %v1978_v31  ;;  %v1827_v55 = vpop.xlane.xlu2 %1826  ;;  %v2319_v37 = vadd.f32 %v2318_v38, %v2317_v27  ;;  %v1966_v59 = vadd.f32 %v1965_v21, %v1964_v8  ;;  %v2159_v28 = vmul.f32 0.5, %v2111_v16  ;;  %v2018_v31 = vld [vmem:[%s5346_s8 + $0xe0] sm:$0xff]  ;;  %vm5445_vm6 = vcmask 467968  }
 0x223   :  { %v2251_v9 = vmul.f32 %v2203_v5, %v1827_v55  ;;  %v2206_v48 = vmul.f32 %v2158_v4, %v2158_v4  ;;  %v2066_v8 = vld [vmem:[%s5347_s9 + $0xe0] sm:$0xff]  ;;  %v2160_v38 = vmul.f32 0.5, %v2112_v13  ;;  %v2161_v55 = vmul.f32 0.5, %v2113_v51  ;;  %v2073_v13 = vld [vmem:[%s5347_s9 + $0x118] sm:$0xff] }
 0x224   :  { %v1268_v7 = vpop.xlane.xlu1 %1267  ;;  %1967 = vadd.xlane.f32.xlu0 %v1966_v59  ;;  %v2207_v21 = vmul.f32 %v2159_v28, %v2159_v28 }
 0x225   :  { %v2320_v24 = vsel %vm2278_vm2, %v2251_v9, 0.0  ;;  %vm1464_vm15 = vcmp.eq.f32.partialorder %v2795_v26, %v1268_v7  ;;  %vm1465_vm9 = vcmp.eq.f32.partialorder %v2802_v30, %v1268_v7  ;;  %vm1466_vm0 = vcmp.eq.f32.partialorder %v2815_v36, %v1268_v7  ;;  %v2019_v9 = vld [vmem:[%s5346_s8 + $0xe8] sm:$0xff] }
 0x226   :  { %v2321_v14 = vadd.f32 %v2320_v24, %v2319_v37  ;;  %vm1467_vm13 = vcmp.eq.f32.partialorder %v2817_v40, %v1268_v7  ;;  %v1684_v34 = vsel %vm1464_vm15, %v4698_v61, 0.0  ;;  %v1685_v12 = vsel %vm1465_vm9, %v4700_v29, 0.0  ;;  %vm5446_vm15 = vmmov %vm5443_vm11 }
 0x227   :  { %v1687_v18 = vsel %vm1467_vm13, %v4707_v41, 0.0  ;;  %v1969_v23 = vadd.f32 %v1685_v12, %v1684_v34  ;;  %v1686_v2 = vsel %vm1466_vm0, %v4713_v49, 0.0  ;;  %v2114_v24 = vadd.f32 %v2066_v8, %v2018_v31  ;;  %v2067_v34 = vld [vmem:[%s5347_s9 + $0xe8] sm:$0xff] }
 0x228   :  { %v1971_v53 = vsel %vm990_vm5, %v1687_v18, 0.0  ;;  %vm5441_vm5 = vmmov %vm5440_vm4  ;;  %v2020_v18 = vld [vmem:[%s5346_s8 + $0xf0] sm:$0xff] }
 0x229   :  { %v1970_v39 = vadd.f32 %v1969_v23, %v1686_v2  ;;  %v2068_v23 = vld [vmem:[%s5347_s9 + $0xf0] sm:$0xff]  ;;  %v2208_v2 = vmul.f32 %v2160_v38, %v2160_v38 }
 0x22a   :  { %v1283_v57 = vpop.xlane.xlu2 %1282 }
 0x22b   :  { %vm1472_vm14 = vcmp.eq.f32.partialorder %v2795_v26, %v1283_v57  ;;  %vm1473_vm1 = vcmp.eq.f32.partialorder %v2802_v30, %v1283_v57  ;;  %vm1474_vm7 = vcmp.eq.f32.partialorder %v2815_v36, %v1283_v57  ;;  %v1972_v32 = vadd.f32 %v1971_v53, %v1970_v39 }
 0x22c   :  { %v1692_v62 = vsel %vm1472_vm14, %v4698_v61, 0.0  ;;  %v1693_v56 = vsel %vm1473_vm1, %v4700_v29, 0.0  ;;  %vm1475_vm12 = vcmp.eq.f32.partialorder %v2817_v40, %v1283_v57  ;;  %v1694_v42 = vsel %vm1474_vm7, %v4713_v49, 0.0  ;;  %v2012_v40 = vld [vmem:[%s5346_s8 + $0xb0] sm:$0xff]  ;;  %v1833_v1 = vpop.xlane.xlu1 %1832 }
 0x22d   :  { %1973 = vadd.xlane.f32.xlu1 %v1972_v32  ;;  %v1981_v60 = vsel %vm5439_vm8, %v1692_v62, 0.0  ;;  %v1982_v3 = vsel %vm5440_vm4, %v1693_v56, 0.0  ;;  %v1695_v26 = vsel %vm1475_vm12, %v4707_v41, 0.0  ;;  %v1984_v30 = vsel %vm5441_vm5, %v1694_v42, 0.0  ;;  %v2060_v29 = vld [vmem:[%s5347_s9 + $0xb0] sm:$0xff] }
 0x22e   :  { %v1983_v17 = vadd.f32 %v1982_v3, %v1981_v60  ;;  %v1986_v50 = vsel %vm5442_vm10, %v1695_v26, 0.0  ;;  %v2108_v49 = vadd.f32 %v2060_v29, %v2012_v40  ;;  %v2013_v41 = vld [vmem:[%s5346_s8 + $0xb8] sm:$0x3]  ;;  %v2209_v57 = vmul.f32 %v2161_v55, %v2161_v55 }
 0x22f   :  { %v2109_v58 = vadd.f32 %v2061_v44, %v2013_v41  ;;  %v2115_v62 = vadd.f32 %v2067_v34, %v2019_v9  ;;  %v2162_v56 = vmul.f32 0.5, %v2114_v24  ;;  %v2116_v42 = vadd.f32 %v2068_v23, %v2020_v18  ;;  %v2022_v41 = vld [vmem:[%s5346_s8 + $0x100] sm:$0xff]  ;;  %v2075_v23 = vld [vmem:[%s5347_s9 + $0x128] sm:$0xff] }
 0x230   :  { %v1985_v36 = vadd.f32 %v1984_v30, %v1983_v17  ;;  %v2156_v10 = vmul.f32 0.5, %v2108_v49  ;;  %v2021_v30 = vld [vmem:[%s5346_s8 + $0xf8] sm:$0xff] }
 0x231   :  { %v2157_v25 = vmul.f32 0.5, %v2109_v58  ;;  %v2164_v40 = vmul.f32 0.5, %v2116_v42  ;;  %v2023_v58 = vld [vmem:[%s5346_s8 + $0x108] sm:$0xff] }
 0x232   :  { %v1987_v61 = vadd.f32 %v1986_v50, %v1985_v36  ;;  %v2204_v15 = vmul.f32 %v2156_v10, %v2156_v10  ;;  %v2069_v36 = vld [vmem:[%s5347_s9 + $0xf8] sm:$0xff]  ;;  %v2163_v50 = vmul.f32 0.5, %v2115_v62  ;;  %v2070_v10 = vld [vmem:[%s5347_s9 + $0x100] sm:$0xff]  ;;  %v2119_v16 = vadd.f32 %v2071_v19, %v2023_v58 }
 0x233   :  { %v2205_v11 = vmul.f32 %v2157_v25, %v2157_v25  ;;  %v2117_v52 = vadd.f32 %v2069_v36, %v2021_v30  ;;  %v2212_v46 = vmul.f32 %v2164_v40, %v2164_v40  ;;  %v2118_v20 = vadd.f32 %v2070_v10, %v2022_v41  ;;  %v2030_v10 = vld [vmem:[%s5346_s8 + $0x140] sm:$0xff] }
 0x234   :  { %1988 = vadd.xlane.f32.xlu0 %v1987_v61  ;;  %v2252_v54 = vmul.f32 %v2204_v15, %v1833_v1  ;;  %v1854_v37 = vpop.xlane.xlu2 %1853  ;;  %v2210_v61 = vmul.f32 %v2162_v56, %v2162_v56  ;;  %v2211_v15 = vmul.f32 %v2163_v50, %v2163_v50  ;;  %v2167_v51 = vmul.f32 0.5, %v2119_v16 }
 0x235   :  { %v2253_v5 = vmul.f32 %v2205_v11, %v1842_v63  ;;  %v2255_v39 = vmul.f32 %v2207_v21, %v1854_v37 }
 0x236   :  { %v2322_v43 = vsel %vm2278_vm2, %v2252_v54, 0.0  ;;  %v2165_v54 = vmul.f32 0.5, %v2117_v52 }
 0x237   :  { %v2323_v27 = vadd.f32 %v2322_v43, %v2321_v14  ;;  %v2324_v59 = vsel %vm5443_vm11, %v2253_v5, 0.0  ;;  %v1860_v14 = vpop.xlane.xlu0 %1859  ;;  %v2328_v3 = vsel %vm2278_vm2, %v2255_v39, 0.0  ;;  %v2166_v43 = vmul.f32 0.5, %v2118_v20  ;;  %v2028_v39 = vld [vmem:[%s5346_s8 + $0x130] sm:$0xff]  ;;  %v2079_v20 = vld [vmem:[%s5347_s9 + $0x148] sm:$0xff] }
 0x238   :  { %v1848_v6 = vpop.xlane.xlu1 %1847  ;;  %v2256_v60 = vmul.f32 %v2208_v2, %v1860_v14  ;;  %v2213_v28 = vmul.f32 %v2165_v54, %v2165_v54 }
 0x239   :  { %v2254_v33 = vmul.f32 %v2206_v48, %v1848_v6  ;;  %v2325_v12 = vadd.f32 %v2324_v59, %v2323_v27  ;;  %v2072_v48 = vld [vmem:[%s5347_s9 + $0x110] sm:$0xff]  ;;  %v2025_v6 = vld [vmem:[%s5346_s8 + $0x118] sm:$0xff]  ;;  %v2074_v27 = vld [vmem:[%s5347_s9 + $0x120] sm:$0xff]  ;;  %v2214_v59 = vmul.f32 %v2166_v43, %v2166_v43 }
 0x23a   :  { %v2330_v49 = vsel %vm2278_vm2, %v2256_v60, 0.0  ;;  %v2120_v38 = vadd.f32 %v2072_v48, %v2024_v0  ;;  %v2121_v21 = vadd.f32 %v2073_v13, %v2025_v6  ;;  %v2032_v48 = vld [vmem:[%s5346_s8 + $0x150] sm:$0xff] }
 0x23b   :  { %v2326_v7 = vsel %vm2278_vm2, %v2254_v33, 0.0  ;;  %v2026_v33 = vld [vmem:[%s5346_s8 + $0x120] sm:$0xff]  ;;  %v2080_v6 = vld [vmem:[%s5347_s9 + $0x150] sm:$0xff] }
 0x23c   :  { %v2327_v53 = vadd.f32 %v2326_v7, %v2325_v12  ;;  %v2215_v7 = vmul.f32 %v2167_v51, %v2167_v51  ;;  %v2122_v24 = vadd.f32 %v2074_v27, %v2026_v33  ;;  %v2027_v12 = vld [vmem:[%s5346_s8 + $0x128] sm:$0xff]  ;;  %v2168_v18 = vmul.f32 0.5, %v2120_v38 }
 0x23d   :  { %v2169_v2 = vmul.f32 0.5, %v2121_v21  ;;  %v2123_v60 = vadd.f32 %v2075_v23, %v2027_v12  ;;  %v2128_v38 = vadd.f32 %v2080_v6, %v2032_v48  ;;  %v2034_v12 = vld [vmem:[%s5346_s8 + $0x160] sm:$0xff] }
 0x23e   :  { %v2329_v17 = vadd.f32 %v2328_v3, %v2327_v53  ;;  %v2170_v56 = vmul.f32 0.5, %v2122_v24  ;;  %v2216_v30 = vmul.f32 %v2168_v18, %v2168_v18  ;;  %v2081_v24 = vld [vmem:[%s5347_s9 + $0x158] sm:$0xff]  ;;  %v2082_v18 = vld [vmem:[%s5347_s9 + $0x160] sm:$0xff] }
 0x23f   :  { %v1872_v29 = vpop.xlane.xlu2 %1871  ;;  %v1878_v35 = vpop.xlane.xlu0 %1877  ;;  %v2217_v36 = vmul.f32 %v2169_v2, %v2169_v2  ;;  %v2171_v52 = vmul.f32 0.5, %v2123_v60  ;;  %v2176_v2 = vmul.f32 0.5, %v2128_v38 }
 0x240   :  { %v1866_v32 = vpop.xlane.xlu1 %1865  ;;  %v2331_v1 = vadd.f32 %v2330_v49, %v2329_v17  ;;  %v2258_v22 = vmul.f32 %v2210_v61, %v1872_v29  ;;  %v2259_v63 = vmul.f32 %v2211_v15, %v1878_v35  ;;  %v2077_v17 = vld [vmem:[%s5347_s9 + $0x138] sm:$0xff]  ;;  %v2218_v49 = vmul.f32 %v2170_v56, %v2170_v56 }
 0x241   :  { %v2257_v26 = vmul.f32 %v2209_v57, %v1866_v32  ;;  %v2076_v57 = vld [vmem:[%s5347_s9 + $0x130] sm:$0xff]  ;;  %v2219_v0 = vmul.f32 %v2171_v52, %v2171_v52  ;;  %v2130_v56 = vadd.f32 %v2082_v18, %v2034_v12 }
 0x242   :  { %v2334_v45 = vsel %vm2278_vm2, %v2258_v22, 0.0  ;;  %v2336_v31 = vsel %vm2278_vm2, %v2259_v63, 0.0  ;;  %v2124_v3 = vadd.f32 %v2076_v57, %v2028_v39  ;;  %v2384_v22 = vld.sshfl [vmem:[#allocation1] sm:$0xff pattern:$0x73625140]  ;;  %v2036_v52 = vld [vmem:[%s5346_s8 + $0x170] sm:$0xff] }
 0x243   :  { %v2332_v44 = vsel %vm2278_vm2, %v2257_v26, 0.0  ;;  %v2029_v26 = vld [vmem:[%s5346_s8 + $0x138] sm:$0xff]  ;;  %v2388_v54 = vsel %vm5444_vm3, %v2384_v22, 0.0 }
 0x244   :  { %v2333_v25 = vadd.f32 %v2332_v44, %v2331_v1  ;;  %v2125_v41 = vadd.f32 %v2077_v17, %v2029_v26  ;;  %v2078_v1 = vld [vmem:[%s5347_s9 + $0x140] sm:$0xff]  ;;  %v2172_v58 = vmul.f32 0.5, %v2124_v3  ;;  %v2224_v17 = vmul.f32 %v2176_v2, %v2176_v2 }
 0x246   :  { %v2335_v11 = vadd.f32 %v2334_v45, %v2333_v25  ;;  %v2173_v45 = vmul.f32 0.5, %v2125_v41  ;;  %v2178_v41 = vmul.f32 0.5, %v2130_v56 }
 0x247   :  { %v1890_v5 = vpop.xlane.xlu2 %1889  ;;  %v1896_v55 = vpop.xlane.xlu0 %1895 }
 0x248   :  { %v1884_v4 = vpop.xlane.xlu1 %1883  ;;  %v2337_v37 = vadd.f32 %v2336_v31, %v2335_v11  ;;  %v2261_v9 = vmul.f32 %v2213_v28, %v1890_v5  ;;  %v2262_v53 = vmul.f32 %v2214_v59, %v1896_v55  ;;  %v2126_v11 = vadd.f32 %v2078_v1, %v2030_v10 }
 0x249   :  { %v2260_v47 = vmul.f32 %v2212_v46, %v1884_v4  ;;  %v2385_v46 = vld.sshfl [vmem:[#allocation1 + $0x8] sm:$0xff pattern:$0x73625140]  ;;  %v2220_v28 = vmul.f32 %v2172_v58, %v2172_v58 }
 0x24a   :  { %v2340_v32 = vsel %vm2278_vm2, %v2261_v9, 0.0  ;;  %v2342_v40 = vsel %vm2278_vm2, %v2262_v53, 0.0  ;;  %v2031_v4 = vld [vmem:[%s5346_s8 + $0x148] sm:$0xff]  ;;  %v2389_v16 = vsel %vm5445_vm6, %v2385_v46, 0.0  ;;  %v2174_v55 = vmul.f32 0.5, %v2126_v11 }
 0x24b   :  { %v2338_v8 = vsel %vm2278_vm2, %v2260_v47, 0.0  ;;  %v2390_v47 = vadd.f32 %v2389_v16, %v2388_v54  ;;  %v2127_v51 = vadd.f32 %v2079_v20, %v2031_v4  ;;  %v2226_v46 = vmul.f32 %v2178_v41, %v2178_v41  ;;  %v2037_v16 = vld [vmem:[%s5346_s8 + $0x178] sm:$0x3] }
 0x24c   :  { %v2339_v14 = vadd.f32 %v2338_v8, %v2337_v37  ;;  %v2221_v8 = vmul.f32 %v2173_v45, %v2173_v45  ;;  %v2222_v39 = vmul.f32 %v2174_v55, %v2174_v55 }
 0x24d   :  { %2391 = vadd.xlane.f32.xlu2 %v2390_v47 }
 0x24e   :  { %v2341_v42 = vadd.f32 %v2340_v32, %v2339_v14  ;;  %v2175_v14 = vmul.f32 0.5, %v2127_v51 }
 0x250   :  { %v2343_v44 = vadd.f32 %v2342_v40, %v2341_v42 }
 0x254   :  { %v1908_v50 = vpop.xlane.xlu2 %1907 }
 0x255   :  { %v2264_v19 = vmul.f32 %v2216_v30, %v1908_v50  ;;  %v2035_v30 = vld [vmem:[%s5346_s8 + $0x168] sm:$0xff] }
 0x257   :  { %v2346_v13 = vsel %vm2278_vm2, %v2264_v19, 0.0 }
 0x25f   :  { %v1902_v34 = vpop.xlane.xlu1 %1901 }
 0x260   :  { %v2263_v62 = vmul.f32 %v2215_v7, %v1902_v34  ;;  %v2033_v7 = vld [vmem:[%s5346_s8 + $0x158] sm:$0xff] }
 0x261   :  { %v2129_v57 = vadd.f32 %v2081_v24, %v2033_v7 }
 0x262   :  { %v2344_v29 = vsel %vm2278_vm2, %v2263_v62, 0.0  ;;  %v2223_v62 = vmul.f32 %v2175_v14, %v2175_v14 }
 0x263   :  { %v2345_v25 = vadd.f32 %v2344_v29, %v2343_v44 }
 0x264   :  { %v1926_v5 = vpop.xlane.xlu2 %1925 }
 0x265   :  { %v2347_v33 = vadd.f32 %v2346_v13, %v2345_v25  ;;  %v2267_v59 = vmul.f32 %v2219_v0, %v1926_v5 }
 0x266   :  { %v1914_v61 = vpop.xlane.xlu0 %1913 }
 0x267   :  { %v2265_v15 = vmul.f32 %v2217_v36, %v1914_v61  ;;  %v2352_v53 = vsel %vm2278_vm2, %v2267_v59, 0.0  ;;  %v2083_v36 = vld [vmem:[%s5347_s9 + $0x168] sm:$0xff]  ;;  %v2177_v61 = vmul.f32 0.5, %v2129_v57 }
 0x268   :  { %v2131_v10 = vadd.f32 %v2083_v36, %v2035_v30 }
 0x269   :  { %v2348_v43 = vsel %vm2278_vm2, %v2265_v15, 0.0  ;;  %v2225_v58 = vmul.f32 %v2177_v61, %v2177_v61 }
 0x26a   :  { %v2349_v21 = vadd.f32 %v2348_v43, %v2347_v33  ;;  %v2179_v54 = vmul.f32 0.5, %v2131_v10 }
 0x26c   :  { %v2227_v43 = vmul.f32 %v2179_v54, %v2179_v54 }
 0x270   :  { %v1920_v35 = vpop.xlane.xlu1 %1919 }
 0x271   :  { %v2266_v63 = vmul.f32 %v2218_v49, %v1920_v35  ;;  %v2084_v35 = vld [vmem:[%s5347_s9 + $0x170] sm:$0xff] }
 0x272   :  { %v2132_v22 = vadd.f32 %v2084_v35, %v2036_v52 }
 0x273   :  { %v2350_v31 = vsel %vm2278_vm2, %v2266_v63, 0.0  ;;  %v2085_v63 = vld [vmem:[%s5347_s9 + $0x178] sm:$0x3] }
 0x274   :  { %v2351_v34 = vadd.f32 %v2350_v31, %v2349_v21  ;;  %v2180_v11 = vmul.f32 0.5, %v2132_v22  ;;  %v2133_v6 = vadd.f32 %v2085_v63, %v2037_v16 }
 0x275   :  { %v1944_v42 = vpop.xlane.xlu2 %1943 }
 0x276   :  { %v2353_v60 = vadd.f32 %v2352_v53, %v2351_v34  ;;  %v2270_v29 = vmul.f32 %v2222_v39, %v1944_v42  ;;  %v2228_v51 = vmul.f32 %v2180_v11, %v2180_v11 }
 0x277   :  { %v1932_v27 = vpop.xlane.xlu0 %1931 }
 0x278   :  { %v2268_v9 = vmul.f32 %v2220_v28, %v1932_v27  ;;  %v2358_v19 = vsel %vm2278_vm2, %v2270_v29, 0.0  ;;  %v2181_v27 = vmul.f32 0.5, %v2133_v6 }
 0x27a   :  { %v2354_v32 = vsel %vm2278_vm2, %v2268_v9, 0.0  ;;  %v2229_v59 = vmul.f32 %v2181_v27, %v2181_v27 }
 0x27b   :  { %v2355_v50 = vadd.f32 %v2354_v32, %v2353_v60 }
 0x280   :  { %v1938_v37 = vpop.xlane.xlu1 %1937 }
 0x281   :  { %v2269_v23 = vmul.f32 %v2221_v8, %v1938_v37 }
 0x283   :  { %v2356_v26 = vsel %vm2278_vm2, %v2269_v23, 0.0 }
 0x284   :  { %v2357_v44 = vadd.f32 %v2356_v26, %v2355_v50 }
 0x285   :  { %v1962_v25 = vpop.xlane.xlu2 %1961 }
 0x286   :  { %v2359_v4 = vadd.f32 %v2358_v19, %v2357_v44  ;;  %v2273_v0 = vmul.f32 %v2225_v58, %v1962_v25 }
 0x287   :  { %v1950_v3 = vpop.xlane.xlu0 %1949 }
 0x288   :  { %v2271_v49 = vmul.f32 %v2223_v62, %v1950_v3  ;;  %v2364_v28 = vsel %vm2278_vm2, %v2273_v0, 0.0 }
 0x28a   :  { %v2360_v15 = vsel %vm2278_vm2, %v2271_v49, 0.0 }
 0x28b   :  { %v2361_v47 = vadd.f32 %v2360_v15, %v2359_v4 }
 0x290   :  { %v1956_v40 = vpop.xlane.xlu1 %1955 }
 0x291   :  { %v2272_v1 = vmul.f32 %v2224_v17, %v1956_v40 }
 0x293   :  { %v2362_v45 = vsel %vm2278_vm2, %v2272_v1, 0.0 }
 0x294   :  { %v2363_v13 = vadd.f32 %v2362_v45, %v2361_v47 }
 0x295   :  { %v1980_v31 = vpop.xlane.xlu2 %1979 }
 0x296   :  { %v2365_v8 = vadd.f32 %v2364_v28, %v2363_v13  ;;  %v2276_v37 = vmul.f32 %v2228_v51, %v1980_v31 }
 0x297   :  { %v1968_v20 = vpop.xlane.xlu0 %1967 }
 0x298   :  { %v2274_v48 = vmul.f32 %v2226_v46, %v1968_v20  ;;  %v2370_v24 = vsel %vm2278_vm2, %v2276_v37, 0.0 }
 0x29a   :  { %v2366_v5 = vsel %vm2278_vm2, %v2274_v48, 0.0 }
 0x29b   :  { %v2367_v21 = vadd.f32 %v2366_v5, %v2365_v8 }
 0x2a0   :  { %v1974_v33 = vpop.xlane.xlu1 %1973 }
 0x2a1   :  { %v2275_v38 = vmul.f32 %v2227_v43, %v1974_v33 }
 0x2a3   :  { %v2368_v55 = vsel %vm2278_vm2, %v2275_v38, 0.0 }
 0x2a4   :  { %v2369_v9 = vadd.f32 %v2368_v55, %v2367_v21 }
 0x2a6   :  { %v2371_v34 = vadd.f32 %v2370_v24, %v2369_v9 }
 0x2a7   :  { %v1989_v7 = vpop.xlane.xlu0 %1988 }
 0x2a8   :  { %v2277_v14 = vmul.f32 %v2229_v59, %v1989_v7 }
 0x2aa   :  { %v2372_v12 = vsel %vm5446_vm15, %v2277_v14, 0.0 }
 0x2ab   :  { %v2373_v18 = vadd.f32 %v2372_v12, %v2371_v34 }
 0x2ad   :  { %2374 = vadd.xlane.f32.xlu1 %v2373_v18 }
 0x2c0   :  { %v2392_v23 = vpop.xlane.xlu2 %2391 }
 0x2c1   :  { %v2393_v2 = vrot.slane %v2392_v23, 4 }
 0x2c3   :  { %v2394_v39 = vadd.f32 %v2393_v2, %v2392_v23 }
 0x2c5   :  { %v2395_v57 = vrot.slane %v2394_v39, 2 }
 0x2c7   :  { %v2396_v56 = vadd.f32 %v2395_v57, %v2394_v39 }
 0x2c9   :  { %v2397_v3 = vrot.slane %v2396_v56, 1 }
 0x2cb   :  { %v2398_v30 = vadd.f32 %v2397_v3, %v2396_v56 }
 0x320   :  { %v2375_v53 = vpop.xlane.xlu1 %2374 }
 0x321   :  { %v2376_v32 = vrot.slane %v2375_v53, 4 }
 0x323   :  { %v2377_v62 = vadd.f32 %v2376_v32, %v2375_v53 }
 0x325   :  { %v2378_v42 = vrot.slane %v2377_v62, 2 }
 0x327   :  { %v2379_v60 = vadd.f32 %v2378_v42, %v2377_v62 }
 0x329   :  { %v2380_v26 = vrot.slane %v2379_v60, 1 }
 0x32b   :  { %v2381_v17 = vadd.f32 %v2380_v26, %v2379_v60 }
 0x32d   :  { %2502 = vpush %v2381_v17 }
 0x32e   :  { %2504 = vpush %v2398_v30 }
 0x35e   :  { %s2503_s8 = spop %2502 }
 0x35f   :  { %s2505_s9 = spop %2504 }
 0x360   :  { %s2400_s16 = smul.f32 17.498, %s2505_s9 }
 0x362   :  { %s2401_s17 = ssub.f32 %s2400_s16, %s2503_s8 }
 0x364   :  { %s2410_s19 = smul.f32 %s3238_s25, %s2401_s17 }
 0x366   :  { %s2411_s0 = sand.u32 2147483647, %s2410_s19 }
 0x367   :  { %s2418_s20 = smul.f32 0.1, %s2411_s0  ;;  %2433 = sst [smem:[#allocation2 + $0x6]] %s2411_s0 }
 0x369   :  { %s2419_s21 = sadd.f32 %s2418_s20, %s4909_s1 }
 0x36b   :  { %2435 = sst [smem:[#allocation2 + $0x7]] %s2419_s21 }
 0x36c   :  { %2444 = dma.smem_to_hbm %s2556_s22, 16, %s2442_s3, [#allocation3]  }
 0x36d   :  { %2549 = dma.done.wait [#allocation3], 16  }
 0x36e   :  { %2550 = vsyncadd [#allocation3], 4294967280 }
 0x36f   :  { %2449 = sfence }
 0x370   :  { %2450 = vsyncpa [#allocation3], 1 }

</bundles_post_ra>
